<compile_context>
chip_gen: v6e
topology: v6e:2x2x1
jax: 0.10.0
libtpu: 0.0.40
codegen_flags: <defaults>
</compile_context>

<pallas_src>
import jax
import jax.numpy as jnp
from jax.experimental import pallas as pl
from jax.experimental.pallas import tpu as pltpu

_MATMUL_DTYPE = jnp.bfloat16   # MXU operand dtype; accumulation is always f32


def _gru_cell(h, gx_r, gx_z, gx_n, whh_r, whh_z, whh_n, bhh_r, bhh_z, bhh_n):
    """One GRU step. gx_* already contain x_t @ W_i*^T + b_i* (hoisted).

    PyTorch semantics: gate order (r, z, n), n uses r * (W_hn h + b_hn),
    h' = (1 - z) * n + z * h. Matmul operands bf16, everything else f32."""
    h_mm = h.astype(_MATMUL_DTYPE)
    hr = jnp.dot(h_mm, whh_r, preferred_element_type=jnp.float32) + bhh_r
    hz = jnp.dot(h_mm, whh_z, preferred_element_type=jnp.float32) + bhh_z
    hn = jnp.dot(h_mm, whh_n, preferred_element_type=jnp.float32) + bhh_n
    r = jax.nn.sigmoid(gx_r + hr)
    z = jax.nn.sigmoid(gx_z + hz)
    n = jnp.tanh(gx_n + r * hn)
    return (1.0 - z) * n + z * h


def _fused_rnn_gru_kernel(
    x_ref,      # (T*NP, D)  bf16  time-major input, batch padded to NP rows
    wih1_ref,   # (3, D, H)  bf16  layer-1 input weights, gate-major
    whh1_ref,   # (3, H, H)  bf16  layer-1 recurrent weights, gate-major
    bih1_ref,   # (3, 1, H)  f32
    bhh1_ref,   # (3, 1, H)  f32
    wih2_ref,   # (3, H, H)  bf16  layer-2 input weights
    whh2_ref,   # (3, H, H)  bf16  layer-2 recurrent weights
    bih2_ref,   # (3, 1, H)  f32
    bhh2_ref,   # (3, 1, H)  f32
    wfc_ref,    # (T, H, C)  bf16  fc weight split into per-timestep slabs
    bfc_ref,    # (1, C)     f32
    out_ref,    # (NP, C)    f32   logits (padded batch rows included)
    gr_scr,     # (T*NP, H)  f32   hoisted reset-gate input term
    gz_scr,     # (T*NP, H)  f32   hoisted update-gate input term
    gn_scr,     # (T*NP, H)  f32   hoisted new-gate input term
    h1_scr,     # (T*NP, H)  f32   layer-1 hidden-state sequence
):
    T, H, C = wfc_ref.shape
    NP = out_ref.shape[0]

    def hoisted_input_projection(x_all, wih_ref, bih_ref):
        # One big MXU matmul per gate with M = T*NP (instead of T tiny ones).
        for g, scr in enumerate((gr_scr, gz_scr, gn_scr)):
            scr[...] = (
                jnp.dot(x_all, wih_ref[g], preferred_element_type=jnp.float32)
                + bih_ref[g]
            )

    # ---------------- Layer 1 ----------------
    hoisted_input_projection(x_ref[...], wih1_ref, bih1_ref)

    whh1 = (whh1_ref[0], whh1_ref[1], whh1_ref[2])
    bhh1 = (bhh1_ref[0], bhh1_ref[1], bhh1_ref[2])
    h = jnp.zeros((NP, H), jnp.float32)            # h0 = 0 (matches torch)
    # T is small and static -> fully unrolled in-kernel time loop with static,
    # sublane-aligned slices (equivalent to lax.fori_loop(..., unroll=True)).
    for t in range(T):
        row = t * NP
        h = _gru_cell(
            h,
            gr_scr[row:row + NP, :],
            gz_scr[row:row + NP, :],
            gn_scr[row:row + NP, :],
            *whh1, *bhh1,
        )
        h1_scr[row:row + NP, :] = h

    # ------------- Layer 2 (input = layer-1 sequence) + fused FC head --------
    hoisted_input_projection(h1_scr[...].astype(_MATMUL_DTYPE),
                             wih2_ref, bih2_ref)

    whh2 = (whh2_ref[0], whh2_ref[1], whh2_ref[2])
    bhh2 = (bhh2_ref[0], bhh2_ref[1], bhh2_ref[2])
    h = jnp.zeros((NP, H), jnp.float32)
    acc = jnp.zeros((NP, C), jnp.float32)
    for t in range(T):
        row = t * NP
        h = _gru_cell(
            h,
            gr_scr[row:row + NP, :],
            gz_scr[row:row + NP, :],
            gn_scr[row:row + NP, :],
            *whh2, *bhh2,
        )
        # fc(out.reshape(N, T*H)) accumulated per timestep: acc += h_t @ Wfc[t]
        acc = acc + jnp.dot(h.astype(_MATMUL_DTYPE), wfc_ref[t],
                            preferred_element_type=jnp.float32)

    out_ref[...] = acc + bfc_ref[...]


def prepare_kernel_params(params, matmul_dtype=_MATMUL_DTYPE):
    """One-time repack of PyTorch-layout GRU/FC params into kernel layout
    (done outside the jitted forward):
      * gate axis moved in front: W_ih (3H, D) -> (3, D, H), W_hh -> (3, H, H)
      * biases -> (3, 1, H) f32
      * fc weight (C, T*H) -> (T, H, C) per-timestep slabs, bias -> (1, C)
      * matmul weights cast to bf16 (accumulation stays f32 in-kernel)
    """
    if len(params["gru"]) != 2:
        raise ValueError("fused kernel is specialized for num_layers=2")
    kp = {}
    for li, layer in enumerate(params["gru"]):
        w_ih, w_hh = layer["w_ih"], layer["w_hh"]
        b_ih, b_hh = layer["b_ih"], layer["b_hh"]
        hid = w_hh.shape[1]
        d_in = w_ih.shape[1]
        kp[f"wih{li}"] = jnp.transpose(
            w_ih.reshape(3, hid, d_in), (0, 2, 1)).astype(matmul_dtype)
        kp[f"whh{li}"] = jnp.transpose(
            w_hh.reshape(3, hid, hid), (0, 2, 1)).astype(matmul_dtype)
        kp[f"bih{li}"] = b_ih.reshape(3, 1, hid).astype(jnp.float32)
        kp[f"bhh{li}"] = b_hh.reshape(3, 1, hid).astype(jnp.float32)

    w_fc, b_fc = params["fc"]["w"], params["fc"]["b"]
    num_classes, t_times_h = w_fc.shape
    hid = params["gru"][0]["w_hh"].shape[1]
    seq = t_times_h // hid
    kp["wfc"] = jnp.transpose(w_fc).reshape(seq, hid, num_classes).astype(matmul_dtype)
    kp["bfc"] = b_fc.reshape(1, num_classes).astype(jnp.float32)
    return kp


@jax.jit
def rnn_gru_forward(x, kp):
    """Forward pass of RNN_GRU. x: (N, T, D) batch-first. Returns (N, C)."""
    N, T, D = x.shape
    T_w, H, C = kp["wfc"].shape
    if T_w != T:
        raise ValueError("sequence length mismatch between x and fc weight")
    NP = max(8, ((N + 7) // 8) * 8)          # pad batch to a sublane multiple

    # Time-major + batch pad + flatten to 2-D so every in-kernel access is a
    # plain sublane-aligned slice (no in-kernel reshape/transpose). Single tiny
    # fused XLA op over the input only.
    x_tm = jnp.transpose(x, (1, 0, 2))
    x_tm = jnp.pad(x_tm, ((0, 0), (0, NP - N), (0, 0)))
    x2d = x_tm.reshape(T * NP, D).astype(kp["wih0"].dtype)

    vmem = pl.BlockSpec(memory_space=pltpu.MemorySpace.VMEM)
    out = pl.pallas_call(
        _fused_rnn_gru_kernel,
        out_shape=jax.ShapeDtypeStruct((NP, C), jnp.float32),
        in_specs=[vmem] * 11,
        out_specs=vmem,
        scratch_shapes=[pltpu.VMEM((T * NP, H), jnp.float32) for _ in range(4)],
        # No grid: everything is VMEM-resident (well under scoped limits on
        # v5e/v6e/v7x for this module's shapes); chunk T for very long seqs.
    )(x2d,
      kp["wih0"], kp["whh0"], kp["bih0"], kp["bhh0"],
      kp["wih1"], kp["whh1"], kp["bih1"], kp["bhh1"],
      kp["wfc"], kp["bfc"])
    return out[:N]


# ----------------------------------------------------------------------------
# Pure-JAX references + PyTorch-style init (sanity checks for the Pallas kernel)
# ----------------------------------------------------------------------------
def _ref_forward(x, params, matmul_dtype=jnp.float32):
    """lax.scan reference. matmul_dtype=bfloat16 mirrors the kernel's mixed
    precision (bf16 matmul operands, f32 accumulation / elementwise)."""
    N, T, D = x.shape
    H = params["gru"][0]["w_hh"].shape[1]

    def mm(a, b):
        return jnp.dot(a.astype(matmul_dtype), b.astype(matmul_dtype),
                       preferred_element_type=jnp.float32)

    def run_layer(inp_tm, layer):
        w_ih, w_hh = layer["w_ih"], layer["w_hh"]
        b_ih, b_hh = layer["b_ih"], layer["b_hh"]

        def step(h, x_t):
            gx = mm(x_t, w_ih.T) + b_ih
            gh = mm(h, w_hh.T) + b_hh
            r = jax.nn.sigmoid(gx[:, :H] + gh[:, :H])
            z = jax.nn.sigmoid(gx[:, H:2 * H] + gh[:, H:2 * H])
            n = jnp.tanh(gx[:, 2 * H:] + r * gh[:, 2 * H:])
            h_new = (1.0 - z) * n + z * h
            return h_new, h_new

        h0 = jnp.zeros((inp_tm.shape[1], H), jnp.float32)
        _, outs = jax.lax.scan(step, h0, inp_tm)
        return outs

    h = jnp.transpose(x, (1, 0, 2))
    for layer in params["gru"]:
        h = run_layer(h, layer)
    out_flat = jnp.transpose(h, (1, 0, 2)).reshape(N, -1)
    return mm(out_flat, params["fc"]["w"].T) + params["fc"]["b"]


def init_params(key, input_size, hidden_size, num_layers, num_classes, seq_len):
    """PyTorch-style uniform(-1/sqrt(H), 1/sqrt(H)) initialization."""
    params = {"gru": [], "fc": {}}
    k = 1.0 / jnp.sqrt(hidden_size)
    for layer in range(num_layers):
        d_in = input_size if layer == 0 else hidden_size
        key, k1, k2, k3, k4 = jax.random.split(key, 5)
        params["gru"].append({
            "w_ih": jax.random.uniform(k1, (3 * hidden_size, d_in), jnp.float32, -k, k),
            "w_hh": jax.random.uniform(k2, (3 * hidden_size, hidden_size), jnp.float32, -k, k),
            "b_ih": jax.random.uniform(k3, (3 * hidden_size,), jnp.float32, -k, k),
            "b_hh": jax.random.uniform(k4, (3 * hidden_size,), jnp.float32, -k, k),
        })
    kf = 1.0 / jnp.sqrt(hidden_size * seq_len)
    key, k1, k2 = jax.random.split(key, 3)
    params["fc"]["w"] = jax.random.uniform(
        k1, (num_classes, hidden_size * seq_len), jnp.float32, -kf, kf)
    params["fc"]["b"] = jax.random.uniform(k2, (num_classes,), jnp.float32, -kf, kf)
    return params


if __name__ == "__main__":
    # Small shapes consistent with the module's forward
    batch = 2
    seq_len = 8
    input_size = 16
    hidden_size = 32
    num_layers = 2
    num_classes = 10

    root = jax.random.PRNGKey(0)
    kx, kparam = jax.random.split(root)
    x = jax.random.normal(kx, (batch, seq_len, input_size), jnp.float32)
    params = init_params(kparam, input_size, hidden_size, num_layers,
                         num_classes, seq_len)

    kparams = prepare_kernel_params(params)     # one-time repack, outside jit
    out = jax.block_until_ready(rnn_gru_forward(x, kparams))
    assert out.shape == (batch, num_classes)

    # Tight check against a reference mirroring the kernel's mixed precision.
    ref_matched = jax.block_until_ready(_ref_forward(x, params, jnp.bfloat16))
    assert jnp.allclose(out, ref_matched, atol=2e-3, rtol=2e-3), \
        "mismatch vs matched-precision JAX reference"

    # Loose check against the full-f32 reference (PyTorch semantics).
    ref_f32 = jax.block_until_ready(_ref_forward(x, params, jnp.float32))
    assert jnp.allclose(out, ref_f32, atol=5e-2, rtol=5e-2), \
        "mismatch vs float32 JAX reference"

    print("KERNEL_OK")
</pallas_src>

<mosaic_0001>
module attributes {stable_mosaic.version = 11 : i64} {
  func.func @_fused_rnn_gru_kernel(%arg0: memref<64x16xbf16, #tpu.memory_space<vmem>>, %arg1: memref<3x16x32xbf16, #tpu.memory_space<vmem>>, %arg2: memref<3x32x32xbf16, #tpu.memory_space<vmem>>, %arg3: memref<3x1x32xf32, #tpu.memory_space<vmem>>, %arg4: memref<3x1x32xf32, #tpu.memory_space<vmem>>, %arg5: memref<3x32x32xbf16, #tpu.memory_space<vmem>>, %arg6: memref<3x32x32xbf16, #tpu.memory_space<vmem>>, %arg7: memref<3x1x32xf32, #tpu.memory_space<vmem>>, %arg8: memref<3x1x32xf32, #tpu.memory_space<vmem>>, %arg9: memref<8x32x10xbf16, #tpu.memory_space<vmem>>, %arg10: memref<1x10xf32, #tpu.memory_space<vmem>>, %arg11: memref<8x10xf32, #tpu.memory_space<vmem>>, %arg12: memref<64x32xf32, #tpu.memory_space<vmem>>, %arg13: memref<64x32xf32, #tpu.memory_space<vmem>>, %arg14: memref<64x32xf32, #tpu.memory_space<vmem>>, %arg15: memref<64x32xf32, #tpu.memory_space<vmem>>) attributes {dimension_semantics = [], scalar_prefetch = 0 : i64, scratch_operands = 4 : i64, tpu.core_type = #tpu.core_type<tc>} {
    %c0 = arith.constant 0 : index
    %c0_0 = arith.constant 0 : index
    %0 = vector.load %arg0[%c0, %c0_0] : memref<64x16xbf16, #tpu.memory_space<vmem>>, vector<64x16xbf16>
    %c0_1 = arith.constant 0 : index
    %c0_2 = arith.constant 0 : index
    %c0_3 = arith.constant 0 : index
    %1 = vector.load %arg1[%c0_1, %c0_2, %c0_3] : memref<3x16x32xbf16, #tpu.memory_space<vmem>>, vector<1x16x32xbf16>
    %2 = vector.shape_cast %1 : vector<1x16x32xbf16> to vector<16x32xbf16>
    %cst = arith.constant dense<0.000000e+00> : vector<64x32xf32>
    %3 = tpu.matmul %0, %2, %cst {dimension_numbers = #tpu.dot_dimension_numbers<[1], [0], [0], [1], [0, 0, 1, 1], [], []>} : vector<64x16xbf16>, vector<16x32xbf16>, vector<64x32xf32> -> vector<64x32xf32>
    %c0_4 = arith.constant 0 : index
    %c0_5 = arith.constant 0 : index
    %c0_6 = arith.constant 0 : index
    %4 = vector.load %arg3[%c0_4, %c0_5, %c0_6] : memref<3x1x32xf32, #tpu.memory_space<vmem>>, vector<1x1x32xf32>
    %5 = vector.shape_cast %4 : vector<1x1x32xf32> to vector<1x32xf32>
    %6 = vector.broadcast %5 : vector<1x32xf32> to vector<64x32xf32>
    %7 = arith.addf %3, %6 : vector<64x32xf32>
    %c0_7 = arith.constant 0 : index
    %c0_8 = arith.constant 0 : index
    %8 = vector.load %arg12[%c0_7, %c0_8] : memref<64x32xf32, #tpu.memory_space<vmem>>, vector<64x32xf32>
    tpu.vector_store %arg12[%c0_7, %c0_8], %7 {strides = array<i32>} : memref<64x32xf32, #tpu.memory_space<vmem>>, vector<64x32xf32>,
    %c1 = arith.constant 1 : index
    %c0_9 = arith.constant 0 : index
    %c0_10 = arith.constant 0 : index
    %9 = vector.load %arg1[%c1, %c0_9, %c0_10] : memref<3x16x32xbf16, #tpu.memory_space<vmem>>, vector<1x16x32xbf16>
    %10 = vector.shape_cast %9 : vector<1x16x32xbf16> to vector<16x32xbf16>
    %cst_11 = arith.constant dense<0.000000e+00> : vector<64x32xf32>
    %11 = tpu.matmul %0, %10, %cst_11 {dimension_numbers = #tpu.dot_dimension_numbers<[1], [0], [0], [1], [0, 0, 1, 1], [], []>} : vector<64x16xbf16>, vector<16x32xbf16>, vector<64x32xf32> -> vector<64x32xf32>
    %c1_12 = arith.constant 1 : index
    %c0_13 = arith.constant 0 : index
    %c0_14 = arith.constant 0 : index
    %12 = vector.load %arg3[%c1_12, %c0_13, %c0_14] : memref<3x1x32xf32, #tpu.memory_space<vmem>>, vector<1x1x32xf32>
    %13 = vector.shape_cast %12 : vector<1x1x32xf32> to vector<1x32xf32>
    %14 = vector.broadcast %13 : vector<1x32xf32> to vector<64x32xf32>
    %15 = arith.addf %11, %14 : vector<64x32xf32>
    %c0_15 = arith.constant 0 : index
    %c0_16 = arith.constant 0 : index
    %16 = vector.load %arg13[%c0_15, %c0_16] : memref<64x32xf32, #tpu.memory_space<vmem>>, vector<64x32xf32>
    tpu.vector_store %arg13[%c0_15, %c0_16], %15 {strides = array<i32>} : memref<64x32xf32, #tpu.memory_space<vmem>>, vector<64x32xf32>,
    %c2 = arith.constant 2 : index
    %c0_17 = arith.constant 0 : index
    %c0_18 = arith.constant 0 : index
    %17 = vector.load %arg1[%c2, %c0_17, %c0_18] : memref<3x16x32xbf16, #tpu.memory_space<vmem>>, vector<1x16x32xbf16>
    %18 = vector.shape_cast %17 : vector<1x16x32xbf16> to vector<16x32xbf16>
    %cst_19 = arith.constant dense<0.000000e+00> : vector<64x32xf32>
    %19 = tpu.matmul %0, %18, %cst_19 {dimension_numbers = #tpu.dot_dimension_numbers<[1], [0], [0], [1], [0, 0, 1, 1], [], []>} : vector<64x16xbf16>, vector<16x32xbf16>, vector<64x32xf32> -> vector<64x32xf32>
    %c2_20 = arith.constant 2 : index
    %c0_21 = arith.constant 0 : index
    %c0_22 = arith.constant 0 : index
    %20 = vector.load %arg3[%c2_20, %c0_21, %c0_22] : memref<3x1x32xf32, #tpu.memory_space<vmem>>, vector<1x1x32xf32>
    %21 = vector.shape_cast %20 : vector<1x1x32xf32> to vector<1x32xf32>
    %22 = vector.broadcast %21 : vector<1x32xf32> to vector<64x32xf32>
    %23 = arith.addf %19, %22 : vector<64x32xf32>
    %c0_23 = arith.constant 0 : index
    %c0_24 = arith.constant 0 : index
    %24 = vector.load %arg14[%c0_23, %c0_24] : memref<64x32xf32, #tpu.memory_space<vmem>>, vector<64x32xf32>
    tpu.vector_store %arg14[%c0_23, %c0_24], %23 {strides = array<i32>} : memref<64x32xf32, #tpu.memory_space<vmem>>, vector<64x32xf32>,
    %c0_25 = arith.constant 0 : index
    %c0_26 = arith.constant 0 : index
    %c0_27 = arith.constant 0 : index
    %25 = vector.load %arg2[%c0_25, %c0_26, %c0_27] : memref<3x32x32xbf16, #tpu.memory_space<vmem>>, vector<1x32x32xbf16>
    %26 = vector.shape_cast %25 : vector<1x32x32xbf16> to vector<32x32xbf16>
    %c1_28 = arith.constant 1 : index
    %c0_29 = arith.constant 0 : index
    %c0_30 = arith.constant 0 : index
    %27 = vector.load %arg2[%c1_28, %c0_29, %c0_30] : memref<3x32x32xbf16, #tpu.memory_space<vmem>>, vector<1x32x32xbf16>
    %28 = vector.shape_cast %27 : vector<1x32x32xbf16> to vector<32x32xbf16>
    %c2_31 = arith.constant 2 : index
    %c0_32 = arith.constant 0 : index
    %c0_33 = arith.constant 0 : index
    %29 = vector.load %arg2[%c2_31, %c0_32, %c0_33] : memref<3x32x32xbf16, #tpu.memory_space<vmem>>, vector<1x32x32xbf16>
    %30 = vector.shape_cast %29 : vector<1x32x32xbf16> to vector<32x32xbf16>
    %c0_34 = arith.constant 0 : index
    %c0_35 = arith.constant 0 : index
    %c0_36 = arith.constant 0 : index
    %31 = vector.load %arg4[%c0_34, %c0_35, %c0_36] : memref<3x1x32xf32, #tpu.memory_space<vmem>>, vector<1x1x32xf32>
    %32 = vector.shape_cast %31 : vector<1x1x32xf32> to vector<1x32xf32>
    %c1_37 = arith.constant 1 : index
    %c0_38 = arith.constant 0 : index
    %c0_39 = arith.constant 0 : index
    %33 = vector.load %arg4[%c1_37, %c0_38, %c0_39] : memref<3x1x32xf32, #tpu.memory_space<vmem>>, vector<1x1x32xf32>
    %34 = vector.shape_cast %33 : vector<1x1x32xf32> to vector<1x32xf32>
    %c2_40 = arith.constant 2 : index
    %c0_41 = arith.constant 0 : index
    %c0_42 = arith.constant 0 : index
    %35 = vector.load %arg4[%c2_40, %c0_41, %c0_42] : memref<3x1x32xf32, #tpu.memory_space<vmem>>, vector<1x1x32xf32>
    %36 = vector.shape_cast %35 : vector<1x1x32xf32> to vector<1x32xf32>
    %cst_43 = arith.constant 0.000000e+00 : f32
    %37 = vector.broadcast %cst_43 : f32 to vector<8x32xf32>
    %c0_44 = arith.constant 0 : index
    %c0_45 = arith.constant 0 : index
    %38 = vector.load %arg12[%c0_44, %c0_45] : memref<64x32xf32, #tpu.memory_space<vmem>>, vector<8x32xf32>
    %c0_46 = arith.constant 0 : index
    %c0_47 = arith.constant 0 : index
    %39 = vector.load %arg13[%c0_46, %c0_47] : memref<64x32xf32, #tpu.memory_space<vmem>>, vector<8x32xf32>
    %c0_48 = arith.constant 0 : index
    %c0_49 = arith.constant 0 : index
    %40 = vector.load %arg14[%c0_48, %c0_49] : memref<64x32xf32, #tpu.memory_space<vmem>>, vector<8x32xf32>
    %41 = arith.truncf %37 : vector<8x32xf32> to vector<8x32xbf16>
    %cst_50 = arith.constant dense<0.000000e+00> : vector<8x32xf32>
    %42 = tpu.matmul %41, %26, %cst_50 {dimension_numbers = #tpu.dot_dimension_numbers<[1], [0], [0], [1], [0, 0, 1, 1], [], []>} : vector<8x32xbf16>, vector<32x32xbf16>, vector<8x32xf32> -> vector<8x32xf32>
    %43 = vector.broadcast %32 : vector<1x32xf32> to vector<8x32xf32>
    %44 = arith.addf %42, %43 : vector<8x32xf32>
    %cst_51 = arith.constant dense<0.000000e+00> : vector<8x32xf32>
    %45 = tpu.matmul %41, %28, %cst_51 {dimension_numbers = #tpu.dot_dimension_numbers<[1], [0], [0], [1], [0, 0, 1, 1], [], []>} : vector<8x32xbf16>, vector<32x32xbf16>, vector<8x32xf32> -> vector<8x32xf32>
    %46 = vector.broadcast %34 : vector<1x32xf32> to vector<8x32xf32>
    %47 = arith.addf %45, %46 : vector<8x32xf32>
    %cst_52 = arith.constant dense<0.000000e+00> : vector<8x32xf32>
    %48 = tpu.matmul %41, %30, %cst_52 {dimension_numbers = #tpu.dot_dimension_numbers<[1], [0], [0], [1], [0, 0, 1, 1], [], []>} : vector<8x32xbf16>, vector<32x32xbf16>, vector<8x32xf32> -> vector<8x32xf32>
    %49 = vector.broadcast %36 : vector<1x32xf32> to vector<8x32xf32>
    %50 = arith.addf %48, %49 : vector<8x32xf32>
    %51 = arith.addf %38, %44 : vector<8x32xf32>
    %52 = arith.negf %51 : vector<8x32xf32>
    %53 = math.exp %52 : vector<8x32xf32>
    %cst_53 = arith.constant 1.000000e+00 : f32
    %54 = vector.broadcast %cst_53 : f32 to vector<8x32xf32>
    %55 = arith.addf %54, %53 : vector<8x32xf32>
    %56 = arith.divf %54, %55 : vector<8x32xf32>
    %57 = arith.addf %39, %47 : vector<8x32xf32>
    %58 = arith.negf %57 : vector<8x32xf32>
    %59 = math.exp %58 : vector<8x32xf32>
    %cst_54 = arith.constant 1.000000e+00 : f32
    %60 = vector.broadcast %cst_54 : f32 to vector<8x32xf32>
    %61 = arith.addf %60, %59 : vector<8x32xf32>
    %62 = arith.divf %60, %61 : vector<8x32xf32>
    %63 = arith.mulf %56, %50 : vector<8x32xf32>
    %64 = arith.addf %40, %63 : vector<8x32xf32>
    %65 = math.tanh %64 : vector<8x32xf32>
    %cst_55 = arith.constant 1.000000e+00 : f32
    %66 = vector.broadcast %cst_55 : f32 to vector<8x32xf32>
    %67 = arith.subf %66, %62 : vector<8x32xf32>
    %68 = arith.mulf %67, %65 : vector<8x32xf32>
    %69 = arith.mulf %62, %37 : vector<8x32xf32>
    %70 = arith.addf %68, %69 : vector<8x32xf32>
    %c0_56 = arith.constant 0 : index
    %c0_57 = arith.constant 0 : index
    %71 = vector.load %arg15[%c0_56, %c0_57] : memref<64x32xf32, #tpu.memory_space<vmem>>, vector<8x32xf32>
    tpu.vector_store %arg15[%c0_56, %c0_57], %70 {strides = array<i32>} : memref<64x32xf32, #tpu.memory_space<vmem>>, vector<8x32xf32>,
    %c8 = arith.constant 8 : index
    %c0_58 = arith.constant 0 : index
    %72 = vector.load %arg12[%c8, %c0_58] : memref<64x32xf32, #tpu.memory_space<vmem>>, vector<8x32xf32>
    %c8_59 = arith.constant 8 : index
    %c0_60 = arith.constant 0 : index
    %73 = vector.load %arg13[%c8_59, %c0_60] : memref<64x32xf32, #tpu.memory_space<vmem>>, vector<8x32xf32>
    %c8_61 = arith.constant 8 : index
    %c0_62 = arith.constant 0 : index
    %74 = vector.load %arg14[%c8_61, %c0_62] : memref<64x32xf32, #tpu.memory_space<vmem>>, vector<8x32xf32>
    %75 = arith.truncf %70 : vector<8x32xf32> to vector<8x32xbf16>
    %cst_63 = arith.constant dense<0.000000e+00> : vector<8x32xf32>
    %76 = tpu.matmul %75, %26, %cst_63 {dimension_numbers = #tpu.dot_dimension_numbers<[1], [0], [0], [1], [0, 0, 1, 1], [], []>} : vector<8x32xbf16>, vector<32x32xbf16>, vector<8x32xf32> -> vector<8x32xf32>
    %77 = vector.broadcast %32 : vector<1x32xf32> to vector<8x32xf32>
    %78 = arith.addf %76, %77 : vector<8x32xf32>
    %cst_64 = arith.constant dense<0.000000e+00> : vector<8x32xf32>
    %79 = tpu.matmul %75, %28, %cst_64 {dimension_numbers = #tpu.dot_dimension_numbers<[1], [0], [0], [1], [0, 0, 1, 1], [], []>} : vector<8x32xbf16>, vector<32x32xbf16>, vector<8x32xf32> -> vector<8x32xf32>
    %80 = vector.broadcast %34 : vector<1x32xf32> to vector<8x32xf32>
    %81 = arith.addf %79, %80 : vector<8x32xf32>
    %cst_65 = arith.constant dense<0.000000e+00> : vector<8x32xf32>
    %82 = tpu.matmul %75, %30, %cst_65 {dimension_numbers = #tpu.dot_dimension_numbers<[1], [0], [0], [1], [0, 0, 1, 1], [], []>} : vector<8x32xbf16>, vector<32x32xbf16>, vector<8x32xf32> -> vector<8x32xf32>
    %83 = vector.broadcast %36 : vector<1x32xf32> to vector<8x32xf32>
    %84 = arith.addf %82, %83 : vector<8x32xf32>
    %85 = arith.addf %72, %78 : vector<8x32xf32>
    %86 = arith.negf %85 : vector<8x32xf32>
    %87 = math.exp %86 : vector<8x32xf32>
    %cst_66 = arith.constant 1.000000e+00 : f32
    %88 = vector.broadcast %cst_66 : f32 to vector<8x32xf32>
    %89 = arith.addf %88, %87 : vector<8x32xf32>
    %90 = arith.divf %88, %89 : vector<8x32xf32>
    %91 = arith.addf %73, %81 : vector<8x32xf32>
    %92 = arith.negf %91 : vector<8x32xf32>
    %93 = math.exp %92 : vector<8x32xf32>
    %cst_67 = arith.constant 1.000000e+00 : f32
    %94 = vector.broadcast %cst_67 : f32 to vector<8x32xf32>
    %95 = arith.addf %94, %93 : vector<8x32xf32>
    %96 = arith.divf %94, %95 : vector<8x32xf32>
    %97 = arith.mulf %90, %84 : vector<8x32xf32>
    %98 = arith.addf %74, %97 : vector<8x32xf32>
    %99 = math.tanh %98 : vector<8x32xf32>
    %cst_68 = arith.constant 1.000000e+00 : f32
    %100 = vector.broadcast %cst_68 : f32 to vector<8x32xf32>
    %101 = arith.subf %100, %96 : vector<8x32xf32>
    %102 = arith.mulf %101, %99 : vector<8x32xf32>
    %103 = arith.mulf %96, %70 : vector<8x32xf32>
    %104 = arith.addf %102, %103 : vector<8x32xf32>
    %c8_69 = arith.constant 8 : index
    %c0_70 = arith.constant 0 : index
    %105 = vector.load %arg15[%c8_69, %c0_70] : memref<64x32xf32, #tpu.memory_space<vmem>>, vector<8x32xf32>
    tpu.vector_store %arg15[%c8_69, %c0_70], %104 {strides = array<i32>} : memref<64x32xf32, #tpu.memory_space<vmem>>, vector<8x32xf32>,
    %c16 = arith.constant 16 : index
    %c0_71 = arith.constant 0 : index
    %106 = vector.load %arg12[%c16, %c0_71] : memref<64x32xf32, #tpu.memory_space<vmem>>, vector<8x32xf32>
    %c16_72 = arith.constant 16 : index
    %c0_73 = arith.constant 0 : index
    %107 = vector.load %arg13[%c16_72, %c0_73] : memref<64x32xf32, #tpu.memory_space<vmem>>, vector<8x32xf32>
    %c16_74 = arith.constant 16 : index
    %c0_75 = arith.constant 0 : index
    %108 = vector.load %arg14[%c16_74, %c0_75] : memref<64x32xf32, #tpu.memory_space<vmem>>, vector<8x32xf32>
    %109 = arith.truncf %104 : vector<8x32xf32> to vector<8x32xbf16>
    %cst_76 = arith.constant dense<0.000000e+00> : vector<8x32xf32>
    %110 = tpu.matmul %109, %26, %cst_76 {dimension_numbers = #tpu.dot_dimension_numbers<[1], [0], [0], [1], [0, 0, 1, 1], [], []>} : vector<8x32xbf16>, vector<32x32xbf16>, vector<8x32xf32> -> vector<8x32xf32>
    %111 = vector.broadcast %32 : vector<1x32xf32> to vector<8x32xf32>
    %112 = arith.addf %110, %111 : vector<8x32xf32>
    %cst_77 = arith.constant dense<0.000000e+00> : vector<8x32xf32>
    %113 = tpu.matmul %109, %28, %cst_77 {dimension_numbers = #tpu.dot_dimension_numbers<[1], [0], [0], [1], [0, 0, 1, 1], [], []>} : vector<8x32xbf16>, vector<32x32xbf16>, vector<8x32xf32> -> vector<8x32xf32>
    %114 = vector.broadcast %34 : vector<1x32xf32> to vector<8x32xf32>
    %115 = arith.addf %113, %114 : vector<8x32xf32>
    %cst_78 = arith.constant dense<0.000000e+00> : vector<8x32xf32>
    %116 = tpu.matmul %109, %30, %cst_78 {dimension_numbers = #tpu.dot_dimension_numbers<[1], [0], [0], [1], [0, 0, 1, 1], [], []>} : vector<8x32xbf16>, vector<32x32xbf16>, vector<8x32xf32> -> vector<8x32xf32>
    %117 = vector.broadcast %36 : vector<1x32xf32> to vector<8x32xf32>
    %118 = arith.addf %116, %117 : vector<8x32xf32>
    %119 = arith.addf %106, %112 : vector<8x32xf32>
    %120 = arith.negf %119 : vector<8x32xf32>
    %121 = math.exp %120 : vector<8x32xf32>
    %cst_79 = arith.constant 1.000000e+00 : f32
    %122 = vector.broadcast %cst_79 : f32 to vector<8x32xf32>
    %123 = arith.addf %122, %121 : vector<8x32xf32>
    %124 = arith.divf %122, %123 : vector<8x32xf32>
    %125 = arith.addf %107, %115 : vector<8x32xf32>
    %126 = arith.negf %125 : vector<8x32xf32>
    %127 = math.exp %126 : vector<8x32xf32>
    %cst_80 = arith.constant 1.000000e+00 : f32
    %128 = vector.broadcast %cst_80 : f32 to vector<8x32xf32>
    %129 = arith.addf %128, %127 : vector<8x32xf32>
    %130 = arith.divf %128, %129 : vector<8x32xf32>
    %131 = arith.mulf %124, %118 : vector<8x32xf32>
    %132 = arith.addf %108, %131 : vector<8x32xf32>
    %133 = math.tanh %132 : vector<8x32xf32>
    %cst_81 = arith.constant 1.000000e+00 : f32
    %134 = vector.broadcast %cst_81 : f32 to vector<8x32xf32>
    %135 = arith.subf %134, %130 : vector<8x32xf32>
    %136 = arith.mulf %135, %133 : vector<8x32xf32>
    %137 = arith.mulf %130, %104 : vector<8x32xf32>
    %138 = arith.addf %136, %137 : vector<8x32xf32>
    %c16_82 = arith.constant 16 : index
    %c0_83 = arith.constant 0 : index
    %139 = vector.load %arg15[%c16_82, %c0_83] : memref<64x32xf32, #tpu.memory_space<vmem>>, vector<8x32xf32>
    tpu.vector_store %arg15[%c16_82, %c0_83], %138 {strides = array<i32>} : memref<64x32xf32, #tpu.memory_space<vmem>>, vector<8x32xf32>,
    %c24 = arith.constant 24 : index
    %c0_84 = arith.constant 0 : index
    %140 = vector.load %arg12[%c24, %c0_84] : memref<64x32xf32, #tpu.memory_space<vmem>>, vector<8x32xf32>
    %c24_85 = arith.constant 24 : index
    %c0_86 = arith.constant 0 : index
    %141 = vector.load %arg13[%c24_85, %c0_86] : memref<64x32xf32, #tpu.memory_space<vmem>>, vector<8x32xf32>
    %c24_87 = arith.constant 24 : index
    %c0_88 = arith.constant 0 : index
    %142 = vector.load %arg14[%c24_87, %c0_88] : memref<64x32xf32, #tpu.memory_space<vmem>>, vector<8x32xf32>
    %143 = arith.truncf %138 : vector<8x32xf32> to vector<8x32xbf16>
    %cst_89 = arith.constant dense<0.000000e+00> : vector<8x32xf32>
    %144 = tpu.matmul %143, %26, %cst_89 {dimension_numbers = #tpu.dot_dimension_numbers<[1], [0], [0], [1], [0, 0, 1, 1], [], []>} : vector<8x32xbf16>, vector<32x32xbf16>, vector<8x32xf32> -> vector<8x32xf32>
    %145 = vector.broadcast %32 : vector<1x32xf32> to vector<8x32xf32>
    %146 = arith.addf %144, %145 : vector<8x32xf32>
    %cst_90 = arith.constant dense<0.000000e+00> : vector<8x32xf32>
    %147 = tpu.matmul %143, %28, %cst_90 {dimension_numbers = #tpu.dot_dimension_numbers<[1], [0], [0], [1], [0, 0, 1, 1], [], []>} : vector<8x32xbf16>, vector<32x32xbf16>, vector<8x32xf32> -> vector<8x32xf32>
    %148 = vector.broadcast %34 : vector<1x32xf32> to vector<8x32xf32>
    %149 = arith.addf %147, %148 : vector<8x32xf32>
    %cst_91 = arith.constant dense<0.000000e+00> : vector<8x32xf32>
    %150 = tpu.matmul %143, %30, %cst_91 {dimension_numbers = #tpu.dot_dimension_numbers<[1], [0], [0], [1], [0, 0, 1, 1], [], []>} : vector<8x32xbf16>, vector<32x32xbf16>, vector<8x32xf32> -> vector<8x32xf32>
    %151 = vector.broadcast %36 : vector<1x32xf32> to vector<8x32xf32>
    %152 = arith.addf %150, %151 : vector<8x32xf32>
    %153 = arith.addf %140, %146 : vector<8x32xf32>
    %154 = arith.negf %153 : vector<8x32xf32>
    %155 = math.exp %154 : vector<8x32xf32>
    %cst_92 = arith.constant 1.000000e+00 : f32
    %156 = vector.broadcast %cst_92 : f32 to vector<8x32xf32>
    %157 = arith.addf %156, %155 : vector<8x32xf32>
    %158 = arith.divf %156, %157 : vector<8x32xf32>
    %159 = arith.addf %141, %149 : vector<8x32xf32>
    %160 = arith.negf %159 : vector<8x32xf32>
    %161 = math.exp %160 : vector<8x32xf32>
    %cst_93 = arith.constant 1.000000e+00 : f32
    %162 = vector.broadcast %cst_93 : f32 to vector<8x32xf32>
    %163 = arith.addf %162, %161 : vector<8x32xf32>
    %164 = arith.divf %162, %163 : vector<8x32xf32>
    %165 = arith.mulf %158, %152 : vector<8x32xf32>
    %166 = arith.addf %142, %165 : vector<8x32xf32>
    %167 = math.tanh %166 : vector<8x32xf32>
    %cst_94 = arith.constant 1.000000e+00 : f32
    %168 = vector.broadcast %cst_94 : f32 to vector<8x32xf32>
    %169 = arith.subf %168, %164 : vector<8x32xf32>
    %170 = arith.mulf %169, %167 : vector<8x32xf32>
    %171 = arith.mulf %164, %138 : vector<8x32xf32>
    %172 = arith.addf %170, %171 : vector<8x32xf32>
    %c24_95 = arith.constant 24 : index
    %c0_96 = arith.constant 0 : index
    %173 = vector.load %arg15[%c24_95, %c0_96] : memref<64x32xf32, #tpu.memory_space<vmem>>, vector<8x32xf32>
    tpu.vector_store %arg15[%c24_95, %c0_96], %172 {strides = array<i32>} : memref<64x32xf32, #tpu.memory_space<vmem>>, vector<8x32xf32>,
    %c32 = arith.constant 32 : index
    %c0_97 = arith.constant 0 : index
    %174 = vector.load %arg12[%c32, %c0_97] : memref<64x32xf32, #tpu.memory_space<vmem>>, vector<8x32xf32>
    %c32_98 = arith.constant 32 : index
    %c0_99 = arith.constant 0 : index
    %175 = vector.load %arg13[%c32_98, %c0_99] : memref<64x32xf32, #tpu.memory_space<vmem>>, vector<8x32xf32>
    %c32_100 = arith.constant 32 : index
    %c0_101 = arith.constant 0 : index
    %176 = vector.load %arg14[%c32_100, %c0_101] : memref<64x32xf32, #tpu.memory_space<vmem>>, vector<8x32xf32>
    %177 = arith.truncf %172 : vector<8x32xf32> to vector<8x32xbf16>
    %cst_102 = arith.constant dense<0.000000e+00> : vector<8x32xf32>
    %178 = tpu.matmul %177, %26, %cst_102 {dimension_numbers = #tpu.dot_dimension_numbers<[1], [0], [0], [1], [0, 0, 1, 1], [], []>} : vector<8x32xbf16>, vector<32x32xbf16>, vector<8x32xf32> -> vector<8x32xf32>
    %179 = vector.broadcast %32 : vector<1x32xf32> to vector<8x32xf32>
    %180 = arith.addf %178, %179 : vector<8x32xf32>
    %cst_103 = arith.constant dense<0.000000e+00> : vector<8x32xf32>
    %181 = tpu.matmul %177, %28, %cst_103 {dimension_numbers = #tpu.dot_dimension_numbers<[1], [0], [0], [1], [0, 0, 1, 1], [], []>} : vector<8x32xbf16>, vector<32x32xbf16>, vector<8x32xf32> -> vector<8x32xf32>
    %182 = vector.broadcast %34 : vector<1x32xf32> to vector<8x32xf32>
    %183 = arith.addf %181, %182 : vector<8x32xf32>
    %cst_104 = arith.constant dense<0.000000e+00> : vector<8x32xf32>
    %184 = tpu.matmul %177, %30, %cst_104 {dimension_numbers = #tpu.dot_dimension_numbers<[1], [0], [0], [1], [0, 0, 1, 1], [], []>} : vector<8x32xbf16>, vector<32x32xbf16>, vector<8x32xf32> -> vector<8x32xf32>
    %185 = vector.broadcast %36 : vector<1x32xf32> to vector<8x32xf32>
    %186 = arith.addf %184, %185 : vector<8x32xf32>
    %187 = arith.addf %174, %180 : vector<8x32xf32>
    %188 = arith.negf %187 : vector<8x32xf32>
    %189 = math.exp %188 : vector<8x32xf32>
    %cst_105 = arith.constant 1.000000e+00 : f32
    %190 = vector.broadcast %cst_105 : f32 to vector<8x32xf32>
    %191 = arith.addf %190, %189 : vector<8x32xf32>
    %192 = arith.divf %190, %191 : vector<8x32xf32>
    %193 = arith.addf %175, %183 : vector<8x32xf32>
    %194 = arith.negf %193 : vector<8x32xf32>
    %195 = math.exp %194 : vector<8x32xf32>
    %cst_106 = arith.constant 1.000000e+00 : f32
    %196 = vector.broadcast %cst_106 : f32 to vector<8x32xf32>
    %197 = arith.addf %196, %195 : vector<8x32xf32>
    %198 = arith.divf %196, %197 : vector<8x32xf32>
    %199 = arith.mulf %192, %186 : vector<8x32xf32>
    %200 = arith.addf %176, %199 : vector<8x32xf32>
    %201 = math.tanh %200 : vector<8x32xf32>
    %cst_107 = arith.constant 1.000000e+00 : f32
    %202 = vector.broadcast %cst_107 : f32 to vector<8x32xf32>
    %203 = arith.subf %202, %198 : vector<8x32xf32>
    %204 = arith.mulf %203, %201 : vector<8x32xf32>
    %205 = arith.mulf %198, %172 : vector<8x32xf32>
    %206 = arith.addf %204, %205 : vector<8x32xf32>
    %c32_108 = arith.constant 32 : index
    %c0_109 = arith.constant 0 : index
    %207 = vector.load %arg15[%c32_108, %c0_109] : memref<64x32xf32, #tpu.memory_space<vmem>>, vector<8x32xf32>
    tpu.vector_store %arg15[%c32_108, %c0_109], %206 {strides = array<i32>} : memref<64x32xf32, #tpu.memory_space<vmem>>, vector<8x32xf32>,
    %c40 = arith.constant 40 : index
    %c0_110 = arith.constant 0 : index
    %208 = vector.load %arg12[%c40, %c0_110] : memref<64x32xf32, #tpu.memory_space<vmem>>, vector<8x32xf32>
    %c40_111 = arith.constant 40 : index
    %c0_112 = arith.constant 0 : index
    %209 = vector.load %arg13[%c40_111, %c0_112] : memref<64x32xf32, #tpu.memory_space<vmem>>, vector<8x32xf32>
    %c40_113 = arith.constant 40 : index
    %c0_114 = arith.constant 0 : index
    %210 = vector.load %arg14[%c40_113, %c0_114] : memref<64x32xf32, #tpu.memory_space<vmem>>, vector<8x32xf32>
    %211 = arith.truncf %206 : vector<8x32xf32> to vector<8x32xbf16>
    %cst_115 = arith.constant dense<0.000000e+00> : vector<8x32xf32>
    %212 = tpu.matmul %211, %26, %cst_115 {dimension_numbers = #tpu.dot_dimension_numbers<[1], [0], [0], [1], [0, 0, 1, 1], [], []>} : vector<8x32xbf16>, vector<32x32xbf16>, vector<8x32xf32> -> vector<8x32xf32>
    %213 = vector.broadcast %32 : vector<1x32xf32> to vector<8x32xf32>
    %214 = arith.addf %212, %213 : vector<8x32xf32>
    %cst_116 = arith.constant dense<0.000000e+00> : vector<8x32xf32>
    %215 = tpu.matmul %211, %28, %cst_116 {dimension_numbers = #tpu.dot_dimension_numbers<[1], [0], [0], [1], [0, 0, 1, 1], [], []>} : vector<8x32xbf16>, vector<32x32xbf16>, vector<8x32xf32> -> vector<8x32xf32>
    %216 = vector.broadcast %34 : vector<1x32xf32> to vector<8x32xf32>
    %217 = arith.addf %215, %216 : vector<8x32xf32>
    %cst_117 = arith.constant dense<0.000000e+00> : vector<8x32xf32>
    %218 = tpu.matmul %211, %30, %cst_117 {dimension_numbers = #tpu.dot_dimension_numbers<[1], [0], [0], [1], [0, 0, 1, 1], [], []>} : vector<8x32xbf16>, vector<32x32xbf16>, vector<8x32xf32> -> vector<8x32xf32>
    %219 = vector.broadcast %36 : vector<1x32xf32> to vector<8x32xf32>
    %220 = arith.addf %218, %219 : vector<8x32xf32>
    %221 = arith.addf %208, %214 : vector<8x32xf32>
    %222 = arith.negf %221 : vector<8x32xf32>
    %223 = math.exp %222 : vector<8x32xf32>
    %cst_118 = arith.constant 1.000000e+00 : f32
    %224 = vector.broadcast %cst_118 : f32 to vector<8x32xf32>
    %225 = arith.addf %224, %223 : vector<8x32xf32>
    %226 = arith.divf %224, %225 : vector<8x32xf32>
    %227 = arith.addf %209, %217 : vector<8x32xf32>
    %228 = arith.negf %227 : vector<8x32xf32>
    %229 = math.exp %228 : vector<8x32xf32>
    %cst_119 = arith.constant 1.000000e+00 : f32
    %230 = vector.broadcast %cst_119 : f32 to vector<8x32xf32>
    %231 = arith.addf %230, %229 : vector<8x32xf32>
    %232 = arith.divf %230, %231 : vector<8x32xf32>
    %233 = arith.mulf %226, %220 : vector<8x32xf32>
    %234 = arith.addf %210, %233 : vector<8x32xf32>
    %235 = math.tanh %234 : vector<8x32xf32>
    %cst_120 = arith.constant 1.000000e+00 : f32
    %236 = vector.broadcast %cst_120 : f32 to vector<8x32xf32>
    %237 = arith.subf %236, %232 : vector<8x32xf32>
    %238 = arith.mulf %237, %235 : vector<8x32xf32>
    %239 = arith.mulf %232, %206 : vector<8x32xf32>
    %240 = arith.addf %238, %239 : vector<8x32xf32>
    %c40_121 = arith.constant 40 : index
    %c0_122 = arith.constant 0 : index
    %241 = vector.load %arg15[%c40_121, %c0_122] : memref<64x32xf32, #tpu.memory_space<vmem>>, vector<8x32xf32>
    tpu.vector_store %arg15[%c40_121, %c0_122], %240 {strides = array<i32>} : memref<64x32xf32, #tpu.memory_space<vmem>>, vector<8x32xf32>,
    %c48 = arith.constant 48 : index
    %c0_123 = arith.constant 0 : index
    %242 = vector.load %arg12[%c48, %c0_123] : memref<64x32xf32, #tpu.memory_space<vmem>>, vector<8x32xf32>
    %c48_124 = arith.constant 48 : index
    %c0_125 = arith.constant 0 : index
    %243 = vector.load %arg13[%c48_124, %c0_125] : memref<64x32xf32, #tpu.memory_space<vmem>>, vector<8x32xf32>
    %c48_126 = arith.constant 48 : index
    %c0_127 = arith.constant 0 : index
    %244 = vector.load %arg14[%c48_126, %c0_127] : memref<64x32xf32, #tpu.memory_space<vmem>>, vector<8x32xf32>
    %245 = arith.truncf %240 : vector<8x32xf32> to vector<8x32xbf16>
    %cst_128 = arith.constant dense<0.000000e+00> : vector<8x32xf32>
    %246 = tpu.matmul %245, %26, %cst_128 {dimension_numbers = #tpu.dot_dimension_numbers<[1], [0], [0], [1], [0, 0, 1, 1], [], []>} : vector<8x32xbf16>, vector<32x32xbf16>, vector<8x32xf32> -> vector<8x32xf32>
    %247 = vector.broadcast %32 : vector<1x32xf32> to vector<8x32xf32>
    %248 = arith.addf %246, %247 : vector<8x32xf32>
    %cst_129 = arith.constant dense<0.000000e+00> : vector<8x32xf32>
    %249 = tpu.matmul %245, %28, %cst_129 {dimension_numbers = #tpu.dot_dimension_numbers<[1], [0], [0], [1], [0, 0, 1, 1], [], []>} : vector<8x32xbf16>, vector<32x32xbf16>, vector<8x32xf32> -> vector<8x32xf32>
    %250 = vector.broadcast %34 : vector<1x32xf32> to vector<8x32xf32>
    %251 = arith.addf %249, %250 : vector<8x32xf32>
    %cst_130 = arith.constant dense<0.000000e+00> : vector<8x32xf32>
    %252 = tpu.matmul %245, %30, %cst_130 {dimension_numbers = #tpu.dot_dimension_numbers<[1], [0], [0], [1], [0, 0, 1, 1], [], []>} : vector<8x32xbf16>, vector<32x32xbf16>, vector<8x32xf32> -> vector<8x32xf32>
    %253 = vector.broadcast %36 : vector<1x32xf32> to vector<8x32xf32>
    %254 = arith.addf %252, %253 : vector<8x32xf32>
    %255 = arith.addf %242, %248 : vector<8x32xf32>
    %256 = arith.negf %255 : vector<8x32xf32>
    %257 = math.exp %256 : vector<8x32xf32>
    %cst_131 = arith.constant 1.000000e+00 : f32
    %258 = vector.broadcast %cst_131 : f32 to vector<8x32xf32>
    %259 = arith.addf %258, %257 : vector<8x32xf32>
    %260 = arith.divf %258, %259 : vector<8x32xf32>
    %261 = arith.addf %243, %251 : vector<8x32xf32>
    %262 = arith.negf %261 : vector<8x32xf32>
    %263 = math.exp %262 : vector<8x32xf32>
    %cst_132 = arith.constant 1.000000e+00 : f32
    %264 = vector.broadcast %cst_132 : f32 to vector<8x32xf32>
    %265 = arith.addf %264, %263 : vector<8x32xf32>
    %266 = arith.divf %264, %265 : vector<8x32xf32>
    %267 = arith.mulf %260, %254 : vector<8x32xf32>
    %268 = arith.addf %244, %267 : vector<8x32xf32>
    %269 = math.tanh %268 : vector<8x32xf32>
    %cst_133 = arith.constant 1.000000e+00 : f32
    %270 = vector.broadcast %cst_133 : f32 to vector<8x32xf32>
    %271 = arith.subf %270, %266 : vector<8x32xf32>
    %272 = arith.mulf %271, %269 : vector<8x32xf32>
    %273 = arith.mulf %266, %240 : vector<8x32xf32>
    %274 = arith.addf %272, %273 : vector<8x32xf32>
    %c48_134 = arith.constant 48 : index
    %c0_135 = arith.constant 0 : index
    %275 = vector.load %arg15[%c48_134, %c0_135] : memref<64x32xf32, #tpu.memory_space<vmem>>, vector<8x32xf32>
    tpu.vector_store %arg15[%c48_134, %c0_135], %274 {strides = array<i32>} : memref<64x32xf32, #tpu.memory_space<vmem>>, vector<8x32xf32>,
    %c56 = arith.constant 56 : index
    %c0_136 = arith.constant 0 : index
    %276 = vector.load %arg12[%c56, %c0_136] : memref<64x32xf32, #tpu.memory_space<vmem>>, vector<8x32xf32>
    %c56_137 = arith.constant 56 : index
    %c0_138 = arith.constant 0 : index
    %277 = vector.load %arg13[%c56_137, %c0_138] : memref<64x32xf32, #tpu.memory_space<vmem>>, vector<8x32xf32>
    %c56_139 = arith.constant 56 : index
    %c0_140 = arith.constant 0 : index
    %278 = vector.load %arg14[%c56_139, %c0_140] : memref<64x32xf32, #tpu.memory_space<vmem>>, vector<8x32xf32>
    %279 = arith.truncf %274 : vector<8x32xf32> to vector<8x32xbf16>
    %cst_141 = arith.constant dense<0.000000e+00> : vector<8x32xf32>
    %280 = tpu.matmul %279, %26, %cst_141 {dimension_numbers = #tpu.dot_dimension_numbers<[1], [0], [0], [1], [0, 0, 1, 1], [], []>} : vector<8x32xbf16>, vector<32x32xbf16>, vector<8x32xf32> -> vector<8x32xf32>
    %281 = vector.broadcast %32 : vector<1x32xf32> to vector<8x32xf32>
    %282 = arith.addf %280, %281 : vector<8x32xf32>
    %cst_142 = arith.constant dense<0.000000e+00> : vector<8x32xf32>
    %283 = tpu.matmul %279, %28, %cst_142 {dimension_numbers = #tpu.dot_dimension_numbers<[1], [0], [0], [1], [0, 0, 1, 1], [], []>} : vector<8x32xbf16>, vector<32x32xbf16>, vector<8x32xf32> -> vector<8x32xf32>
    %284 = vector.broadcast %34 : vector<1x32xf32> to vector<8x32xf32>
    %285 = arith.addf %283, %284 : vector<8x32xf32>
    %cst_143 = arith.constant dense<0.000000e+00> : vector<8x32xf32>
    %286 = tpu.matmul %279, %30, %cst_143 {dimension_numbers = #tpu.dot_dimension_numbers<[1], [0], [0], [1], [0, 0, 1, 1], [], []>} : vector<8x32xbf16>, vector<32x32xbf16>, vector<8x32xf32> -> vector<8x32xf32>
    %287 = vector.broadcast %36 : vector<1x32xf32> to vector<8x32xf32>
    %288 = arith.addf %286, %287 : vector<8x32xf32>
    %289 = arith.addf %276, %282 : vector<8x32xf32>
    %290 = arith.negf %289 : vector<8x32xf32>
    %291 = math.exp %290 : vector<8x32xf32>
    %cst_144 = arith.constant 1.000000e+00 : f32
    %292 = vector.broadcast %cst_144 : f32 to vector<8x32xf32>
    %293 = arith.addf %292, %291 : vector<8x32xf32>
    %294 = arith.divf %292, %293 : vector<8x32xf32>
    %295 = arith.addf %277, %285 : vector<8x32xf32>
    %296 = arith.negf %295 : vector<8x32xf32>
    %297 = math.exp %296 : vector<8x32xf32>
    %cst_145 = arith.constant 1.000000e+00 : f32
    %298 = vector.broadcast %cst_145 : f32 to vector<8x32xf32>
    %299 = arith.addf %298, %297 : vector<8x32xf32>
    %300 = arith.divf %298, %299 : vector<8x32xf32>
    %301 = arith.mulf %294, %288 : vector<8x32xf32>
    %302 = arith.addf %278, %301 : vector<8x32xf32>
    %303 = math.tanh %302 : vector<8x32xf32>
    %cst_146 = arith.constant 1.000000e+00 : f32
    %304 = vector.broadcast %cst_146 : f32 to vector<8x32xf32>
    %305 = arith.subf %304, %300 : vector<8x32xf32>
    %306 = arith.mulf %305, %303 : vector<8x32xf32>
    %307 = arith.mulf %300, %274 : vector<8x32xf32>
    %308 = arith.addf %306, %307 : vector<8x32xf32>
    %c56_147 = arith.constant 56 : index
    %c0_148 = arith.constant 0 : index
    %309 = vector.load %arg15[%c56_147, %c0_148] : memref<64x32xf32, #tpu.memory_space<vmem>>, vector<8x32xf32>
    tpu.vector_store %arg15[%c56_147, %c0_148], %308 {strides = array<i32>} : memref<64x32xf32, #tpu.memory_space<vmem>>, vector<8x32xf32>,
    %c0_149 = arith.constant 0 : index
    %c0_150 = arith.constant 0 : index
    %310 = vector.load %arg15[%c0_149, %c0_150] : memref<64x32xf32, #tpu.memory_space<vmem>>, vector<64x32xf32>
    %311 = arith.truncf %310 : vector<64x32xf32> to vector<64x32xbf16>
    %c0_151 = arith.constant 0 : index
    %c0_152 = arith.constant 0 : index
    %c0_153 = arith.constant 0 : index
    %312 = vector.load %arg5[%c0_151, %c0_152, %c0_153] : memref<3x32x32xbf16, #tpu.memory_space<vmem>>, vector<1x32x32xbf16>
    %313 = vector.shape_cast %312 : vector<1x32x32xbf16> to vector<32x32xbf16>
    %cst_154 = arith.constant dense<0.000000e+00> : vector<64x32xf32>
    %314 = tpu.matmul %311, %313, %cst_154 {dimension_numbers = #tpu.dot_dimension_numbers<[1], [0], [0], [1], [0, 0, 1, 1], [], []>} : vector<64x32xbf16>, vector<32x32xbf16>, vector<64x32xf32> -> vector<64x32xf32>
    %c0_155 = arith.constant 0 : index
    %c0_156 = arith.constant 0 : index
    %c0_157 = arith.constant 0 : index
    %315 = vector.load %arg7[%c0_155, %c0_156, %c0_157] : memref<3x1x32xf32, #tpu.memory_space<vmem>>, vector<1x1x32xf32>
    %316 = vector.shape_cast %315 : vector<1x1x32xf32> to vector<1x32xf32>
    %317 = vector.broadcast %316 : vector<1x32xf32> to vector<64x32xf32>
    %318 = arith.addf %314, %317 : vector<64x32xf32>
    %c0_158 = arith.constant 0 : index
    %c0_159 = arith.constant 0 : index
    %319 = vector.load %arg12[%c0_158, %c0_159] : memref<64x32xf32, #tpu.memory_space<vmem>>, vector<64x32xf32>
    tpu.vector_store %arg12[%c0_158, %c0_159], %318 {strides = array<i32>} : memref<64x32xf32, #tpu.memory_space<vmem>>, vector<64x32xf32>,
    %c1_160 = arith.constant 1 : index
    %c0_161 = arith.constant 0 : index
    %c0_162 = arith.constant 0 : index
    %320 = vector.load %arg5[%c1_160, %c0_161, %c0_162] : memref<3x32x32xbf16, #tpu.memory_space<vmem>>, vector<1x32x32xbf16>
    %321 = vector.shape_cast %320 : vector<1x32x32xbf16> to vector<32x32xbf16>
    %cst_163 = arith.constant dense<0.000000e+00> : vector<64x32xf32>
    %322 = tpu.matmul %311, %321, %cst_163 {dimension_numbers = #tpu.dot_dimension_numbers<[1], [0], [0], [1], [0, 0, 1, 1], [], []>} : vector<64x32xbf16>, vector<32x32xbf16>, vector<64x32xf32> -> vector<64x32xf32>
    %c1_164 = arith.constant 1 : index
    %c0_165 = arith.constant 0 : index
    %c0_166 = arith.constant 0 : index
    %323 = vector.load %arg7[%c1_164, %c0_165, %c0_166] : memref<3x1x32xf32, #tpu.memory_space<vmem>>, vector<1x1x32xf32>
    %324 = vector.shape_cast %323 : vector<1x1x32xf32> to vector<1x32xf32>
    %325 = vector.broadcast %324 : vector<1x32xf32> to vector<64x32xf32>
    %326 = arith.addf %322, %325 : vector<64x32xf32>
    %c0_167 = arith.constant 0 : index
    %c0_168 = arith.constant 0 : index
    %327 = vector.load %arg13[%c0_167, %c0_168] : memref<64x32xf32, #tpu.memory_space<vmem>>, vector<64x32xf32>
    tpu.vector_store %arg13[%c0_167, %c0_168], %326 {strides = array<i32>} : memref<64x32xf32, #tpu.memory_space<vmem>>, vector<64x32xf32>,
    %c2_169 = arith.constant 2 : index
    %c0_170 = arith.constant 0 : index
    %c0_171 = arith.constant 0 : index
    %328 = vector.load %arg5[%c2_169, %c0_170, %c0_171] : memref<3x32x32xbf16, #tpu.memory_space<vmem>>, vector<1x32x32xbf16>
    %329 = vector.shape_cast %328 : vector<1x32x32xbf16> to vector<32x32xbf16>
    %cst_172 = arith.constant dense<0.000000e+00> : vector<64x32xf32>
    %330 = tpu.matmul %311, %329, %cst_172 {dimension_numbers = #tpu.dot_dimension_numbers<[1], [0], [0], [1], [0, 0, 1, 1], [], []>} : vector<64x32xbf16>, vector<32x32xbf16>, vector<64x32xf32> -> vector<64x32xf32>
    %c2_173 = arith.constant 2 : index
    %c0_174 = arith.constant 0 : index
    %c0_175 = arith.constant 0 : index
    %331 = vector.load %arg7[%c2_173, %c0_174, %c0_175] : memref<3x1x32xf32, #tpu.memory_space<vmem>>, vector<1x1x32xf32>
    %332 = vector.shape_cast %331 : vector<1x1x32xf32> to vector<1x32xf32>
    %333 = vector.broadcast %332 : vector<1x32xf32> to vector<64x32xf32>
    %334 = arith.addf %330, %333 : vector<64x32xf32>
    %c0_176 = arith.constant 0 : index
    %c0_177 = arith.constant 0 : index
    %335 = vector.load %arg14[%c0_176, %c0_177] : memref<64x32xf32, #tpu.memory_space<vmem>>, vector<64x32xf32>
    tpu.vector_store %arg14[%c0_176, %c0_177], %334 {strides = array<i32>} : memref<64x32xf32, #tpu.memory_space<vmem>>, vector<64x32xf32>,
    %c0_178 = arith.constant 0 : index
    %c0_179 = arith.constant 0 : index
    %c0_180 = arith.constant 0 : index
    %336 = vector.load %arg6[%c0_178, %c0_179, %c0_180] : memref<3x32x32xbf16, #tpu.memory_space<vmem>>, vector<1x32x32xbf16>
    %337 = vector.shape_cast %336 : vector<1x32x32xbf16> to vector<32x32xbf16>
    %c1_181 = arith.constant 1 : index
    %c0_182 = arith.constant 0 : index
    %c0_183 = arith.constant 0 : index
    %338 = vector.load %arg6[%c1_181, %c0_182, %c0_183] : memref<3x32x32xbf16, #tpu.memory_space<vmem>>, vector<1x32x32xbf16>
    %339 = vector.shape_cast %338 : vector<1x32x32xbf16> to vector<32x32xbf16>
    %c2_184 = arith.constant 2 : index
    %c0_185 = arith.constant 0 : index
    %c0_186 = arith.constant 0 : index
    %340 = vector.load %arg6[%c2_184, %c0_185, %c0_186] : memref<3x32x32xbf16, #tpu.memory_space<vmem>>, vector<1x32x32xbf16>
    %341 = vector.shape_cast %340 : vector<1x32x32xbf16> to vector<32x32xbf16>
    %c0_187 = arith.constant 0 : index
    %c0_188 = arith.constant 0 : index
    %c0_189 = arith.constant 0 : index
    %342 = vector.load %arg8[%c0_187, %c0_188, %c0_189] : memref<3x1x32xf32, #tpu.memory_space<vmem>>, vector<1x1x32xf32>
    %343 = vector.shape_cast %342 : vector<1x1x32xf32> to vector<1x32xf32>
    %c1_190 = arith.constant 1 : index
    %c0_191 = arith.constant 0 : index
    %c0_192 = arith.constant 0 : index
    %344 = vector.load %arg8[%c1_190, %c0_191, %c0_192] : memref<3x1x32xf32, #tpu.memory_space<vmem>>, vector<1x1x32xf32>
    %345 = vector.shape_cast %344 : vector<1x1x32xf32> to vector<1x32xf32>
    %c2_193 = arith.constant 2 : index
    %c0_194 = arith.constant 0 : index
    %c0_195 = arith.constant 0 : index
    %346 = vector.load %arg8[%c2_193, %c0_194, %c0_195] : memref<3x1x32xf32, #tpu.memory_space<vmem>>, vector<1x1x32xf32>
    %347 = vector.shape_cast %346 : vector<1x1x32xf32> to vector<1x32xf32>
    %cst_196 = arith.constant 0.000000e+00 : f32
    %348 = vector.broadcast %cst_196 : f32 to vector<8x32xf32>
    %cst_197 = arith.constant 0.000000e+00 : f32
    %349 = vector.broadcast %cst_197 : f32 to vector<8x10xf32>
    %c0_198 = arith.constant 0 : index
    %c0_199 = arith.constant 0 : index
    %350 = vector.load %arg12[%c0_198, %c0_199] : memref<64x32xf32, #tpu.memory_space<vmem>>, vector<8x32xf32>
    %c0_200 = arith.constant 0 : index
    %c0_201 = arith.constant 0 : index
    %351 = vector.load %arg13[%c0_200, %c0_201] : memref<64x32xf32, #tpu.memory_space<vmem>>, vector<8x32xf32>
    %c0_202 = arith.constant 0 : index
    %c0_203 = arith.constant 0 : index
    %352 = vector.load %arg14[%c0_202, %c0_203] : memref<64x32xf32, #tpu.memory_space<vmem>>, vector<8x32xf32>
    %353 = arith.truncf %348 : vector<8x32xf32> to vector<8x32xbf16>
    %cst_204 = arith.constant dense<0.000000e+00> : vector<8x32xf32>
    %354 = tpu.matmul %353, %337, %cst_204 {dimension_numbers = #tpu.dot_dimension_numbers<[1], [0], [0], [1], [0, 0, 1, 1], [], []>} : vector<8x32xbf16>, vector<32x32xbf16>, vector<8x32xf32> -> vector<8x32xf32>
    %355 = vector.broadcast %343 : vector<1x32xf32> to vector<8x32xf32>
    %356 = arith.addf %354, %355 : vector<8x32xf32>
    %cst_205 = arith.constant dense<0.000000e+00> : vector<8x32xf32>
    %357 = tpu.matmul %353, %339, %cst_205 {dimension_numbers = #tpu.dot_dimension_numbers<[1], [0], [0], [1], [0, 0, 1, 1], [], []>} : vector<8x32xbf16>, vector<32x32xbf16>, vector<8x32xf32> -> vector<8x32xf32>
    %358 = vector.broadcast %345 : vector<1x32xf32> to vector<8x32xf32>
    %359 = arith.addf %357, %358 : vector<8x32xf32>
    %cst_206 = arith.constant dense<0.000000e+00> : vector<8x32xf32>
    %360 = tpu.matmul %353, %341, %cst_206 {dimension_numbers = #tpu.dot_dimension_numbers<[1], [0], [0], [1], [0, 0, 1, 1], [], []>} : vector<8x32xbf16>, vector<32x32xbf16>, vector<8x32xf32> -> vector<8x32xf32>
    %361 = vector.broadcast %347 : vector<1x32xf32> to vector<8x32xf32>
    %362 = arith.addf %360, %361 : vector<8x32xf32>
    %363 = arith.addf %350, %356 : vector<8x32xf32>
    %364 = arith.negf %363 : vector<8x32xf32>
    %365 = math.exp %364 : vector<8x32xf32>
    %cst_207 = arith.constant 1.000000e+00 : f32
    %366 = vector.broadcast %cst_207 : f32 to vector<8x32xf32>
    %367 = arith.addf %366, %365 : vector<8x32xf32>
    %368 = arith.divf %366, %367 : vector<8x32xf32>
    %369 = arith.addf %351, %359 : vector<8x32xf32>
    %370 = arith.negf %369 : vector<8x32xf32>
    %371 = math.exp %370 : vector<8x32xf32>
    %cst_208 = arith.constant 1.000000e+00 : f32
    %372 = vector.broadcast %cst_208 : f32 to vector<8x32xf32>
    %373 = arith.addf %372, %371 : vector<8x32xf32>
    %374 = arith.divf %372, %373 : vector<8x32xf32>
    %375 = arith.mulf %368, %362 : vector<8x32xf32>
    %376 = arith.addf %352, %375 : vector<8x32xf32>
    %377 = math.tanh %376 : vector<8x32xf32>
    %cst_209 = arith.constant 1.000000e+00 : f32
    %378 = vector.broadcast %cst_209 : f32 to vector<8x32xf32>
    %379 = arith.subf %378, %374 : vector<8x32xf32>
    %380 = arith.mulf %379, %377 : vector<8x32xf32>
    %381 = arith.mulf %374, %348 : vector<8x32xf32>
    %382 = arith.addf %380, %381 : vector<8x32xf32>
    %383 = arith.truncf %382 : vector<8x32xf32> to vector<8x32xbf16>
    %c0_210 = arith.constant 0 : index
    %c0_211 = arith.constant 0 : index
    %c0_212 = arith.constant 0 : index
    %384 = vector.load %arg9[%c0_210, %c0_211, %c0_212] : memref<8x32x10xbf16, #tpu.memory_space<vmem>>, vector<1x32x10xbf16>
    %385 = vector.shape_cast %384 : vector<1x32x10xbf16> to vector<32x10xbf16>
    %cst_213 = arith.constant dense<0.000000e+00> : vector<8x10xf32>
    %386 = tpu.matmul %383, %385, %cst_213 {dimension_numbers = #tpu.dot_dimension_numbers<[1], [0], [0], [1], [0, 0, 1, 1], [], []>} : vector<8x32xbf16>, vector<32x10xbf16>, vector<8x10xf32> -> vector<8x10xf32>
    %387 = arith.addf %349, %386 : vector<8x10xf32>
    %c8_214 = arith.constant 8 : index
    %c0_215 = arith.constant 0 : index
    %388 = vector.load %arg12[%c8_214, %c0_215] : memref<64x32xf32, #tpu.memory_space<vmem>>, vector<8x32xf32>
    %c8_216 = arith.constant 8 : index
    %c0_217 = arith.constant 0 : index
    %389 = vector.load %arg13[%c8_216, %c0_217] : memref<64x32xf32, #tpu.memory_space<vmem>>, vector<8x32xf32>
    %c8_218 = arith.constant 8 : index
    %c0_219 = arith.constant 0 : index
    %390 = vector.load %arg14[%c8_218, %c0_219] : memref<64x32xf32, #tpu.memory_space<vmem>>, vector<8x32xf32>
    %391 = arith.truncf %382 : vector<8x32xf32> to vector<8x32xbf16>
    %cst_220 = arith.constant dense<0.000000e+00> : vector<8x32xf32>
    %392 = tpu.matmul %391, %337, %cst_220 {dimension_numbers = #tpu.dot_dimension_numbers<[1], [0], [0], [1], [0, 0, 1, 1], [], []>} : vector<8x32xbf16>, vector<32x32xbf16>, vector<8x32xf32> -> vector<8x32xf32>
    %393 = vector.broadcast %343 : vector<1x32xf32> to vector<8x32xf32>
    %394 = arith.addf %392, %393 : vector<8x32xf32>
    %cst_221 = arith.constant dense<0.000000e+00> : vector<8x32xf32>
    %395 = tpu.matmul %391, %339, %cst_221 {dimension_numbers = #tpu.dot_dimension_numbers<[1], [0], [0], [1], [0, 0, 1, 1], [], []>} : vector<8x32xbf16>, vector<32x32xbf16>, vector<8x32xf32> -> vector<8x32xf32>
    %396 = vector.broadcast %345 : vector<1x32xf32> to vector<8x32xf32>
    %397 = arith.addf %395, %396 : vector<8x32xf32>
    %cst_222 = arith.constant dense<0.000000e+00> : vector<8x32xf32>
    %398 = tpu.matmul %391, %341, %cst_222 {dimension_numbers = #tpu.dot_dimension_numbers<[1], [0], [0], [1], [0, 0, 1, 1], [], []>} : vector<8x32xbf16>, vector<32x32xbf16>, vector<8x32xf32> -> vector<8x32xf32>
    %399 = vector.broadcast %347 : vector<1x32xf32> to vector<8x32xf32>
    %400 = arith.addf %398, %399 : vector<8x32xf32>
    %401 = arith.addf %388, %394 : vector<8x32xf32>
    %402 = arith.negf %401 : vector<8x32xf32>
    %403 = math.exp %402 : vector<8x32xf32>
    %cst_223 = arith.constant 1.000000e+00 : f32
    %404 = vector.broadcast %cst_223 : f32 to vector<8x32xf32>
    %405 = arith.addf %404, %403 : vector<8x32xf32>
    %406 = arith.divf %404, %405 : vector<8x32xf32>
    %407 = arith.addf %389, %397 : vector<8x32xf32>
    %408 = arith.negf %407 : vector<8x32xf32>
    %409 = math.exp %408 : vector<8x32xf32>
    %cst_224 = arith.constant 1.000000e+00 : f32
    %410 = vector.broadcast %cst_224 : f32 to vector<8x32xf32>
    %411 = arith.addf %410, %409 : vector<8x32xf32>
    %412 = arith.divf %410, %411 : vector<8x32xf32>
    %413 = arith.mulf %406, %400 : vector<8x32xf32>
    %414 = arith.addf %390, %413 : vector<8x32xf32>
    %415 = math.tanh %414 : vector<8x32xf32>
    %cst_225 = arith.constant 1.000000e+00 : f32
    %416 = vector.broadcast %cst_225 : f32 to vector<8x32xf32>
    %417 = arith.subf %416, %412 : vector<8x32xf32>
    %418 = arith.mulf %417, %415 : vector<8x32xf32>
    %419 = arith.mulf %412, %382 : vector<8x32xf32>
    %420 = arith.addf %418, %419 : vector<8x32xf32>
    %421 = arith.truncf %420 : vector<8x32xf32> to vector<8x32xbf16>
    %c1_226 = arith.constant 1 : index
    %c0_227 = arith.constant 0 : index
    %c0_228 = arith.constant 0 : index
    %422 = vector.load %arg9[%c1_226, %c0_227, %c0_228] : memref<8x32x10xbf16, #tpu.memory_space<vmem>>, vector<1x32x10xbf16>
    %423 = vector.shape_cast %422 : vector<1x32x10xbf16> to vector<32x10xbf16>
    %cst_229 = arith.constant dense<0.000000e+00> : vector<8x10xf32>
    %424 = tpu.matmul %421, %423, %cst_229 {dimension_numbers = #tpu.dot_dimension_numbers<[1], [0], [0], [1], [0, 0, 1, 1], [], []>} : vector<8x32xbf16>, vector<32x10xbf16>, vector<8x10xf32> -> vector<8x10xf32>
    %425 = arith.addf %387, %424 : vector<8x10xf32>
    %c16_230 = arith.constant 16 : index
    %c0_231 = arith.constant 0 : index
    %426 = vector.load %arg12[%c16_230, %c0_231] : memref<64x32xf32, #tpu.memory_space<vmem>>, vector<8x32xf32>
    %c16_232 = arith.constant 16 : index
    %c0_233 = arith.constant 0 : index
    %427 = vector.load %arg13[%c16_232, %c0_233] : memref<64x32xf32, #tpu.memory_space<vmem>>, vector<8x32xf32>
    %c16_234 = arith.constant 16 : index
    %c0_235 = arith.constant 0 : index
    %428 = vector.load %arg14[%c16_234, %c0_235] : memref<64x32xf32, #tpu.memory_space<vmem>>, vector<8x32xf32>
    %429 = arith.truncf %420 : vector<8x32xf32> to vector<8x32xbf16>
    %cst_236 = arith.constant dense<0.000000e+00> : vector<8x32xf32>
    %430 = tpu.matmul %429, %337, %cst_236 {dimension_numbers = #tpu.dot_dimension_numbers<[1], [0], [0], [1], [0, 0, 1, 1], [], []>} : vector<8x32xbf16>, vector<32x32xbf16>, vector<8x32xf32> -> vector<8x32xf32>
    %431 = vector.broadcast %343 : vector<1x32xf32> to vector<8x32xf32>
    %432 = arith.addf %430, %431 : vector<8x32xf32>
    %cst_237 = arith.constant dense<0.000000e+00> : vector<8x32xf32>
    %433 = tpu.matmul %429, %339, %cst_237 {dimension_numbers = #tpu.dot_dimension_numbers<[1], [0], [0], [1], [0, 0, 1, 1], [], []>} : vector<8x32xbf16>, vector<32x32xbf16>, vector<8x32xf32> -> vector<8x32xf32>
    %434 = vector.broadcast %345 : vector<1x32xf32> to vector<8x32xf32>
    %435 = arith.addf %433, %434 : vector<8x32xf32>
    %cst_238 = arith.constant dense<0.000000e+00> : vector<8x32xf32>
    %436 = tpu.matmul %429, %341, %cst_238 {dimension_numbers = #tpu.dot_dimension_numbers<[1], [0], [0], [1], [0, 0, 1, 1], [], []>} : vector<8x32xbf16>, vector<32x32xbf16>, vector<8x32xf32> -> vector<8x32xf32>
    %437 = vector.broadcast %347 : vector<1x32xf32> to vector<8x32xf32>
    %438 = arith.addf %436, %437 : vector<8x32xf32>
    %439 = arith.addf %426, %432 : vector<8x32xf32>
    %440 = arith.negf %439 : vector<8x32xf32>
    %441 = math.exp %440 : vector<8x32xf32>
    %cst_239 = arith.constant 1.000000e+00 : f32
    %442 = vector.broadcast %cst_239 : f32 to vector<8x32xf32>
    %443 = arith.addf %442, %441 : vector<8x32xf32>
    %444 = arith.divf %442, %443 : vector<8x32xf32>
    %445 = arith.addf %427, %435 : vector<8x32xf32>
    %446 = arith.negf %445 : vector<8x32xf32>
    %447 = math.exp %446 : vector<8x32xf32>
    %cst_240 = arith.constant 1.000000e+00 : f32
    %448 = vector.broadcast %cst_240 : f32 to vector<8x32xf32>
    %449 = arith.addf %448, %447 : vector<8x32xf32>
    %450 = arith.divf %448, %449 : vector<8x32xf32>
    %451 = arith.mulf %444, %438 : vector<8x32xf32>
    %452 = arith.addf %428, %451 : vector<8x32xf32>
    %453 = math.tanh %452 : vector<8x32xf32>
    %cst_241 = arith.constant 1.000000e+00 : f32
    %454 = vector.broadcast %cst_241 : f32 to vector<8x32xf32>
    %455 = arith.subf %454, %450 : vector<8x32xf32>
    %456 = arith.mulf %455, %453 : vector<8x32xf32>
    %457 = arith.mulf %450, %420 : vector<8x32xf32>
    %458 = arith.addf %456, %457 : vector<8x32xf32>
    %459 = arith.truncf %458 : vector<8x32xf32> to vector<8x32xbf16>
    %c2_242 = arith.constant 2 : index
    %c0_243 = arith.constant 0 : index
    %c0_244 = arith.constant 0 : index
    %460 = vector.load %arg9[%c2_242, %c0_243, %c0_244] : memref<8x32x10xbf16, #tpu.memory_space<vmem>>, vector<1x32x10xbf16>
    %461 = vector.shape_cast %460 : vector<1x32x10xbf16> to vector<32x10xbf16>
    %cst_245 = arith.constant dense<0.000000e+00> : vector<8x10xf32>
    %462 = tpu.matmul %459, %461, %cst_245 {dimension_numbers = #tpu.dot_dimension_numbers<[1], [0], [0], [1], [0, 0, 1, 1], [], []>} : vector<8x32xbf16>, vector<32x10xbf16>, vector<8x10xf32> -> vector<8x10xf32>
    %463 = arith.addf %425, %462 : vector<8x10xf32>
    %c24_246 = arith.constant 24 : index
    %c0_247 = arith.constant 0 : index
    %464 = vector.load %arg12[%c24_246, %c0_247] : memref<64x32xf32, #tpu.memory_space<vmem>>, vector<8x32xf32>
    %c24_248 = arith.constant 24 : index
    %c0_249 = arith.constant 0 : index
    %465 = vector.load %arg13[%c24_248, %c0_249] : memref<64x32xf32, #tpu.memory_space<vmem>>, vector<8x32xf32>
    %c24_250 = arith.constant 24 : index
    %c0_251 = arith.constant 0 : index
    %466 = vector.load %arg14[%c24_250, %c0_251] : memref<64x32xf32, #tpu.memory_space<vmem>>, vector<8x32xf32>
    %467 = arith.truncf %458 : vector<8x32xf32> to vector<8x32xbf16>
    %cst_252 = arith.constant dense<0.000000e+00> : vector<8x32xf32>
    %468 = tpu.matmul %467, %337, %cst_252 {dimension_numbers = #tpu.dot_dimension_numbers<[1], [0], [0], [1], [0, 0, 1, 1], [], []>} : vector<8x32xbf16>, vector<32x32xbf16>, vector<8x32xf32> -> vector<8x32xf32>
    %469 = vector.broadcast %343 : vector<1x32xf32> to vector<8x32xf32>
    %470 = arith.addf %468, %469 : vector<8x32xf32>
    %cst_253 = arith.constant dense<0.000000e+00> : vector<8x32xf32>
    %471 = tpu.matmul %467, %339, %cst_253 {dimension_numbers = #tpu.dot_dimension_numbers<[1], [0], [0], [1], [0, 0, 1, 1], [], []>} : vector<8x32xbf16>, vector<32x32xbf16>, vector<8x32xf32> -> vector<8x32xf32>
    %472 = vector.broadcast %345 : vector<1x32xf32> to vector<8x32xf32>
    %473 = arith.addf %471, %472 : vector<8x32xf32>
    %cst_254 = arith.constant dense<0.000000e+00> : vector<8x32xf32>
    %474 = tpu.matmul %467, %341, %cst_254 {dimension_numbers = #tpu.dot_dimension_numbers<[1], [0], [0], [1], [0, 0, 1, 1], [], []>} : vector<8x32xbf16>, vector<32x32xbf16>, vector<8x32xf32> -> vector<8x32xf32>
    %475 = vector.broadcast %347 : vector<1x32xf32> to vector<8x32xf32>
    %476 = arith.addf %474, %475 : vector<8x32xf32>
    %477 = arith.addf %464, %470 : vector<8x32xf32>
    %478 = arith.negf %477 : vector<8x32xf32>
    %479 = math.exp %478 : vector<8x32xf32>
    %cst_255 = arith.constant 1.000000e+00 : f32
    %480 = vector.broadcast %cst_255 : f32 to vector<8x32xf32>
    %481 = arith.addf %480, %479 : vector<8x32xf32>
    %482 = arith.divf %480, %481 : vector<8x32xf32>
    %483 = arith.addf %465, %473 : vector<8x32xf32>
    %484 = arith.negf %483 : vector<8x32xf32>
    %485 = math.exp %484 : vector<8x32xf32>
    %cst_256 = arith.constant 1.000000e+00 : f32
    %486 = vector.broadcast %cst_256 : f32 to vector<8x32xf32>
    %487 = arith.addf %486, %485 : vector<8x32xf32>
    %488 = arith.divf %486, %487 : vector<8x32xf32>
    %489 = arith.mulf %482, %476 : vector<8x32xf32>
    %490 = arith.addf %466, %489 : vector<8x32xf32>
    %491 = math.tanh %490 : vector<8x32xf32>
    %cst_257 = arith.constant 1.000000e+00 : f32
    %492 = vector.broadcast %cst_257 : f32 to vector<8x32xf32>
    %493 = arith.subf %492, %488 : vector<8x32xf32>
    %494 = arith.mulf %493, %491 : vector<8x32xf32>
    %495 = arith.mulf %488, %458 : vector<8x32xf32>
    %496 = arith.addf %494, %495 : vector<8x32xf32>
    %497 = arith.truncf %496 : vector<8x32xf32> to vector<8x32xbf16>
    %c3 = arith.constant 3 : index
    %c0_258 = arith.constant 0 : index
    %c0_259 = arith.constant 0 : index
    %498 = vector.load %arg9[%c3, %c0_258, %c0_259] : memref<8x32x10xbf16, #tpu.memory_space<vmem>>, vector<1x32x10xbf16>
    %499 = vector.shape_cast %498 : vector<1x32x10xbf16> to vector<32x10xbf16>
    %cst_260 = arith.constant dense<0.000000e+00> : vector<8x10xf32>
    %500 = tpu.matmul %497, %499, %cst_260 {dimension_numbers = #tpu.dot_dimension_numbers<[1], [0], [0], [1], [0, 0, 1, 1], [], []>} : vector<8x32xbf16>, vector<32x10xbf16>, vector<8x10xf32> -> vector<8x10xf32>
    %501 = arith.addf %463, %500 : vector<8x10xf32>
    %c32_261 = arith.constant 32 : index
    %c0_262 = arith.constant 0 : index
    %502 = vector.load %arg12[%c32_261, %c0_262] : memref<64x32xf32, #tpu.memory_space<vmem>>, vector<8x32xf32>
    %c32_263 = arith.constant 32 : index
    %c0_264 = arith.constant 0 : index
    %503 = vector.load %arg13[%c32_263, %c0_264] : memref<64x32xf32, #tpu.memory_space<vmem>>, vector<8x32xf32>
    %c32_265 = arith.constant 32 : index
    %c0_266 = arith.constant 0 : index
    %504 = vector.load %arg14[%c32_265, %c0_266] : memref<64x32xf32, #tpu.memory_space<vmem>>, vector<8x32xf32>
    %505 = arith.truncf %496 : vector<8x32xf32> to vector<8x32xbf16>
    %cst_267 = arith.constant dense<0.000000e+00> : vector<8x32xf32>
    %506 = tpu.matmul %505, %337, %cst_267 {dimension_numbers = #tpu.dot_dimension_numbers<[1], [0], [0], [1], [0, 0, 1, 1], [], []>} : vector<8x32xbf16>, vector<32x32xbf16>, vector<8x32xf32> -> vector<8x32xf32>
    %507 = vector.broadcast %343 : vector<1x32xf32> to vector<8x32xf32>
    %508 = arith.addf %506, %507 : vector<8x32xf32>
    %cst_268 = arith.constant dense<0.000000e+00> : vector<8x32xf32>
    %509 = tpu.matmul %505, %339, %cst_268 {dimension_numbers = #tpu.dot_dimension_numbers<[1], [0], [0], [1], [0, 0, 1, 1], [], []>} : vector<8x32xbf16>, vector<32x32xbf16>, vector<8x32xf32> -> vector<8x32xf32>
    %510 = vector.broadcast %345 : vector<1x32xf32> to vector<8x32xf32>
    %511 = arith.addf %509, %510 : vector<8x32xf32>
    %cst_269 = arith.constant dense<0.000000e+00> : vector<8x32xf32>
    %512 = tpu.matmul %505, %341, %cst_269 {dimension_numbers = #tpu.dot_dimension_numbers<[1], [0], [0], [1], [0, 0, 1, 1], [], []>} : vector<8x32xbf16>, vector<32x32xbf16>, vector<8x32xf32> -> vector<8x32xf32>
    %513 = vector.broadcast %347 : vector<1x32xf32> to vector<8x32xf32>
    %514 = arith.addf %512, %513 : vector<8x32xf32>
    %515 = arith.addf %502, %508 : vector<8x32xf32>
    %516 = arith.negf %515 : vector<8x32xf32>
    %517 = math.exp %516 : vector<8x32xf32>
    %cst_270 = arith.constant 1.000000e+00 : f32
    %518 = vector.broadcast %cst_270 : f32 to vector<8x32xf32>
    %519 = arith.addf %518, %517 : vector<8x32xf32>
    %520 = arith.divf %518, %519 : vector<8x32xf32>
    %521 = arith.addf %503, %511 : vector<8x32xf32>
    %522 = arith.negf %521 : vector<8x32xf32>
    %523 = math.exp %522 : vector<8x32xf32>
    %cst_271 = arith.constant 1.000000e+00 : f32
    %524 = vector.broadcast %cst_271 : f32 to vector<8x32xf32>
    %525 = arith.addf %524, %523 : vector<8x32xf32>
    %526 = arith.divf %524, %525 : vector<8x32xf32>
    %527 = arith.mulf %520, %514 : vector<8x32xf32>
    %528 = arith.addf %504, %527 : vector<8x32xf32>
    %529 = math.tanh %528 : vector<8x32xf32>
    %cst_272 = arith.constant 1.000000e+00 : f32
    %530 = vector.broadcast %cst_272 : f32 to vector<8x32xf32>
    %531 = arith.subf %530, %526 : vector<8x32xf32>
    %532 = arith.mulf %531, %529 : vector<8x32xf32>
    %533 = arith.mulf %526, %496 : vector<8x32xf32>
    %534 = arith.addf %532, %533 : vector<8x32xf32>
    %535 = arith.truncf %534 : vector<8x32xf32> to vector<8x32xbf16>
    %c4 = arith.constant 4 : index
    %c0_273 = arith.constant 0 : index
    %c0_274 = arith.constant 0 : index
    %536 = vector.load %arg9[%c4, %c0_273, %c0_274] : memref<8x32x10xbf16, #tpu.memory_space<vmem>>, vector<1x32x10xbf16>
    %537 = vector.shape_cast %536 : vector<1x32x10xbf16> to vector<32x10xbf16>
    %cst_275 = arith.constant dense<0.000000e+00> : vector<8x10xf32>
    %538 = tpu.matmul %535, %537, %cst_275 {dimension_numbers = #tpu.dot_dimension_numbers<[1], [0], [0], [1], [0, 0, 1, 1], [], []>} : vector<8x32xbf16>, vector<32x10xbf16>, vector<8x10xf32> -> vector<8x10xf32>
    %539 = arith.addf %501, %538 : vector<8x10xf32>
    %c40_276 = arith.constant 40 : index
    %c0_277 = arith.constant 0 : index
    %540 = vector.load %arg12[%c40_276, %c0_277] : memref<64x32xf32, #tpu.memory_space<vmem>>, vector<8x32xf32>
    %c40_278 = arith.constant 40 : index
    %c0_279 = arith.constant 0 : index
    %541 = vector.load %arg13[%c40_278, %c0_279] : memref<64x32xf32, #tpu.memory_space<vmem>>, vector<8x32xf32>
    %c40_280 = arith.constant 40 : index
    %c0_281 = arith.constant 0 : index
    %542 = vector.load %arg14[%c40_280, %c0_281] : memref<64x32xf32, #tpu.memory_space<vmem>>, vector<8x32xf32>
    %543 = arith.truncf %534 : vector<8x32xf32> to vector<8x32xbf16>
    %cst_282 = arith.constant dense<0.000000e+00> : vector<8x32xf32>
    %544 = tpu.matmul %543, %337, %cst_282 {dimension_numbers = #tpu.dot_dimension_numbers<[1], [0], [0], [1], [0, 0, 1, 1], [], []>} : vector<8x32xbf16>, vector<32x32xbf16>, vector<8x32xf32> -> vector<8x32xf32>
    %545 = vector.broadcast %343 : vector<1x32xf32> to vector<8x32xf32>
    %546 = arith.addf %544, %545 : vector<8x32xf32>
    %cst_283 = arith.constant dense<0.000000e+00> : vector<8x32xf32>
    %547 = tpu.matmul %543, %339, %cst_283 {dimension_numbers = #tpu.dot_dimension_numbers<[1], [0], [0], [1], [0, 0, 1, 1], [], []>} : vector<8x32xbf16>, vector<32x32xbf16>, vector<8x32xf32> -> vector<8x32xf32>
    %548 = vector.broadcast %345 : vector<1x32xf32> to vector<8x32xf32>
    %549 = arith.addf %547, %548 : vector<8x32xf32>
    %cst_284 = arith.constant dense<0.000000e+00> : vector<8x32xf32>
    %550 = tpu.matmul %543, %341, %cst_284 {dimension_numbers = #tpu.dot_dimension_numbers<[1], [0], [0], [1], [0, 0, 1, 1], [], []>} : vector<8x32xbf16>, vector<32x32xbf16>, vector<8x32xf32> -> vector<8x32xf32>
    %551 = vector.broadcast %347 : vector<1x32xf32> to vector<8x32xf32>
    %552 = arith.addf %550, %551 : vector<8x32xf32>
    %553 = arith.addf %540, %546 : vector<8x32xf32>
    %554 = arith.negf %553 : vector<8x32xf32>
    %555 = math.exp %554 : vector<8x32xf32>
    %cst_285 = arith.constant 1.000000e+00 : f32
    %556 = vector.broadcast %cst_285 : f32 to vector<8x32xf32>
    %557 = arith.addf %556, %555 : vector<8x32xf32>
    %558 = arith.divf %556, %557 : vector<8x32xf32>
    %559 = arith.addf %541, %549 : vector<8x32xf32>
    %560 = arith.negf %559 : vector<8x32xf32>
    %561 = math.exp %560 : vector<8x32xf32>
    %cst_286 = arith.constant 1.000000e+00 : f32
    %562 = vector.broadcast %cst_286 : f32 to vector<8x32xf32>
    %563 = arith.addf %562, %561 : vector<8x32xf32>
    %564 = arith.divf %562, %563 : vector<8x32xf32>
    %565 = arith.mulf %558, %552 : vector<8x32xf32>
    %566 = arith.addf %542, %565 : vector<8x32xf32>
    %567 = math.tanh %566 : vector<8x32xf32>
    %cst_287 = arith.constant 1.000000e+00 : f32
    %568 = vector.broadcast %cst_287 : f32 to vector<8x32xf32>
    %569 = arith.subf %568, %564 : vector<8x32xf32>
    %570 = arith.mulf %569, %567 : vector<8x32xf32>
    %571 = arith.mulf %564, %534 : vector<8x32xf32>
    %572 = arith.addf %570, %571 : vector<8x32xf32>
    %573 = arith.truncf %572 : vector<8x32xf32> to vector<8x32xbf16>
    %c5 = arith.constant 5 : index
    %c0_288 = arith.constant 0 : index
    %c0_289 = arith.constant 0 : index
    %574 = vector.load %arg9[%c5, %c0_288, %c0_289] : memref<8x32x10xbf16, #tpu.memory_space<vmem>>, vector<1x32x10xbf16>
    %575 = vector.shape_cast %574 : vector<1x32x10xbf16> to vector<32x10xbf16>
    %cst_290 = arith.constant dense<0.000000e+00> : vector<8x10xf32>
    %576 = tpu.matmul %573, %575, %cst_290 {dimension_numbers = #tpu.dot_dimension_numbers<[1], [0], [0], [1], [0, 0, 1, 1], [], []>} : vector<8x32xbf16>, vector<32x10xbf16>, vector<8x10xf32> -> vector<8x10xf32>
    %577 = arith.addf %539, %576 : vector<8x10xf32>
    %c48_291 = arith.constant 48 : index
    %c0_292 = arith.constant 0 : index
    %578 = vector.load %arg12[%c48_291, %c0_292] : memref<64x32xf32, #tpu.memory_space<vmem>>, vector<8x32xf32>
    %c48_293 = arith.constant 48 : index
    %c0_294 = arith.constant 0 : index
    %579 = vector.load %arg13[%c48_293, %c0_294] : memref<64x32xf32, #tpu.memory_space<vmem>>, vector<8x32xf32>
    %c48_295 = arith.constant 48 : index
    %c0_296 = arith.constant 0 : index
    %580 = vector.load %arg14[%c48_295, %c0_296] : memref<64x32xf32, #tpu.memory_space<vmem>>, vector<8x32xf32>
    %581 = arith.truncf %572 : vector<8x32xf32> to vector<8x32xbf16>
    %cst_297 = arith.constant dense<0.000000e+00> : vector<8x32xf32>
    %582 = tpu.matmul %581, %337, %cst_297 {dimension_numbers = #tpu.dot_dimension_numbers<[1], [0], [0], [1], [0, 0, 1, 1], [], []>} : vector<8x32xbf16>, vector<32x32xbf16>, vector<8x32xf32> -> vector<8x32xf32>
    %583 = vector.broadcast %343 : vector<1x32xf32> to vector<8x32xf32>
    %584 = arith.addf %582, %583 : vector<8x32xf32>
    %cst_298 = arith.constant dense<0.000000e+00> : vector<8x32xf32>
    %585 = tpu.matmul %581, %339, %cst_298 {dimension_numbers = #tpu.dot_dimension_numbers<[1], [0], [0], [1], [0, 0, 1, 1], [], []>} : vector<8x32xbf16>, vector<32x32xbf16>, vector<8x32xf32> -> vector<8x32xf32>
    %586 = vector.broadcast %345 : vector<1x32xf32> to vector<8x32xf32>
    %587 = arith.addf %585, %586 : vector<8x32xf32>
    %cst_299 = arith.constant dense<0.000000e+00> : vector<8x32xf32>
    %588 = tpu.matmul %581, %341, %cst_299 {dimension_numbers = #tpu.dot_dimension_numbers<[1], [0], [0], [1], [0, 0, 1, 1], [], []>} : vector<8x32xbf16>, vector<32x32xbf16>, vector<8x32xf32> -> vector<8x32xf32>
    %589 = vector.broadcast %347 : vector<1x32xf32> to vector<8x32xf32>
    %590 = arith.addf %588, %589 : vector<8x32xf32>
    %591 = arith.addf %578, %584 : vector<8x32xf32>
    %592 = arith.negf %591 : vector<8x32xf32>
    %593 = math.exp %592 : vector<8x32xf32>
    %cst_300 = arith.constant 1.000000e+00 : f32
    %594 = vector.broadcast %cst_300 : f32 to vector<8x32xf32>
    %595 = arith.addf %594, %593 : vector<8x32xf32>
    %596 = arith.divf %594, %595 : vector<8x32xf32>
    %597 = arith.addf %579, %587 : vector<8x32xf32>
    %598 = arith.negf %597 : vector<8x32xf32>
    %599 = math.exp %598 : vector<8x32xf32>
    %cst_301 = arith.constant 1.000000e+00 : f32
    %600 = vector.broadcast %cst_301 : f32 to vector<8x32xf32>
    %601 = arith.addf %600, %599 : vector<8x32xf32>
    %602 = arith.divf %600, %601 : vector<8x32xf32>
    %603 = arith.mulf %596, %590 : vector<8x32xf32>
    %604 = arith.addf %580, %603 : vector<8x32xf32>
    %605 = math.tanh %604 : vector<8x32xf32>
    %cst_302 = arith.constant 1.000000e+00 : f32
    %606 = vector.broadcast %cst_302 : f32 to vector<8x32xf32>
    %607 = arith.subf %606, %602 : vector<8x32xf32>
    %608 = arith.mulf %607, %605 : vector<8x32xf32>
    %609 = arith.mulf %602, %572 : vector<8x32xf32>
    %610 = arith.addf %608, %609 : vector<8x32xf32>
    %611 = arith.truncf %610 : vector<8x32xf32> to vector<8x32xbf16>
    %c6 = arith.constant 6 : index
    %c0_303 = arith.constant 0 : index
    %c0_304 = arith.constant 0 : index
    %612 = vector.load %arg9[%c6, %c0_303, %c0_304] : memref<8x32x10xbf16, #tpu.memory_space<vmem>>, vector<1x32x10xbf16>
    %613 = vector.shape_cast %612 : vector<1x32x10xbf16> to vector<32x10xbf16>
    %cst_305 = arith.constant dense<0.000000e+00> : vector<8x10xf32>
    %614 = tpu.matmul %611, %613, %cst_305 {dimension_numbers = #tpu.dot_dimension_numbers<[1], [0], [0], [1], [0, 0, 1, 1], [], []>} : vector<8x32xbf16>, vector<32x10xbf16>, vector<8x10xf32> -> vector<8x10xf32>
    %615 = arith.addf %577, %614 : vector<8x10xf32>
    %c56_306 = arith.constant 56 : index
    %c0_307 = arith.constant 0 : index
    %616 = vector.load %arg12[%c56_306, %c0_307] : memref<64x32xf32, #tpu.memory_space<vmem>>, vector<8x32xf32>
    %c56_308 = arith.constant 56 : index
    %c0_309 = arith.constant 0 : index
    %617 = vector.load %arg13[%c56_308, %c0_309] : memref<64x32xf32, #tpu.memory_space<vmem>>, vector<8x32xf32>
    %c56_310 = arith.constant 56 : index
    %c0_311 = arith.constant 0 : index
    %618 = vector.load %arg14[%c56_310, %c0_311] : memref<64x32xf32, #tpu.memory_space<vmem>>, vector<8x32xf32>
    %619 = arith.truncf %610 : vector<8x32xf32> to vector<8x32xbf16>
    %cst_312 = arith.constant dense<0.000000e+00> : vector<8x32xf32>
    %620 = tpu.matmul %619, %337, %cst_312 {dimension_numbers = #tpu.dot_dimension_numbers<[1], [0], [0], [1], [0, 0, 1, 1], [], []>} : vector<8x32xbf16>, vector<32x32xbf16>, vector<8x32xf32> -> vector<8x32xf32>
    %621 = vector.broadcast %343 : vector<1x32xf32> to vector<8x32xf32>
    %622 = arith.addf %620, %621 : vector<8x32xf32>
    %cst_313 = arith.constant dense<0.000000e+00> : vector<8x32xf32>
    %623 = tpu.matmul %619, %339, %cst_313 {dimension_numbers = #tpu.dot_dimension_numbers<[1], [0], [0], [1], [0, 0, 1, 1], [], []>} : vector<8x32xbf16>, vector<32x32xbf16>, vector<8x32xf32> -> vector<8x32xf32>
    %624 = vector.broadcast %345 : vector<1x32xf32> to vector<8x32xf32>
    %625 = arith.addf %623, %624 : vector<8x32xf32>
    %cst_314 = arith.constant dense<0.000000e+00> : vector<8x32xf32>
    %626 = tpu.matmul %619, %341, %cst_314 {dimension_numbers = #tpu.dot_dimension_numbers<[1], [0], [0], [1], [0, 0, 1, 1], [], []>} : vector<8x32xbf16>, vector<32x32xbf16>, vector<8x32xf32> -> vector<8x32xf32>
    %627 = vector.broadcast %347 : vector<1x32xf32> to vector<8x32xf32>
    %628 = arith.addf %626, %627 : vector<8x32xf32>
    %629 = arith.addf %616, %622 : vector<8x32xf32>
    %630 = arith.negf %629 : vector<8x32xf32>
    %631 = math.exp %630 : vector<8x32xf32>
    %cst_315 = arith.constant 1.000000e+00 : f32
    %632 = vector.broadcast %cst_315 : f32 to vector<8x32xf32>
    %633 = arith.addf %632, %631 : vector<8x32xf32>
    %634 = arith.divf %632, %633 : vector<8x32xf32>
    %635 = arith.addf %617, %625 : vector<8x32xf32>
    %636 = arith.negf %635 : vector<8x32xf32>
    %637 = math.exp %636 : vector<8x32xf32>
    %cst_316 = arith.constant 1.000000e+00 : f32
    %638 = vector.broadcast %cst_316 : f32 to vector<8x32xf32>
    %639 = arith.addf %638, %637 : vector<8x32xf32>
    %640 = arith.divf %638, %639 : vector<8x32xf32>
    %641 = arith.mulf %634, %628 : vector<8x32xf32>
    %642 = arith.addf %618, %641 : vector<8x32xf32>
    %643 = math.tanh %642 : vector<8x32xf32>
    %cst_317 = arith.constant 1.000000e+00 : f32
    %644 = vector.broadcast %cst_317 : f32 to vector<8x32xf32>
    %645 = arith.subf %644, %640 : vector<8x32xf32>
    %646 = arith.mulf %645, %643 : vector<8x32xf32>
    %647 = arith.mulf %640, %610 : vector<8x32xf32>
    %648 = arith.addf %646, %647 : vector<8x32xf32>
    %649 = arith.truncf %648 : vector<8x32xf32> to vector<8x32xbf16>
    %c7 = arith.constant 7 : index
    %c0_318 = arith.constant 0 : index
    %c0_319 = arith.constant 0 : index
    %650 = vector.load %arg9[%c7, %c0_318, %c0_319] : memref<8x32x10xbf16, #tpu.memory_space<vmem>>, vector<1x32x10xbf16>
    %651 = vector.shape_cast %650 : vector<1x32x10xbf16> to vector<32x10xbf16>
    %cst_320 = arith.constant dense<0.000000e+00> : vector<8x10xf32>
    %652 = tpu.matmul %649, %651, %cst_320 {dimension_numbers = #tpu.dot_dimension_numbers<[1], [0], [0], [1], [0, 0, 1, 1], [], []>} : vector<8x32xbf16>, vector<32x10xbf16>, vector<8x10xf32> -> vector<8x10xf32>
    %653 = arith.addf %615, %652 : vector<8x10xf32>
    %c0_321 = arith.constant 0 : index
    %c0_322 = arith.constant 0 : index
    %654 = vector.load %arg10[%c0_321, %c0_322] : memref<1x10xf32, #tpu.memory_space<vmem>>, vector<1x10xf32>
    %655 = vector.broadcast %654 : vector<1x10xf32> to vector<8x10xf32>
    %656 = arith.addf %653, %655 : vector<8x10xf32>
    %c0_323 = arith.constant 0 : index
    %c0_324 = arith.constant 0 : index
    %657 = vector.load %arg11[%c0_323, %c0_324] : memref<8x10xf32, #tpu.memory_space<vmem>>, vector<8x10xf32>
    tpu.vector_store %arg11[%c0_323, %c0_324], %656 {strides = array<i32>} : memref<8x10xf32, #tpu.memory_space<vmem>>, vector<8x10xf32>,
    return
  }
}

</mosaic_0001>

<bundles_post_ra>
// kernel: rnn_gru_forward.1
= control target key start
LH: loop header
LB: loop body
LE: loop exit
PB: predicated region body
PF: predicated region fallthrough
CT: control target
= control target key end

     0   :  { %vm82_vm0 = vcmask 130048   ;;  %v4815_v5 = vmov 0.0   ;;  %vm4816_vm1 = vmmov 0   ;;  %v4817_v12 = vmov 0   ;;  %s5717_s1 = inlined_call_operand.vmem [shape: bf16[3,16,32], index: 1, kind: input, shape index: {}]   ;;  %s5718_s0 = inlined_call_operand.vmem [shape: bf16[64,16], index: 0, kind: input, shape index: {}]   ;;  %s5719_s2 = inlined_call_operand.vmem [shape: bf16[3,32,32], index: 2, kind: input, shape index: {}]   ;;  %s5720_s3 = inlined_call_operand.vmem [shape: f32[3,1,32], index: 3, kind: input, shape index: {}]   ;;  %s5721_s4 = inlined_call_operand.vmem [shape: f32[3,1,32], index: 4, kind: input, shape index: {}]   ;;  %s5722_s5 = inlined_call_operand.vmem [shape: bf16[3,32,32], index: 5, kind: input, shape index: {}]   ;;  %s5723_s6 = inlined_call_operand.vmem [shape: bf16[3,32,32], index: 6, kind: input, shape index: {}]   ;;  %s5724_s7 = inlined_call_operand.vmem [shape: f32[3,1,32], index: 7, kind: input, shape index: {}]   ;;  %s5725_s9 = inlined_call_operand.vmem [shape: bf16[8,32,10], index: 9, kind: input, shape index: {}]   ;;  %s5726_s8 = inlined_call_operand.vmem [shape: f32[3,1,32], index: 8, kind: input, shape index: {}]   ;;  %s5727_s10 = inlined_call_operand.vmem [shape: f32[1,10], index: 10, kind: input, shape index: {}]   ;;  %s5728_s11 = inlined_call_operand.vmem [shape: f32[8,10], index: 11, kind: output, shape index: {}]  }
   0x1   :  { %v4603_v0 = vld [vmem:[%s5717_s1 + $0x8] sm:$0xff]   ;;  %v4604_v1 = vld [vmem:[%s5717_s1] sm:$0xff]   ;;  %v4608_v6 = vld [vmem:[%s5718_s0 + $0x10] sm:$0xff]   ;;  %vm160_vm2 = vcmask 261120   ;;  %vm3655_vm3 = vcmask 80896  }
   0x2   :  { %4096 = vmatprep.subr.bf16.mxu1 %v4603_v0  ;;  %v4605_v2 = vld [vmem:[%s5718_s0] sm:$0xff]   ;;  %4086 = vmatprep.subr.bf16.mxu0 %v4604_v1  ;;  %v4606_v3 = vld [vmem:[%s5718_s0 + $0x8] sm:$0xff]   ;;  %v4612_v8 = vld [vmem:[%s5717_s1 + $0x10] sm:$0xff]  }
   0x3   :  { %4097 = vmatpush3.bf16.msra.mxu1 %v4603_v0  ;;  %4087 = vmatpush3.bf16.msra.mxu0 %v4604_v1  ;;  %v4894_v4 = vld [vmem:[%s5719_s2 + $0x8] sm:$0xff]   ;;  %v4907_v7 = vld [vmem:[%s5719_s2] sm:$0xff]   ;;  %v4609_v9 = vld [vmem:[%s5718_s0 + $0x18] sm:$0xff]  }
   0x4   :  { %4098 = vmatprep.mubr.msk.bf16.mxu1 %vm82_vm0, %v4605_v2  ;;  %4088 = vmatprep.mubr.msk.bf16.mxu0 %vm82_vm0, %v4605_v2  ;;  %v4929_v10 = vld [vmem:[%s5719_s2 + $0x18] sm:$0xff]   ;;  %v4934_v11 = vld [vmem:[%s5719_s2 + $0x28] sm:$0xff]   ;;  %v4941_v13 = vld [vmem:[%s5719_s2 + $0x10] sm:$0xff]  }
   0x5   :  { %4116 = vmatprep.subr.bf16.mxu1 %v4815_v5  ;;  %4106 = vmatprep.subr.bf16.mxu0 %v4612_v8  ;;  %v4952_v14 = vld [vmem:[%s5719_s2 + $0x20] sm:$0xff]  }
   0x6   :  { %4099 = vmatmul.mubr.msk.bf16.vlgmr.msra.gmra.mxu1 %vm82_vm0, %v4606_v3  ;;  %4089 = vmatmul.mubr.msk.bf16.vlgmr.msra.gmra.mxu0 %vm82_vm0, %v4606_v3  ;;  %v3674_v15 = vld [vmem:[%s5720_s3 + $0x1] ss:$0 sm:$0xff]  ;;  %v3661_v16 = vld [vmem:[%s5720_s3] ss:$0 sm:$0xff]  ;;  %v3683_v51 = vld [vmem:[%s5720_s3 + $0x2] ss:$0 sm:$0xff] }
   0x7   :  { %4117 = vmatpush3.bf16.msra.mxu1 %v4894_v4  ;;  %4102 = vmatprep.mubr.msk.bf16.mxu1 %vm82_vm0, %v4608_v6  ;;  %v4996_v45 = vld [vmem:[%s5721_s4] ss:$0 sm:$0xff]  ;;  %v5011_v63 = vld [vmem:[%s5721_s4 + $0x1] ss:$0 sm:$0xff] }
   0x8   :  { %4118 = vmatprep.subr.bf16.mxu1 %v4815_v5  ;;  %4092 = vmatprep.mubr.msk.bf16.mxu0 %vm82_vm0, %v4608_v6 }
   0x9   :  { %4107 = vmatpush3.bf16.msra.mxu0 %v4612_v8 }
   0xa   :  { %4132 = vmatprep.subr.bf16.mxu0 %v4815_v5 }
   0xb   :  { %4119 = vmatpush3.bf16.msra.mxu1 %v4907_v7 }
   0xc   :  { %4124 = vmatprep.subr.bf16.mxu1 %v4815_v5 }
   0xe   :  { %4103 = vmatmul.mubr.msk.bf16.gmra.mxu1 %vm82_vm0, %v4609_v9  ;;  %4093 = vmatmul.mubr.msk.bf16.gmra.mxu0 %vm82_vm0, %v4609_v9 }
   0xf   :  { %4120 = vmatprep.mubr.msk.bf16.mxu1 %vm4816_vm1, %v4815_v5  ;;  %4108 = vmatprep.mubr.msk.bf16.mxu0 %vm82_vm0, %v4605_v2 }
  0x16   :  { %4121 = vmatmul.mubr.bf16.vlgmr.msra.gmra.mxu1 %v4817_v12  ;;  %4109 = vmatmul.mubr.msk.bf16.vlgmr.msra.gmra.mxu0 %vm82_vm0, %v4606_v3 }
  0x17   :  { %4125 = vmatpush3.bf16.msra.mxu1 %v4929_v10  ;;  %4128 = vmatprep.mubr.msk.bf16.mxu1 %vm4816_vm1, %v4815_v5 }
  0x18   :  { %4126 = vmatprep.subr.bf16.mxu1 %v4815_v5  ;;  %4133 = vmatpush3.bf16.msra.mxu0 %v4934_v11 }
  0x19   :  { %4112 = vmatprep.mubr.msk.bf16.mxu0 %vm82_vm0, %v4608_v6  ;;  %4134 = vmatprep.subr.bf16.mxu0 %v4815_v5 }
  0x1b   :  { %4127 = vmatpush3.bf16.msra.mxu1 %v4941_v13 }
  0x1c   :  { %4140 = vmatprep.subr.bf16.mxu1 %v4815_v5  ;;  %4135 = vmatpush3.bf16.msra.mxu0 %v4952_v14 }
  0x1d   :  { %4148 = vmatprep.subr.bf16.mxu0 %v4815_v5 }
  0x1e   :  { %4129 = vmatmul.mubr.bf16.vlgmr.msra.gmra.mxu1 %v4817_v12  ;;  %4113 = vmatmul.mubr.msk.bf16.gmra.mxu0 %vm82_vm0, %v4609_v9 }
  0x1f   :  { %4141 = vmatpush3.bf16.msra.mxu1 %v4894_v4  ;;  %4144 = vmatprep.mubr.msk.bf16.mxu1 %vm4816_vm1, %v4815_v5 }
  0x20   :  { %4142 = vmatprep.subr.bf16.mxu1 %v4815_v5  ;;  %4136 = vmatprep.mubr.msk.bf16.mxu0 %vm4816_vm1, %v4815_v5 }
  0x23   :  { %4143 = vmatpush3.bf16.msra.mxu1 %v4907_v7 }
  0x24   :  { %4156 = vmatprep.subr.bf16.mxu1 %v4815_v5 }
  0x26   :  { %4137 = vmatmul.mubr.bf16.vlgmr.msra.gmra.mxu0 %v4817_v12 }
  0x27   :  { %4149 = vmatpush3.bf16.msra.mxu0 %v4929_v10  ;;  %4152 = vmatprep.mubr.msk.bf16.mxu0 %vm4816_vm1, %v4815_v5 }
  0x28   :  { %4150 = vmatprep.subr.bf16.mxu0 %v4815_v5 }
  0x2b   :  { %4151 = vmatpush3.bf16.msra.mxu0 %v4941_v13 }
  0x2c   :  { %4164 = vmatprep.subr.bf16.mxu0 %v4815_v5 }
  0xc6   :  { %v4100_v17 = vpop.f32.mrf.mxu1  ;;  %v4090_v19 = vpop.f32.mrf.mxu0 }
  0xc7   :  { %v229_v18 = vadd.f32 %v4100_v17, %v3674_v15  ;;  %v138_v20 = vadd.f32 %v4090_v19, %v3661_v16 }
  0xc8   :  { %v220_v21 = vpop.f32.mrf.mxu1  ;;  %v129_v23 = vpop.f32.mrf.mxu0 }
  0xc9   :  { %253 = vst.msk [vmem:[#allocation3 + $0x10] sm:$0xff] %vm160_vm2, %v229_v18  ;;  %v221_v22 = vadd.f32 %v3674_v15, %v220_v21  ;;  %163 = vst.msk [vmem:[#allocation2 + $0x10] sm:$0xff] %vm160_vm2, %v138_v20  ;;  %v130_v24 = vadd.f32 %v3661_v16, %v129_v23 }
  0xca   :  { %v4101_v25 = vpop.f32.mrf.mxu1  ;;  %v4091_v27 = vpop.f32.mrf.mxu0 }
  0xcb   :  { %251 = vst.msk [vmem:[#allocation3] sm:$0xff] %vm160_vm2, %v221_v22  ;;  %v232_v26 = vadd.f32 %v4101_v25, %v3674_v15  ;;  %161 = vst.msk [vmem:[#allocation2] sm:$0xff] %vm160_vm2, %v130_v24  ;;  %v141_v28 = vadd.f32 %v4091_v27, %v3661_v16 }
  0xcc   :  { %v223_v29 = vpop.f32.mrf.mxu1  ;;  %v132_v31 = vpop.f32.mrf.mxu0 }
  0xcd   :  { %254 = vst.msk [vmem:[#allocation3 + $0x18] sm:$0xff] %vm160_vm2, %v232_v26  ;;  %v224_v30 = vadd.f32 %v3674_v15, %v223_v29  ;;  %164 = vst.msk [vmem:[#allocation2 + $0x18] sm:$0xff] %vm160_vm2, %v141_v28  ;;  %v133_v32 = vadd.f32 %v3661_v16, %v132_v31 }
  0xce   :  { %v4104_v33 = vpop.f32.mrf.mxu1  ;;  %v4094_v35 = vpop.f32.mrf.mxu0 }
  0xcf   :  { %252 = vst.msk [vmem:[#allocation3 + $0x8] sm:$0xff] %vm160_vm2, %v224_v30  ;;  %v245_v34 = vadd.f32 %v4104_v33, %v3674_v15  ;;  %162 = vst.msk [vmem:[#allocation2 + $0x8] sm:$0xff] %vm160_vm2, %v133_v32  ;;  %v154_v37 = vadd.f32 %v4094_v35, %v3661_v16  ;;  %v5024_v35 = vld [vmem:[%s5721_s4 + $0x2] ss:$0 sm:$0xff] }
  0xd0   :  { %v236_v36 = vpop.f32.mrf.mxu1  ;;  %v145_v39 = vpop.f32.mrf.mxu0 }
  0xd1   :  { %257 = vst.msk [vmem:[#allocation3 + $0x30] sm:$0xff] %vm160_vm2, %v245_v34  ;;  %v237_v38 = vadd.f32 %v3674_v15, %v236_v36  ;;  %167 = vst.msk [vmem:[#allocation2 + $0x30] sm:$0xff] %vm160_vm2, %v154_v37  ;;  %v146_v41 = vadd.f32 %v3661_v16, %v145_v39 }
  0xd2   :  { %v4105_v40 = vpop.f32.mrf.mxu1  ;;  %v4095_v43 = vpop.f32.mrf.mxu0  ;;  %v368_v53 = vld [vmem:[#allocation2] sm:$0xff] }
  0xd3   :  { %255 = vst.msk [vmem:[#allocation3 + $0x20] sm:$0xff] %vm160_vm2, %v237_v38  ;;  %v248_v42 = vadd.f32 %v4105_v40, %v3674_v15  ;;  %165 = vst.msk [vmem:[#allocation2 + $0x20] sm:$0xff] %vm160_vm2, %v146_v41  ;;  %v157_v46 = vadd.f32 %v4095_v43, %v3661_v16  ;;  %v369_v9 = vld [vmem:[#allocation3] sm:$0xff] }
  0xd4   :  { %v239_v44 = vpop.f32.mrf.mxu1  ;;  %v148_v48 = vpop.f32.mrf.mxu0 }
  0xd5   :  { %258 = vst.msk [vmem:[#allocation3 + $0x38] sm:$0xff] %vm160_vm2, %v248_v42  ;;  %v240_v47 = vadd.f32 %v3674_v15, %v239_v44  ;;  %168 = vst.msk [vmem:[#allocation2 + $0x38] sm:$0xff] %vm160_vm2, %v157_v46  ;;  %v149_v50 = vadd.f32 %v3661_v16, %v148_v48 }
  0xd6   :  { %v426_v49 = vpop.f32.mrf.mxu1  ;;  %v4110_v55 = vpop.f32.mrf.mxu0 }
  0xd7   :  { %256 = vst.msk [vmem:[#allocation3 + $0x28] sm:$0xff] %vm160_vm2, %v240_v47  ;;  %v427_v52 = vadd.f32 %v4996_v45, %v426_v49  ;;  %166 = vst.msk [vmem:[#allocation2 + $0x28] sm:$0xff] %vm160_vm2, %v149_v50  ;;  %v319_v57 = vadd.f32 %v4110_v55, %v3683_v51 }
  0xd8   :  { %v4122_v54 = vpop.f32.mrf.mxu1  ;;  %v310_v59 = vpop.f32.mrf.mxu0 }
  0xd9   :  { %v548_v56 = vadd.f32 %v427_v52, %v368_v53  ;;  %343 = vst.msk [vmem:[#allocation4 + $0x10] sm:$0xff] %vm160_vm2, %v319_v57  ;;  %v311_v61 = vadd.f32 %v3683_v51, %v310_v59  ;;  %v570_v53 = vld [vmem:[#allocation2 + $0x8] sm:$0xff] }
  0xda   :  { %v429_v58 = vpop.f32.mrf.mxu1  ;;  %v4111_v0 = vpop.f32.mrf.mxu0 }
  0xdb   :  { %v3708_v60 = vmul.f32 -1.442695, %v548_v56  ;;  %341 = vst.msk [vmem:[#allocation4] sm:$0xff] %vm160_vm2, %v311_v61  ;;  %v322_v1 = vadd.f32 %v4111_v0, %v3683_v51  ;;  %v571_v0 = vld [vmem:[#allocation3 + $0x8] sm:$0xff] }
  0xdc   :  { %v4123_v62 = vpop.f32.mrf.mxu1  ;;  %v313_v3 = vpop.f32.mrf.mxu0 }
  0xdd   :  { %4644 = vpow2.f32 %v3708_v60  ;;  %344 = vst.msk [vmem:[#allocation4 + $0x18] sm:$0xff] %vm160_vm2, %v322_v1  ;;  %v314_v8 = vadd.f32 %v3683_v51, %v313_v3 }
  0xde   :  { %v484_v2 = vpop.f32.mrf.mxu1  ;;  %v4114_v16 = vpop.f32.mrf.mxu0 }
  0xdf   :  { %v485_v6 = vadd.f32 %v5011_v63, %v484_v2  ;;  %342 = vst.msk [vmem:[#allocation4 + $0x8] sm:$0xff] %vm160_vm2, %v314_v8  ;;  %v335_v18 = vadd.f32 %v4114_v16, %v3683_v51 }
  0xe0   :  { %v4130_v15 = vpop.f32.mrf.mxu1  ;;  %v326_v20 = vpop.f32.mrf.mxu0 }
  0xe1   :  { %v555_v17 = vadd.f32 %v485_v6, %v369_v9  ;;  %347 = vst.msk [vmem:[#allocation4 + $0x30] sm:$0xff] %vm160_vm2, %v335_v18  ;;  %v327_v22 = vadd.f32 %v3683_v51, %v326_v20 }
  0xe2   :  { %v487_v19 = vpop.f32.mrf.mxu1  ;;  %v4115_v24 = vpop.f32.mrf.mxu0  ;;  %v370_v40 = vld [vmem:[#allocation4] sm:$0xff] }
  0xe3   :  { %v3709_v21 = vmul.f32 -1.442695, %v555_v17  ;;  %345 = vst.msk [vmem:[#allocation4 + $0x20] sm:$0xff] %vm160_vm2, %v327_v22  ;;  %v338_v25 = vadd.f32 %v4115_v24, %v3683_v51 }
  0xe4   :  { %v4131_v23 = vpop.f32.mrf.mxu1  ;;  %v329_v26 = vpop.f32.mrf.mxu0 }
  0xe5   :  { %4646 = vpow2.f32 %v3709_v21  ;;  %348 = vst.msk [vmem:[#allocation4 + $0x38] sm:$0xff] %vm160_vm2, %v338_v25  ;;  %v330_v27 = vadd.f32 %v3683_v51, %v329_v26 }
  0xe6   :  { %v542_v28 = vpop.f32.mrf.mxu0  ;;  %v572_v22 = vld [vmem:[#allocation4 + $0x8] sm:$0xff] }
  0xe7   :  { %346 = vst.msk [vmem:[#allocation4 + $0x28] sm:$0xff] %vm160_vm2, %v330_v27  ;;  %v543_v37 = vadd.f32 %v5024_v35, %v542_v28 }
  0xe8   :  { %v4138_v30 = vpop.f32.mrf.mxu0 }
  0xea   :  { %v4645_v29 = vpop.eup %4644  ;;  %v545_v32 = vpop.f32.mrf.mxu0 }
  0xeb   :  { %v552_v31 = vadd.f32 1.0, %v4645_v29 }
  0xec   :  { %v4139_v33 = vpop.f32.mrf.mxu0 }
  0xed   :  { %4648 = vrcp.f32 %v552_v31 }
  0xf2   :  { %v4647_v34 = vpop.eup %4646 }
  0xf3   :  { %v559_v36 = vadd.f32 1.0, %v4647_v34  ;;  %v719_v34 = vld [vmem:[#allocation2 + $0x10] sm:$0xff] }
  0xf5   :  { %4650 = vrcp.f32 %v559_v36 }
  0xfa   :  { %v4649_v38 = vpop.eup %4648 }
  0xfb   :  { %v562_v39 = vmul.f32 %v4649_v38, %v543_v37 }
  0xfd   :  { %v563_v41 = vadd.f32 %v562_v39, %v370_v40 }
  0xff   :  { %4652 = vtanh.f32 %v563_v41 }
 0x102   :  { %v4651_v42 = vpop.eup %4650 }
 0x103   :  { %v565_v43 = vsub.f32 1.0, %v4651_v42  ;;  %v567_v47 = vmul.f32 0.0, %v4651_v42 }
 0x10c   :  { %v4653_v44 = vpop.eup %4652 }
 0x10d   :  { %v566_v46 = vmul.f32 %v4653_v44, %v565_v43 }
 0x10f   :  { %v568_v48 = vadd.f32 %v567_v47, %v566_v46  ;;  %v720_v46 = vld [vmem:[#allocation3 + $0x10] sm:$0xff] }
 0x111   :  { %569 = vst.msk [vmem:[#allocation5] sm:$0xff] %vm160_vm2, %v568_v48  ;;  %v573_v49 = vpack.c.bf16 %v568_v48, %v568_v48 }
 0x113   :  { %4145 = vmatmul.mubr.msk.bf16.vlgmr.msra.gmra.mxu1 %vm160_vm2, %v573_v49  ;;  %4153 = vmatmul.mubr.msk.bf16.vlgmr.msra.gmra.mxu0 %vm160_vm2, %v573_v49 }
 0x114   :  { %4157 = vmatpush3.bf16.msra.mxu1 %v4934_v11  ;;  %4160 = vmatprep.mubr.msk.bf16.mxu1 %vm4816_vm1, %v4815_v5 }
 0x115   :  { %4158 = vmatprep.subr.bf16.mxu1 %v4815_v5  ;;  %4165 = vmatpush3.bf16.msra.mxu0 %v4894_v4 }
 0x116   :  { %4166 = vmatprep.subr.bf16.mxu0 %v4815_v5  ;;  %4168 = vmatprep.mubr.msk.bf16.mxu0 %vm4816_vm1, %v4815_v5 }
 0x118   :  { %4159 = vmatpush3.bf16.msra.mxu1 %v4952_v14 }
 0x119   :  { %4172 = vmatprep.subr.bf16.mxu1 %v4815_v5  ;;  %4167 = vmatpush3.bf16.msra.mxu0 %v4907_v7 }
 0x11a   :  { %4180 = vmatprep.subr.bf16.mxu0 %v4815_v5 }
 0x11b   :  { %4161 = vmatmul.mubr.msk.bf16.vlgmr.msra.gmra.mxu1 %vm160_vm2, %v573_v49 }
 0x11c   :  { %4173 = vmatpush3.bf16.msra.mxu1 %v4929_v10  ;;  %4176 = vmatprep.mubr.msk.bf16.mxu1 %vm4816_vm1, %v4815_v5 }
 0x11d   :  { %4174 = vmatprep.subr.bf16.mxu1 %v4815_v5 }
 0x120   :  { %4175 = vmatpush3.bf16.msra.mxu1 %v4941_v13 }
 0x121   :  { %4188 = vmatprep.subr.bf16.mxu1 %v4815_v5 }
 0x1d3   :  { %v611_v50 = vpop.f32.mrf.mxu1  ;;  %v651_v51 = vpop.f32.mrf.mxu0 }
 0x1d4   :  { %v612_v52 = vadd.f32 %v4996_v45, %v611_v50  ;;  %v652_v60 = vadd.f32 %v5011_v63, %v651_v51 }
 0x1d5   :  { %v4146_v54 = vpop.f32.mrf.mxu1  ;;  %v4154_v55 = vpop.f32.mrf.mxu0 }
 0x1d6   :  { %v697_v56 = vadd.f32 %v612_v52, %v570_v53  ;;  %v704_v2 = vadd.f32 %v652_v60, %v571_v0  ;;  %v721_v60 = vld [vmem:[#allocation4 + $0x10] sm:$0xff] }
 0x1d7   :  { %v614_v57 = vpop.f32.mrf.mxu1  ;;  %v654_v58 = vpop.f32.mrf.mxu0 }
 0x1d8   :  { %v3713_v59 = vmul.f32 -1.442695, %v697_v56  ;;  %v3714_v8 = vmul.f32 -1.442695, %v704_v2 }
 0x1d9   :  { %v4147_v61 = vpop.f32.mrf.mxu1  ;;  %v4155_v62 = vpop.f32.mrf.mxu0 }
 0x1da   :  { %4654 = vpow2.f32 %v3713_v59 }
 0x1db   :  { %v691_v1 = vpop.f32.mrf.mxu1  ;;  %4656 = vpow2.f32 %v3714_v8 }
 0x1dc   :  { %v692_v19 = vadd.f32 %v5024_v35, %v691_v1 }
 0x1dd   :  { %v4162_v3 = vpop.f32.mrf.mxu1 }
 0x1df   :  { %v694_v6 = vpop.f32.mrf.mxu1 }
 0x1e1   :  { %v4163_v9 = vpop.f32.mrf.mxu1 }
 0x1e7   :  { %v4655_v15 = vpop.eup %4654 }
 0x1e8   :  { %v701_v16 = vadd.f32 1.0, %v4655_v15  ;;  %v4657_v17 = vpop.eup %4656 }
 0x1e9   :  { %v708_v18 = vadd.f32 1.0, %v4657_v17  ;;  %v868_v17 = vld [vmem:[#allocation2 + $0x18] sm:$0xff] }
 0x1ea   :  { %4658 = vrcp.f32 %v701_v16 }
 0x1eb   :  { %4660 = vrcp.f32 %v708_v18 }
 0x1f7   :  { %v4659_v20 = vpop.eup %4658 }
 0x1f8   :  { %v711_v21 = vmul.f32 %v4659_v20, %v692_v19  ;;  %v4661_v24 = vpop.eup %4660 }
 0x1f9   :  { %v714_v25 = vsub.f32 1.0, %v4661_v24  ;;  %v716_v28 = vmul.f32 %v4661_v24, %v568_v48 }
 0x1fa   :  { %v712_v23 = vadd.f32 %v711_v21, %v572_v22 }
 0x1fc   :  { %4662 = vtanh.f32 %v712_v23 }
 0x209   :  { %v4663_v26 = vpop.eup %4662 }
 0x20a   :  { %v715_v27 = vmul.f32 %v4663_v26, %v714_v25 }
 0x20c   :  { %v717_v29 = vadd.f32 %v716_v28, %v715_v27  ;;  %v869_v27 = vld [vmem:[#allocation3 + $0x18] sm:$0xff] }
 0x20e   :  { %718 = vst.msk [vmem:[#allocation5 + $0x8] sm:$0xff] %vm160_vm2, %v717_v29  ;;  %v722_v30 = vpack.c.bf16 %v717_v29, %v717_v29 }
 0x210   :  { %4169 = vmatmul.mubr.msk.bf16.vlgmr.msra.gmra.mxu0 %vm160_vm2, %v722_v30  ;;  %4177 = vmatmul.mubr.msk.bf16.vlgmr.msra.gmra.mxu1 %vm160_vm2, %v722_v30 }
 0x211   :  { %4181 = vmatpush3.bf16.msra.mxu0 %v4934_v11  ;;  %4184 = vmatprep.mubr.msk.bf16.mxu0 %vm4816_vm1, %v4815_v5 }
 0x212   :  { %4182 = vmatprep.subr.bf16.mxu0 %v4815_v5  ;;  %4189 = vmatpush3.bf16.msra.mxu1 %v4894_v4 }
 0x213   :  { %4190 = vmatprep.subr.bf16.mxu1 %v4815_v5  ;;  %4192 = vmatprep.mubr.msk.bf16.mxu1 %vm4816_vm1, %v4815_v5 }
 0x215   :  { %4183 = vmatpush3.bf16.msra.mxu0 %v4952_v14 }
 0x216   :  { %4196 = vmatprep.subr.bf16.mxu0 %v4815_v5  ;;  %4191 = vmatpush3.bf16.msra.mxu1 %v4907_v7 }
 0x217   :  { %4204 = vmatprep.subr.bf16.mxu1 %v4815_v5 }
 0x218   :  { %4185 = vmatmul.mubr.msk.bf16.vlgmr.msra.gmra.mxu0 %vm160_vm2, %v722_v30 }
 0x219   :  { %4197 = vmatpush3.bf16.msra.mxu0 %v4929_v10  ;;  %4200 = vmatprep.mubr.msk.bf16.mxu0 %vm4816_vm1, %v4815_v5 }
 0x21a   :  { %4198 = vmatprep.subr.bf16.mxu0 %v4815_v5 }
 0x21d   :  { %4199 = vmatpush3.bf16.msra.mxu0 %v4941_v13 }
 0x21e   :  { %4212 = vmatprep.subr.bf16.mxu0 %v4815_v5 }
 0x2d0   :  { %v760_v31 = vpop.f32.mrf.mxu0  ;;  %v800_v32 = vpop.f32.mrf.mxu1 }
 0x2d1   :  { %v761_v33 = vadd.f32 %v4996_v45, %v760_v31  ;;  %v801_v42 = vadd.f32 %v5011_v63, %v800_v32 }
 0x2d2   :  { %v4170_v36 = vpop.f32.mrf.mxu0  ;;  %v4178_v37 = vpop.f32.mrf.mxu1 }
 0x2d3   :  { %v846_v38 = vadd.f32 %v761_v33, %v719_v34  ;;  %v853_v48 = vadd.f32 %v801_v42, %v720_v46  ;;  %v870_v42 = vld [vmem:[#allocation4 + $0x18] sm:$0xff] }
 0x2d4   :  { %v763_v39 = vpop.f32.mrf.mxu0  ;;  %v803_v40 = vpop.f32.mrf.mxu1 }
 0x2d5   :  { %v3718_v41 = vmul.f32 -1.442695, %v846_v38  ;;  %v3719_v51 = vmul.f32 -1.442695, %v853_v48 }
 0x2d6   :  { %v4171_v43 = vpop.f32.mrf.mxu0  ;;  %v4179_v44 = vpop.f32.mrf.mxu1 }
 0x2d7   :  { %4664 = vpow2.f32 %v3718_v41 }
 0x2d8   :  { %v840_v47 = vpop.f32.mrf.mxu0  ;;  %4666 = vpow2.f32 %v3719_v51 }
 0x2d9   :  { %v841_v57 = vadd.f32 %v5024_v35, %v840_v47 }
 0x2da   :  { %v4186_v49 = vpop.f32.mrf.mxu0 }
 0x2dc   :  { %v843_v50 = vpop.f32.mrf.mxu0 }
 0x2de   :  { %v4187_v52 = vpop.f32.mrf.mxu0 }
 0x2e4   :  { %v4665_v53 = vpop.eup %4664 }
 0x2e5   :  { %v850_v54 = vadd.f32 1.0, %v4665_v53  ;;  %v4667_v55 = vpop.eup %4666 }
 0x2e6   :  { %v857_v56 = vadd.f32 1.0, %v4667_v55  ;;  %v1017_v55 = vld [vmem:[#allocation2 + $0x20] sm:$0xff] }
 0x2e7   :  { %4668 = vrcp.f32 %v850_v54 }
 0x2e8   :  { %4670 = vrcp.f32 %v857_v56 }
 0x2f4   :  { %v4669_v58 = vpop.eup %4668 }
 0x2f5   :  { %v860_v59 = vmul.f32 %v4669_v58, %v841_v57  ;;  %v4671_v62 = vpop.eup %4670 }
 0x2f6   :  { %v863_v0 = vsub.f32 1.0, %v4671_v62  ;;  %v865_v3 = vmul.f32 %v4671_v62, %v717_v29 }
 0x2f7   :  { %v861_v61 = vadd.f32 %v860_v59, %v721_v60 }
 0x2f9   :  { %4672 = vtanh.f32 %v861_v61 }
 0x306   :  { %v4673_v1 = vpop.eup %4672 }
 0x307   :  { %v864_v2 = vmul.f32 %v4673_v1, %v863_v0 }
 0x309   :  { %v866_v6 = vadd.f32 %v865_v3, %v864_v2  ;;  %v1018_v2 = vld [vmem:[#allocation3 + $0x20] sm:$0xff] }
 0x30b   :  { %867 = vst.msk [vmem:[#allocation5 + $0x10] sm:$0xff] %vm160_vm2, %v866_v6  ;;  %v871_v8 = vpack.c.bf16 %v866_v6, %v866_v6 }
 0x30d   :  { %4193 = vmatmul.mubr.msk.bf16.vlgmr.msra.gmra.mxu1 %vm160_vm2, %v871_v8  ;;  %4201 = vmatmul.mubr.msk.bf16.vlgmr.msra.gmra.mxu0 %vm160_vm2, %v871_v8 }
 0x30e   :  { %4205 = vmatpush3.bf16.msra.mxu1 %v4934_v11  ;;  %4208 = vmatprep.mubr.msk.bf16.mxu1 %vm4816_vm1, %v4815_v5 }
 0x30f   :  { %4206 = vmatprep.subr.bf16.mxu1 %v4815_v5  ;;  %4213 = vmatpush3.bf16.msra.mxu0 %v4894_v4 }
 0x310   :  { %4214 = vmatprep.subr.bf16.mxu0 %v4815_v5  ;;  %4216 = vmatprep.mubr.msk.bf16.mxu0 %vm4816_vm1, %v4815_v5 }
 0x312   :  { %4207 = vmatpush3.bf16.msra.mxu1 %v4952_v14 }
 0x313   :  { %4220 = vmatprep.subr.bf16.mxu1 %v4815_v5  ;;  %4215 = vmatpush3.bf16.msra.mxu0 %v4907_v7 }
 0x314   :  { %4228 = vmatprep.subr.bf16.mxu0 %v4815_v5 }
 0x315   :  { %4209 = vmatmul.mubr.msk.bf16.vlgmr.msra.gmra.mxu1 %vm160_vm2, %v871_v8 }
 0x316   :  { %4221 = vmatpush3.bf16.msra.mxu1 %v4929_v10  ;;  %4224 = vmatprep.mubr.msk.bf16.mxu1 %vm4816_vm1, %v4815_v5 }
 0x317   :  { %4222 = vmatprep.subr.bf16.mxu1 %v4815_v5 }
 0x31a   :  { %4223 = vmatpush3.bf16.msra.mxu1 %v4941_v13 }
 0x31b   :  { %4236 = vmatprep.subr.bf16.mxu1 %v4815_v5 }
 0x3cd   :  { %v909_v9 = vpop.f32.mrf.mxu1  ;;  %v949_v15 = vpop.f32.mrf.mxu0 }
 0x3ce   :  { %v910_v16 = vadd.f32 %v4996_v45, %v909_v9  ;;  %v950_v24 = vadd.f32 %v5011_v63, %v949_v15 }
 0x3cf   :  { %v4194_v18 = vpop.f32.mrf.mxu1  ;;  %v4202_v19 = vpop.f32.mrf.mxu0 }
 0x3d0   :  { %v995_v20 = vadd.f32 %v910_v16, %v868_v17  ;;  %v1002_v29 = vadd.f32 %v950_v24, %v869_v27  ;;  %v1019_v24 = vld [vmem:[#allocation4 + $0x20] sm:$0xff] }
 0x3d1   :  { %v912_v21 = vpop.f32.mrf.mxu1  ;;  %v952_v22 = vpop.f32.mrf.mxu0 }
 0x3d2   :  { %v3723_v23 = vmul.f32 -1.442695, %v995_v20  ;;  %v3724_v32 = vmul.f32 -1.442695, %v1002_v29 }
 0x3d3   :  { %v4195_v25 = vpop.f32.mrf.mxu1  ;;  %v4203_v26 = vpop.f32.mrf.mxu0 }
 0x3d4   :  { %4674 = vpow2.f32 %v3723_v23 }
 0x3d5   :  { %v989_v28 = vpop.f32.mrf.mxu1  ;;  %4676 = vpow2.f32 %v3724_v32 }
 0x3d6   :  { %v990_v39 = vadd.f32 %v5024_v35, %v989_v28 }
 0x3d7   :  { %v4210_v30 = vpop.f32.mrf.mxu1 }
 0x3d9   :  { %v992_v31 = vpop.f32.mrf.mxu1 }
 0x3db   :  { %v4211_v33 = vpop.f32.mrf.mxu1 }
 0x3e1   :  { %v4675_v34 = vpop.eup %4674 }
 0x3e2   :  { %v999_v36 = vadd.f32 1.0, %v4675_v34  ;;  %v4677_v37 = vpop.eup %4676 }
 0x3e3   :  { %v1006_v38 = vadd.f32 1.0, %v4677_v37  ;;  %v1166_v37 = vld [vmem:[#allocation2 + $0x28] sm:$0xff] }
 0x3e4   :  { %4678 = vrcp.f32 %v999_v36 }
 0x3e5   :  { %4680 = vrcp.f32 %v1006_v38 }
 0x3f1   :  { %v4679_v40 = vpop.eup %4678 }
 0x3f2   :  { %v1009_v41 = vmul.f32 %v4679_v40, %v990_v39  ;;  %v4681_v44 = vpop.eup %4680 }
 0x3f3   :  { %v1012_v46 = vsub.f32 1.0, %v4681_v44  ;;  %v1014_v49 = vmul.f32 %v4681_v44, %v866_v6 }
 0x3f4   :  { %v1010_v43 = vadd.f32 %v1009_v41, %v870_v42 }
 0x3f6   :  { %4682 = vtanh.f32 %v1010_v43 }
 0x403   :  { %v4683_v47 = vpop.eup %4682 }
 0x404   :  { %v1013_v48 = vmul.f32 %v4683_v47, %v1012_v46 }
 0x406   :  { %v1015_v50 = vadd.f32 %v1014_v49, %v1013_v48  ;;  %v1167_v48 = vld [vmem:[#allocation3 + $0x28] sm:$0xff] }
 0x408   :  { %1016 = vst.msk [vmem:[#allocation5 + $0x18] sm:$0xff] %vm160_vm2, %v1015_v50  ;;  %v1020_v51 = vpack.c.bf16 %v1015_v50, %v1015_v50 }
 0x40a   :  { %4217 = vmatmul.mubr.msk.bf16.vlgmr.msra.gmra.mxu0 %vm160_vm2, %v1020_v51  ;;  %4225 = vmatmul.mubr.msk.bf16.vlgmr.msra.gmra.mxu1 %vm160_vm2, %v1020_v51 }
 0x40b   :  { %4229 = vmatpush3.bf16.msra.mxu0 %v4934_v11  ;;  %4232 = vmatprep.mubr.msk.bf16.mxu0 %vm4816_vm1, %v4815_v5 }
 0x40c   :  { %4230 = vmatprep.subr.bf16.mxu0 %v4815_v5  ;;  %4237 = vmatpush3.bf16.msra.mxu1 %v4894_v4 }
 0x40d   :  { %4238 = vmatprep.subr.bf16.mxu1 %v4815_v5  ;;  %4240 = vmatprep.mubr.msk.bf16.mxu1 %vm4816_vm1, %v4815_v5 }
 0x40f   :  { %4231 = vmatpush3.bf16.msra.mxu0 %v4952_v14 }
 0x410   :  { %4244 = vmatprep.subr.bf16.mxu0 %v4815_v5  ;;  %4239 = vmatpush3.bf16.msra.mxu1 %v4907_v7 }
 0x411   :  { %4252 = vmatprep.subr.bf16.mxu1 %v4815_v5 }
 0x412   :  { %4233 = vmatmul.mubr.msk.bf16.vlgmr.msra.gmra.mxu0 %vm160_vm2, %v1020_v51 }
 0x413   :  { %4245 = vmatpush3.bf16.msra.mxu0 %v4929_v10  ;;  %4248 = vmatprep.mubr.msk.bf16.mxu0 %vm4816_vm1, %v4815_v5 }
 0x414   :  { %4246 = vmatprep.subr.bf16.mxu0 %v4815_v5 }
 0x417   :  { %4247 = vmatpush3.bf16.msra.mxu0 %v4941_v13 }
 0x418   :  { %4260 = vmatprep.subr.bf16.mxu0 %v4815_v5 }
 0x4ca   :  { %v1058_v52 = vpop.f32.mrf.mxu0  ;;  %v1098_v53 = vpop.f32.mrf.mxu1 }
 0x4cb   :  { %v1059_v54 = vadd.f32 %v4996_v45, %v1058_v52  ;;  %v1099_v62 = vadd.f32 %v5011_v63, %v1098_v53 }
 0x4cc   :  { %v4218_v56 = vpop.f32.mrf.mxu0  ;;  %v4226_v57 = vpop.f32.mrf.mxu1 }
 0x4cd   :  { %v1144_v58 = vadd.f32 %v1059_v54, %v1017_v55  ;;  %v1151_v6 = vadd.f32 %v1099_v62, %v1018_v2  ;;  %v1168_v62 = vld [vmem:[#allocation4 + $0x28] sm:$0xff] }
 0x4ce   :  { %v1061_v59 = vpop.f32.mrf.mxu0  ;;  %v1101_v60 = vpop.f32.mrf.mxu1 }
 0x4cf   :  { %v3728_v61 = vmul.f32 -1.442695, %v1144_v58  ;;  %v3729_v15 = vmul.f32 -1.442695, %v1151_v6 }
 0x4d0   :  { %v4219_v0 = vpop.f32.mrf.mxu0  ;;  %v4227_v1 = vpop.f32.mrf.mxu1 }
 0x4d1   :  { %4684 = vpow2.f32 %v3728_v61 }
 0x4d2   :  { %v1138_v3 = vpop.f32.mrf.mxu0  ;;  %4686 = vpow2.f32 %v3729_v15 }
 0x4d3   :  { %v1139_v21 = vadd.f32 %v5024_v35, %v1138_v3 }
 0x4d4   :  { %v4234_v8 = vpop.f32.mrf.mxu0 }
 0x4d6   :  { %v1141_v9 = vpop.f32.mrf.mxu0 }
 0x4d8   :  { %v4235_v16 = vpop.f32.mrf.mxu0 }
 0x4d9   :  { %v1315_v16 = vld [vmem:[#allocation2 + $0x30] sm:$0xff] }
 0x4de   :  { %v4685_v17 = vpop.eup %4684 }
 0x4df   :  { %v1148_v18 = vadd.f32 1.0, %v4685_v17  ;;  %v4687_v19 = vpop.eup %4686 }
 0x4e0   :  { %v1155_v20 = vadd.f32 1.0, %v4687_v19 }
 0x4e1   :  { %4688 = vrcp.f32 %v1148_v18 }
 0x4e2   :  { %4690 = vrcp.f32 %v1155_v20 }
 0x4ee   :  { %v4689_v22 = vpop.eup %4688 }
 0x4ef   :  { %v1158_v23 = vmul.f32 %v4689_v22, %v1139_v21  ;;  %v4691_v26 = vpop.eup %4690 }
 0x4f0   :  { %v1161_v27 = vsub.f32 1.0, %v4691_v26  ;;  %v1163_v30 = vmul.f32 %v4691_v26, %v1015_v50 }
 0x4f1   :  { %v1159_v25 = vadd.f32 %v1158_v23, %v1019_v24  ;;  %v1316_v24 = vld [vmem:[#allocation3 + $0x30] sm:$0xff] }
 0x4f3   :  { %4692 = vtanh.f32 %v1159_v25 }
 0x500   :  { %v4693_v28 = vpop.eup %4692 }
 0x501   :  { %v1162_v29 = vmul.f32 %v4693_v28, %v1161_v27 }
 0x503   :  { %v1164_v31 = vadd.f32 %v1163_v30, %v1162_v29 }
 0x505   :  { %1165 = vst.msk [vmem:[#allocation5 + $0x20] sm:$0xff] %vm160_vm2, %v1164_v31  ;;  %v1169_v32 = vpack.c.bf16 %v1164_v31, %v1164_v31 }
 0x507   :  { %4241 = vmatmul.mubr.msk.bf16.vlgmr.msra.gmra.mxu1 %vm160_vm2, %v1169_v32  ;;  %4249 = vmatmul.mubr.msk.bf16.vlgmr.msra.gmra.mxu0 %vm160_vm2, %v1169_v32 }
 0x508   :  { %4253 = vmatpush3.bf16.msra.mxu1 %v4934_v11  ;;  %4256 = vmatprep.mubr.msk.bf16.mxu1 %vm4816_vm1, %v4815_v5 }
 0x509   :  { %4254 = vmatprep.subr.bf16.mxu1 %v4815_v5  ;;  %4261 = vmatpush3.bf16.msra.mxu0 %v4894_v4 }
 0x50a   :  { %4262 = vmatprep.subr.bf16.mxu0 %v4815_v5  ;;  %4264 = vmatprep.mubr.msk.bf16.mxu0 %vm4816_vm1, %v4815_v5 }
 0x50c   :  { %4255 = vmatpush3.bf16.msra.mxu1 %v4952_v14 }
 0x50d   :  { %4268 = vmatprep.subr.bf16.mxu1 %v4815_v5  ;;  %4263 = vmatpush3.bf16.msra.mxu0 %v4907_v7 }
 0x50e   :  { %4276 = vmatprep.subr.bf16.mxu0 %v4815_v5 }
 0x50f   :  { %4257 = vmatmul.mubr.msk.bf16.vlgmr.msra.gmra.mxu1 %vm160_vm2, %v1169_v32 }
 0x510   :  { %4269 = vmatpush3.bf16.msra.mxu1 %v4929_v10  ;;  %4272 = vmatprep.mubr.msk.bf16.mxu1 %vm4816_vm1, %v4815_v5 }
 0x511   :  { %4270 = vmatprep.subr.bf16.mxu1 %v4815_v5 }
 0x514   :  { %4271 = vmatpush3.bf16.msra.mxu1 %v4941_v13 }
 0x515   :  { %4284 = vmatprep.subr.bf16.mxu1 %v4815_v5 }
 0x5c7   :  { %v1207_v33 = vpop.f32.mrf.mxu1  ;;  %v1247_v34 = vpop.f32.mrf.mxu0 }
 0x5c8   :  { %v1208_v36 = vadd.f32 %v4996_v45, %v1207_v33  ;;  %v1248_v44 = vadd.f32 %v5011_v63, %v1247_v34 }
 0x5c9   :  { %v4242_v38 = vpop.f32.mrf.mxu1  ;;  %v4250_v39 = vpop.f32.mrf.mxu0 }
 0x5ca   :  { %v1293_v40 = vadd.f32 %v1208_v36, %v1166_v37  ;;  %v1300_v50 = vadd.f32 %v1248_v44, %v1167_v48  ;;  %v1317_v38 = vld [vmem:[#allocation4 + $0x30] sm:$0xff] }
 0x5cb   :  { %v1210_v41 = vpop.f32.mrf.mxu1  ;;  %v1250_v42 = vpop.f32.mrf.mxu0 }
 0x5cc   :  { %v3733_v43 = vmul.f32 -1.442695, %v1293_v40  ;;  %v3734_v53 = vmul.f32 -1.442695, %v1300_v50  ;;  %v4617_v50 = vld [vmem:[%s5722_s5] sm:$0xff]  }
 0x5cd   :  { %v4243_v46 = vpop.f32.mrf.mxu1  ;;  %v4251_v47 = vpop.f32.mrf.mxu0 }
 0x5ce   :  { %4694 = vpow2.f32 %v3733_v43  ;;  %v1614_v47 = vld [vmem:[#allocation5 + $0x8] sm:$0xff] }
 0x5cf   :  { %v1287_v49 = vpop.f32.mrf.mxu1  ;;  %4696 = vpow2.f32 %v3734_v53  ;;  %v4618_v53 = vld [vmem:[%s5722_s5 + $0x18] sm:$0xff]  }
 0x5d0   :  { %v1288_v59 = vadd.f32 %v5024_v35, %v1287_v49  ;;  %v1613_v49 = vld [vmem:[#allocation5] sm:$0xff] }
 0x5d1   :  { %v4258_v51 = vpop.f32.mrf.mxu1 }
 0x5d2   :  { %v5190_v51 = vpack.c.bf16 %v1614_v47, %v1613_v49 }
 0x5d3   :  { %v1290_v52 = vpop.f32.mrf.mxu1 }
 0x5d4   :  { %v4804_v52 = vld [vmem:[%s5719_s2 + $0x28] sm:$0xff]  }
 0x5d5   :  { %v4259_v54 = vpop.f32.mrf.mxu1 }
 0x5d6   :  { %v1616_v54 = vld [vmem:[#allocation5 + $0x18] sm:$0xff] }
 0x5db   :  { %v4695_v55 = vpop.eup %4694 }
 0x5dc   :  { %v1297_v56 = vadd.f32 1.0, %v4695_v55  ;;  %v4697_v57 = vpop.eup %4696 }
 0x5dd   :  { %v1304_v58 = vadd.f32 1.0, %v4697_v57  ;;  %v1615_v57 = vld [vmem:[#allocation5 + $0x10] sm:$0xff] }
 0x5de   :  { %4698 = vrcp.f32 %v1297_v56  ;;  %v4805_v56 = vld [vmem:[%s5719_s2 + $0x20] sm:$0xff]  }
 0x5df   :  { %4700 = vrcp.f32 %v1304_v58  ;;  %v5206_v58 = vpack.c.bf16 %v1616_v54, %v1615_v57 }
 0x5eb   :  { %v4699_v60 = vpop.eup %4698 }
 0x5ec   :  { %v1307_v61 = vmul.f32 %v4699_v60, %v1288_v59  ;;  %v4701_v1 = vpop.eup %4700  ;;  %v1617_v59 = vld [vmem:[#allocation5 + $0x20] sm:$0xff]  ;;  %v4619_v60 = vld [vmem:[%s5722_s5 + $0x10] sm:$0xff]  }
 0x5ed   :  { %v1310_v2 = vsub.f32 1.0, %v4701_v1  ;;  %v1312_v8 = vmul.f32 %v4701_v1, %v1164_v31  ;;  %v5238_v1 = vld [vmem:[%s5723_s6] sm:$0xff]  }
 0x5ee   :  { %v1308_v0 = vadd.f32 %v1307_v61, %v1168_v62  ;;  %v5228_v62 = vld [vmem:[%s5723_s6 + $0x8] sm:$0xff]  }
 0x5f0   :  { %4702 = vtanh.f32 %v1308_v0  ;;  %v4621_v0 = vld [vmem:[%s5722_s5 + $0x28] sm:$0xff]  }
 0x5fd   :  { %v4703_v3 = vpop.eup %4702 }
 0x5fe   :  { %v1311_v6 = vmul.f32 %v4703_v3, %v1310_v2  ;;  %v4623_v2 = vld [vmem:[%s5722_s5 + $0x20] sm:$0xff]  }
 0x600   :  { %v1313_v9 = vadd.f32 %v1312_v8, %v1311_v6  ;;  %v4806_v8 = vld [vmem:[%s5721_s4] ss:$0 sm:$0xff] }
 0x602   :  { %1314 = vst.msk [vmem:[#allocation5 + $0x28] sm:$0xff] %vm160_vm2, %v1313_v9  ;;  %v1318_v15 = vpack.c.bf16 %v1313_v9, %v1313_v9 }
 0x604   :  { %4265 = vmatmul.mubr.msk.bf16.vlgmr.msra.gmra.mxu0 %vm160_vm2, %v1318_v15  ;;  %4273 = vmatmul.mubr.msk.bf16.vlgmr.msra.gmra.mxu1 %vm160_vm2, %v1318_v15 }
 0x605   :  { %4277 = vmatpush3.bf16.msra.mxu0 %v4934_v11  ;;  %4280 = vmatprep.mubr.msk.bf16.mxu0 %vm4816_vm1, %v4815_v5 }
 0x606   :  { %4278 = vmatprep.subr.bf16.mxu0 %v4815_v5  ;;  %4285 = vmatpush3.bf16.msra.mxu1 %v4894_v4  ;;  %v4616_v4 = vld [vmem:[%s5722_s5 + $0x8] sm:$0xff]  }
 0x607   :  { %4286 = vmatprep.subr.bf16.mxu1 %v4815_v5  ;;  %4288 = vmatprep.mubr.msk.bf16.mxu1 %vm4816_vm1, %v4815_v5 }
 0x609   :  { %4279 = vmatpush3.bf16.msra.mxu0 %v4952_v14  ;;  %v1618_v55 = vld [vmem:[#allocation5 + $0x28] sm:$0xff] }
 0x60a   :  { %4292 = vmatprep.subr.bf16.mxu0 %v4815_v5  ;;  %4287 = vmatpush3.bf16.msra.mxu1 %v4907_v7  ;;  %v5211_v61 = vpack.c.bf16 %v1618_v55, %v1617_v59 }
 0x60b   :  { %4300 = vmatprep.subr.bf16.mxu1 %v4815_v5 }
 0x60c   :  { %4281 = vmatmul.mubr.msk.bf16.vlgmr.msra.gmra.mxu0 %vm160_vm2, %v1318_v15  ;;  %v1464_v15 = vld [vmem:[#allocation2 + $0x38] sm:$0xff] }
 0x60d   :  { %4293 = vmatpush3.bf16.msra.mxu0 %v4929_v10  ;;  %4296 = vmatprep.mubr.msk.bf16.mxu0 %vm4816_vm1, %v4815_v5 }
 0x60e   :  { %4294 = vmatprep.subr.bf16.mxu0 %v4815_v5 }
 0x611   :  { %4295 = vmatpush3.bf16.msra.mxu0 %v4941_v13 }
 0x612   :  { %4308 = vmatprep.subr.bf16.mxu0 %v4616_v4 }
 0x6c4   :  { %v1356_v11 = vpop.f32.mrf.mxu0  ;;  %v1396_v7 = vpop.f32.mrf.mxu1 }
 0x6c5   :  { %v1357_v14 = vadd.f32 %v4996_v45, %v1356_v11  ;;  %v1397_v22 = vadd.f32 %v5011_v63, %v1396_v7 }
 0x6c6   :  { %v4266_v17 = vpop.f32.mrf.mxu0  ;;  %v4274_v18 = vpop.f32.mrf.mxu1 }
 0x6c7   :  { %v1442_v10 = vadd.f32 %v1357_v14, %v1315_v16  ;;  %v1449_v26 = vadd.f32 %v1397_v22, %v1316_v24 }
 0x6c8   :  { %v1359_v19 = vpop.f32.mrf.mxu0  ;;  %v1399_v20 = vpop.f32.mrf.mxu1 }
 0x6c9   :  { %v3738_v21 = vmul.f32 -1.442695, %v1442_v10  ;;  %v3739_v29 = vmul.f32 -1.442695, %v1449_v26  ;;  %v5253_v20 = vld [vmem:[%s5724_s7] ss:$0 sm:$0xff] }
 0x6ca   :  { %v4267_v23 = vpop.f32.mrf.mxu0  ;;  %v4275_v13 = vpop.f32.mrf.mxu1 }
 0x6cb   :  { %4704 = vpow2.f32 %v3738_v21  ;;  %v1465_v21 = vld [vmem:[#allocation3 + $0x38] sm:$0xff] }
 0x6cc   :  { %v1436_v25 = vpop.f32.mrf.mxu0  ;;  %4706 = vpow2.f32 %v3739_v29 }
 0x6cd   :  { %v1437_v34 = vadd.f32 %v5024_v35, %v1436_v25 }
 0x6ce   :  { %v4282_v27 = vpop.f32.mrf.mxu0 }
 0x6d0   :  { %v1439_v28 = vpop.f32.mrf.mxu0 }
 0x6d2   :  { %v4283_v30 = vpop.f32.mrf.mxu0 }
 0x6d8   :  { %v4705_v45 = vpop.eup %4704 }
 0x6d9   :  { %v1446_v31 = vadd.f32 1.0, %v4705_v45  ;;  %v4707_v32 = vpop.eup %4706 }
 0x6da   :  { %v1453_v33 = vadd.f32 1.0, %v4707_v32  ;;  %v5263_v32 = vld [vmem:[%s5724_s7 + $0x1] ss:$0 sm:$0xff] }
 0x6db   :  { %4708 = vrcp.f32 %v1446_v31 }
 0x6dc   :  { %4710 = vrcp.f32 %v1453_v33 }
 0x6e8   :  { %v4709_v36 = vpop.eup %4708 }
 0x6e9   :  { %v1456_v37 = vmul.f32 %v4709_v36, %v1437_v34  ;;  %v4711_v40 = vpop.eup %4710 }
 0x6ea   :  { %v1459_v41 = vsub.f32 1.0, %v4711_v40  ;;  %v1461_v44 = vmul.f32 %v4711_v40, %v1313_v9 }
 0x6eb   :  { %v1457_v39 = vadd.f32 %v1456_v37, %v1317_v38 }
 0x6ed   :  { %4712 = vtanh.f32 %v1457_v39 }
 0x6fa   :  { %v4713_v42 = vpop.eup %4712 }
 0x6fb   :  { %v1460_v43 = vmul.f32 %v4713_v42, %v1459_v41 }
 0x6fd   :  { %v5179_v46 = vadd.f32 %v1461_v44, %v1460_v43 }
 0x6ff   :  { %1463 = vst.msk [vmem:[#allocation5 + $0x30] sm:$0xff] %vm160_vm2, %v5179_v46  ;;  %v1467_v48 = vpack.c.bf16 %v5179_v46, %v5179_v46 }
 0x701   :  { %4289 = vmatmul.mubr.msk.bf16.vlgmr.msra.gmra.mxu1 %vm160_vm2, %v1467_v48  ;;  %4297 = vmatmul.mubr.msk.bf16.vlgmr.msra.gmra.mxu0 %vm160_vm2, %v1467_v48 }
 0x702   :  { %4301 = vmatpush3.bf16.msra.mxu1 %v4804_v52  ;;  %4309 = vmatpush3.bf16.msra.mxu0 %v4616_v4 }
 0x703   :  { %4312 = vmatprep.mubr.msk.bf16.mxu0 %vm160_vm2, %v5190_v51  ;;  %4302 = vmatprep.subr.bf16.mxu1 %v4815_v5 }
 0x704   :  { %4310 = vmatprep.subr.bf16.mxu0 %v4617_v50  ;;  %4304 = vmatprep.mubr.msk.bf16.mxu1 %vm4816_vm1, %v4815_v5 }
 0x706   :  { %4303 = vmatpush3.bf16.msra.mxu1 %v4805_v56  ;;  %4311 = vmatpush3.bf16.msra.mxu0 %v4617_v50 }
 0x707   :  { %4320 = vmatprep.subr.bf16.mxu1 %v4618_v53  ;;  %4332 = vmatprep.subr.bf16.mxu0 %v4621_v0 }
 0x709   :  { %4305 = vmatmul.mubr.msk.bf16.vlgmr.msra.gmra.mxu1 %vm160_vm2, %v1467_v48  ;;  %4313 = vmatmul.mubr.msk.bf16.vlgmr.msra.gmra.mxu0 %vm160_vm2, %v5206_v58 }
 0x70a   :  { %4316 = vmatprep.mubr.msk.bf16.mxu0 %vm160_vm2, %v5211_v61  ;;  %4321 = vmatpush3.bf16.msra.mxu1 %v4618_v53  ;;  %v1466_v53 = vld [vmem:[#allocation4 + $0x38] sm:$0xff] }
 0x70b   :  { %4324 = vmatprep.mubr.msk.bf16.mxu1 %vm160_vm2, %v5190_v51  ;;  %4322 = vmatprep.subr.bf16.mxu1 %v4619_v60 }
 0x70c   :  { %4333 = vmatpush3.bf16.msra.mxu0 %v4621_v0 }
 0x70d   :  { %4334 = vmatprep.subr.bf16.mxu0 %v4623_v2 }
 0x70e   :  { %4323 = vmatpush3.bf16.msra.mxu1 %v4619_v60 }
 0x70f   :  { %4344 = vmatprep.subr.bf16.mxu1 %v4815_v5 }
 0x710   :  { %4335 = vmatpush3.bf16.msra.mxu0 %v4623_v2  ;;  %v1619_v2 = vld [vmem:[#allocation5 + $0x30] sm:$0xff] }
 0x711   :  { %4325 = vmatmul.mubr.msk.bf16.vlgmr.msra.gmra.mxu1 %vm160_vm2, %v5206_v58  ;;  %4360 = vmatprep.subr.bf16.mxu0 %v4815_v5 }
 0x712   :  { %4328 = vmatprep.mubr.msk.bf16.mxu1 %vm160_vm2, %v5211_v61  ;;  %4345 = vmatpush3.bf16.msra.mxu1 %v5228_v62 }
 0x713   :  { %4346 = vmatprep.subr.bf16.mxu1 %v4815_v5 }
 0x716   :  { %4347 = vmatpush3.bf16.msra.mxu1 %v5238_v1 }
 0x717   :  { %4352 = vmatprep.subr.bf16.mxu1 %v4815_v5 }
 0x7c1   :  { %v1505_v3 = vpop.f32.mrf.mxu1  ;;  %v1545_v6 = vpop.f32.mrf.mxu0 }
 0x7c2   :  { %v1506_v9 = vadd.f32 %v4806_v8, %v1505_v3  ;;  %v1546_v18 = vadd.f32 %v5011_v63, %v1545_v6 }
 0x7c3   :  { %v4290_v4 = vpop.f32.mrf.mxu1  ;;  %v4298_v11 = vpop.f32.mrf.mxu0 }
 0x7c4   :  { %v1591_v7 = vadd.f32 %v1506_v9, %v1464_v15  ;;  %v1598_v13 = vadd.f32 %v1546_v18, %v1465_v21  ;;  %v3769_v21 = vld [vmem:[%s5724_s7 + $0x2] ss:$0 sm:$0xff] }
 0x7c5   :  { %v1508_v14 = vpop.f32.mrf.mxu1  ;;  %v1548_v16 = vpop.f32.mrf.mxu0 }
 0x7c6   :  { %v3743_v17 = vmul.f32 -1.442695, %v1591_v7  ;;  %v3744_v29 = vmul.f32 -1.442695, %v1598_v13 }
 0x7c7   :  { %v4291_v10 = vpop.f32.mrf.mxu1  ;;  %v4299_v19 = vpop.f32.mrf.mxu0 }
 0x7c8   :  { %4714 = vpow2.f32 %v3743_v17 }
 0x7c9   :  { %v1585_v22 = vpop.f32.mrf.mxu1  ;;  %v4314_v23 = vpop.f32.mrf.mxu0  ;;  %4716 = vpow2.f32 %v3744_v29 }
 0x7ca   :  { %v1703_v24 = vadd.f32 %v4314_v23, %v5253_v20  ;;  %v1586_v49 = vadd.f32 %v5024_v35, %v1585_v22  ;;  %v5288_v35 = vld [vmem:[%s5723_s6 + $0x18] sm:$0xff]   ;;  %v5353_v22 = vld [vmem:[%s5726_s8] ss:$0 sm:$0xff] }
 0x7cb   :  { %v4306_v25 = vpop.f32.mrf.mxu1  ;;  %v1694_v26 = vpop.f32.mrf.mxu0 }
 0x7cc   :  { %1727 = vst.msk [vmem:[#allocation2 + $0x10] sm:$0xff] %vm160_vm2, %v1703_v24  ;;  %v1695_v63 = vadd.f32 %v5253_v20, %v1694_v26 }
 0x7cd   :  { %v1588_v27 = vpop.f32.mrf.mxu1  ;;  %v4315_v28 = vpop.f32.mrf.mxu0 }
 0x7ce   :  { %1725 = vst.msk [vmem:[#allocation2] sm:$0xff] %vm160_vm2, %v1695_v63  ;;  %v1706_v30 = vadd.f32 %v4315_v28, %v5253_v20 }
 0x7cf   :  { %v4307_v45 = vpop.f32.mrf.mxu1  ;;  %v1697_v31 = vpop.f32.mrf.mxu0 }
 0x7d0   :  { %1728 = vst.msk [vmem:[#allocation2 + $0x18] sm:$0xff] %vm160_vm2, %v1706_v30  ;;  %v1698_v33 = vadd.f32 %v5253_v20, %v1697_v31 }
 0x7d1   :  { %v4326_v34 = vpop.f32.mrf.mxu1 }
 0x7d2   :  { %1726 = vst.msk [vmem:[#allocation2 + $0x8] sm:$0xff] %vm160_vm2, %v1698_v33  ;;  %v1801_v36 = vadd.f32 %v4326_v34, %v5263_v32 }
 0x7d3   :  { %v1792_v37 = vpop.f32.mrf.mxu1 }
 0x7d4   :  { %1825 = vst.msk [vmem:[#allocation3 + $0x10] sm:$0xff] %vm160_vm2, %v1801_v36  ;;  %v1793_v38 = vadd.f32 %v5263_v32, %v1792_v37  ;;  %v5367_v37 = vld [vmem:[%s5726_s8 + $0x1] ss:$0 sm:$0xff] }
 0x7d5   :  { %v4715_v39 = vpop.eup %4714  ;;  %v4327_v40 = vpop.f32.mrf.mxu1  ;;  %v1948_v27 = vld [vmem:[#allocation2] sm:$0xff] }
 0x7d6   :  { %v1595_v41 = vadd.f32 1.0, %v4715_v39  ;;  %1823 = vst.msk [vmem:[#allocation3] sm:$0xff] %vm160_vm2, %v1793_v38  ;;  %v1804_v42 = vadd.f32 %v4327_v40, %v5263_v32  ;;  %v4717_v47 = vpop.eup %4716 }
 0x7d7   :  { %v1795_v43 = vpop.f32.mrf.mxu1  ;;  %v1602_v48 = vadd.f32 1.0, %v4717_v47 }
 0x7d8   :  { %4718 = vrcp.f32 %v1595_v41  ;;  %1826 = vst.msk [vmem:[#allocation3 + $0x18] sm:$0xff] %vm160_vm2, %v1804_v42  ;;  %v1796_v44 = vadd.f32 %v5263_v32, %v1795_v43 }
 0x7d9   :  { %4720 = vrcp.f32 %v1602_v48 }
 0x7da   :  { %1824 = vst.msk [vmem:[#allocation3 + $0x8] sm:$0xff] %vm160_vm2, %v1796_v44 }
 0x7dd   :  { %v1949_v43 = vld [vmem:[#allocation3] sm:$0xff] }
 0x7e5   :  { %v4719_v50 = vpop.eup %4718 }
 0x7e6   :  { %v1605_v52 = vmul.f32 %v4719_v50, %v1586_v49  ;;  %v4721_v55 = vpop.eup %4720 }
 0x7e7   :  { %v1608_v56 = vsub.f32 1.0, %v4721_v55  ;;  %v1610_v59 = vmul.f32 %v4721_v55, %v5179_v46  ;;  %v5293_v46 = vld [vmem:[%s5723_s6 + $0x28] sm:$0xff]  }
 0x7e8   :  { %v1606_v54 = vadd.f32 %v1605_v52, %v1466_v53 }
 0x7ea   :  { %4722 = vtanh.f32 %v1606_v54 }
 0x7f7   :  { %v4723_v57 = vpop.eup %4722 }
 0x7f8   :  { %v1609_v60 = vmul.f32 %v4723_v57, %v1608_v56 }
 0x7fa   :  { %v1611_v0 = vadd.f32 %v1610_v59, %v1609_v60 }
 0x7fc   :  { %1612 = vst.msk [vmem:[#allocation5 + $0x38] sm:$0xff] %vm160_vm2, %v1611_v0 }
 0x803   :  { %v1620_v3 = vld [vmem:[#allocation5 + $0x38] sm:$0xff] }
 0x804   :  { %v1624_v6 = vpack.c.bf16 %v1620_v3, %v1619_v2 }
 0x806   :  { %4317 = vmatmul.mubr.msk.bf16.gmra.mxu0 %vm160_vm2, %v1624_v6  ;;  %4329 = vmatmul.mubr.msk.bf16.gmra.mxu1 %vm160_vm2, %v1624_v6 }
 0x807   :  { %4336 = vmatprep.mubr.msk.bf16.mxu0 %vm160_vm2, %v5190_v51  ;;  %4348 = vmatprep.mubr.msk.bf16.mxu1 %vm4816_vm1, %v4815_v5  ;;  %v5304_v51 = vld [vmem:[%s5723_s6 + $0x10] sm:$0xff]  }
 0x80e   :  { %4337 = vmatmul.mubr.msk.bf16.vlgmr.msra.gmra.mxu0 %vm160_vm2, %v5206_v58  ;;  %4349 = vmatmul.mubr.bf16.vlgmr.msra.gmra.mxu1 %v4817_v12  ;;  %v5313_v58 = vld [vmem:[%s5723_s6 + $0x20] sm:$0xff]  }
 0x80f   :  { %4340 = vmatprep.mubr.msk.bf16.mxu0 %vm160_vm2, %v5211_v61  ;;  %4353 = vmatpush3.bf16.msra.mxu1 %v5288_v35 }
 0x810   :  { %4354 = vmatprep.subr.bf16.mxu1 %v4815_v5  ;;  %4356 = vmatprep.mubr.msk.bf16.mxu1 %vm4816_vm1, %v4815_v5 }
 0x811   :  { %4361 = vmatpush3.bf16.msra.mxu0 %v5293_v46 }
 0x812   :  { %4362 = vmatprep.subr.bf16.mxu0 %v4815_v5 }
 0x813   :  { %4355 = vmatpush3.bf16.msra.mxu1 %v5304_v51 }
 0x814   :  { %4368 = vmatprep.subr.bf16.mxu1 %v4815_v5 }
 0x815   :  { %4363 = vmatpush3.bf16.msra.mxu0 %v5313_v58 }
 0x816   :  { %4341 = vmatmul.mubr.msk.bf16.gmra.mxu0 %vm160_vm2, %v1624_v6  ;;  %4357 = vmatmul.mubr.bf16.vlgmr.msra.gmra.mxu1 %v4817_v12 }
 0x817   :  { %4364 = vmatprep.mubr.msk.bf16.mxu0 %vm4816_vm1, %v4815_v5  ;;  %4376 = vmatprep.subr.bf16.mxu0 %v4815_v5 }
 0x818   :  { %4369 = vmatpush3.bf16.msra.mxu1 %v5228_v62  ;;  %4372 = vmatprep.mubr.msk.bf16.mxu1 %vm4816_vm1, %v4815_v5 }
 0x819   :  { %4370 = vmatprep.subr.bf16.mxu1 %v4815_v5 }
 0x81c   :  { %4371 = vmatpush3.bf16.msra.mxu1 %v5238_v1 }
 0x81d   :  { %4384 = vmatprep.subr.bf16.mxu1 %v4815_v5 }
 0x81e   :  { %4365 = vmatmul.mubr.bf16.vlgmr.msra.gmra.mxu0 %v4817_v12 }
 0x81f   :  { %4377 = vmatpush3.bf16.msra.mxu0 %v5288_v35  ;;  %4380 = vmatprep.mubr.msk.bf16.mxu0 %vm4816_vm1, %v4815_v5 }
 0x820   :  { %4378 = vmatprep.subr.bf16.mxu0 %v4815_v5 }
 0x823   :  { %4379 = vmatpush3.bf16.msra.mxu0 %v5304_v51 }
 0x824   :  { %4392 = vmatprep.subr.bf16.mxu0 %v4815_v5 }
 0x8c6   :  { %v4318_v61 = vpop.f32.mrf.mxu0  ;;  %v4330_v8 = vpop.f32.mrf.mxu1 }
 0x8c7   :  { %v1719_v9 = vadd.f32 %v4318_v61, %v5253_v20  ;;  %v1817_v15 = vadd.f32 %v4330_v8, %v5263_v32  ;;  %v5379_v8 = vld [vmem:[%s5726_s8 + $0x2] ss:$0 sm:$0xff] }
 0x8c8   :  { %v1710_v4 = vpop.f32.mrf.mxu0  ;;  %v1808_v11 = vpop.f32.mrf.mxu1 }
 0x8c9   :  { %1731 = vst.msk [vmem:[#allocation2 + $0x30] sm:$0xff] %vm160_vm2, %v1719_v9  ;;  %1829 = vst.msk [vmem:[#allocation3 + $0x30] sm:$0xff] %vm160_vm2, %v1817_v15  ;;  %v1711_v12 = vadd.f32 %v5253_v20, %v1710_v4  ;;  %v1809_v7 = vadd.f32 %v5263_v32, %v1808_v11 }
 0x8ca   :  { %v4319_v14 = vpop.f32.mrf.mxu0  ;;  %v4331_v16 = vpop.f32.mrf.mxu1 }
 0x8cb   :  { %1729 = vst.msk [vmem:[#allocation2 + $0x20] sm:$0xff] %vm160_vm2, %v1711_v12  ;;  %1827 = vst.msk [vmem:[#allocation3 + $0x20] sm:$0xff] %vm160_vm2, %v1809_v7  ;;  %v1722_v17 = vadd.f32 %v4319_v14, %v5253_v20  ;;  %v1820_v18 = vadd.f32 %v4331_v16, %v5263_v32 }
 0x8cc   :  { %v1713_v10 = vpop.f32.mrf.mxu0  ;;  %v1811_v19 = vpop.f32.mrf.mxu1 }
 0x8cd   :  { %1732 = vst.msk [vmem:[#allocation2 + $0x38] sm:$0xff] %vm160_vm2, %v1722_v17  ;;  %1830 = vst.msk [vmem:[#allocation3 + $0x38] sm:$0xff] %vm160_vm2, %v1820_v18  ;;  %v1714_v23 = vadd.f32 %v5253_v20, %v1713_v10  ;;  %v1812_v13 = vadd.f32 %v5263_v32, %v1811_v19 }
 0x8ce   :  { %v4338_v24 = vpop.f32.mrf.mxu0  ;;  %v2003_v25 = vpop.f32.mrf.mxu1 }
 0x8cf   :  { %1730 = vst.msk [vmem:[#allocation2 + $0x28] sm:$0xff] %vm160_vm2, %v1714_v23  ;;  %1828 = vst.msk [vmem:[#allocation3 + $0x28] sm:$0xff] %vm160_vm2, %v1812_v13  ;;  %v1899_v26 = vadd.f32 %v4338_v24, %v3769_v21  ;;  %v2004_v63 = vadd.f32 %v5353_v22, %v2003_v25  ;;  %v4628_v23 = vld [vmem:[%s5725_s9 + $0x8] sm:$0xff]   ;;  %v4629_v13 = vld [vmem:[%s5725_s9] sm:$0xff]  }
 0x8d0   :  { %v1890_v28 = vpop.f32.mrf.mxu0  ;;  %v4350_v29 = vpop.f32.mrf.mxu1  ;;  %v4630_v24 = vld [vmem:[%s5725_s9 + $0x18] sm:$0xff]   ;;  %v4631_v25 = vld [vmem:[%s5725_s9 + $0x10] sm:$0xff]  }
 0x8d1   :  { %1923 = vst.msk [vmem:[#allocation4 + $0x10] sm:$0xff] %vm160_vm2, %v1899_v26  ;;  %v2125_v30 = vadd.f32 %v2004_v63, %v1948_v27  ;;  %v1891_v45 = vadd.f32 %v3769_v21, %v1890_v28  ;;  %v2151_v28 = vld [vmem:[#allocation2 + $0x8] sm:$0xff] }
 0x8d2   :  { %v4339_v31 = vpop.f32.mrf.mxu0  ;;  %v2006_v20 = vpop.f32.mrf.mxu1 }
 0x8d3   :  { %v3795_v33 = vmul.f32 -1.442695, %v2125_v30  ;;  %1921 = vst.msk [vmem:[#allocation4] sm:$0xff] %vm160_vm2, %v1891_v45  ;;  %v1902_v32 = vadd.f32 %v4339_v31, %v3769_v21 }
 0x8d4   :  { %v1893_v34 = vpop.f32.mrf.mxu0  ;;  %v4351_v36 = vpop.f32.mrf.mxu1 }
 0x8d5   :  { %4724 = vpow2.f32 %v3795_v33  ;;  %1924 = vst.msk [vmem:[#allocation4 + $0x18] sm:$0xff] %vm160_vm2, %v1902_v32  ;;  %v1894_v38 = vadd.f32 %v3769_v21, %v1893_v34 }
 0x8d6   :  { %v4342_v39 = vpop.f32.mrf.mxu0  ;;  %v2061_v40 = vpop.f32.mrf.mxu1 }
 0x8d7   :  { %1922 = vst.msk [vmem:[#allocation4 + $0x8] sm:$0xff] %vm160_vm2, %v1894_v38  ;;  %v1915_v41 = vadd.f32 %v4342_v39, %v3769_v21  ;;  %v2062_v42 = vadd.f32 %v5367_v37, %v2061_v40  ;;  %v2152_v38 = vld [vmem:[#allocation3 + $0x8] sm:$0xff] }
 0x8d8   :  { %v1906_v44 = vpop.f32.mrf.mxu0  ;;  %v4358_v47 = vpop.f32.mrf.mxu1 }
 0x8d9   :  { %1927 = vst.msk [vmem:[#allocation4 + $0x30] sm:$0xff] %vm160_vm2, %v1915_v41  ;;  %v2132_v48 = vadd.f32 %v2062_v42, %v1949_v43  ;;  %v1907_v49 = vadd.f32 %v3769_v21, %v1906_v44 }
 0x8da   :  { %v4343_v50 = vpop.f32.mrf.mxu0  ;;  %v2064_v52 = vpop.f32.mrf.mxu1  ;;  %v1950_v12 = vld [vmem:[#allocation4] sm:$0xff] }
 0x8db   :  { %v3796_v53 = vmul.f32 -1.442695, %v2132_v48  ;;  %1925 = vst.msk [vmem:[#allocation4 + $0x20] sm:$0xff] %vm160_vm2, %v1907_v49  ;;  %v1918_v54 = vadd.f32 %v4343_v50, %v3769_v21 }
 0x8dc   :  { %v1909_v55 = vpop.f32.mrf.mxu0  ;;  %v4359_v56 = vpop.f32.mrf.mxu1 }
 0x8dd   :  { %1928 = vst.msk [vmem:[#allocation4 + $0x38] sm:$0xff] %vm160_vm2, %v1918_v54  ;;  %v1910_v57 = vadd.f32 %v3769_v21, %v1909_v55  ;;  %4726 = vpow2.f32 %v3796_v53 }
 0x8de   :  { %v2119_v59 = vpop.f32.mrf.mxu0 }
 0x8df   :  { %1926 = vst.msk [vmem:[#allocation4 + $0x28] sm:$0xff] %vm160_vm2, %v1910_v57  ;;  %v2120_v15 = vadd.f32 %v5379_v8, %v2119_v59 }
 0x8e0   :  { %v4366_v60 = vpop.f32.mrf.mxu0 }
 0x8e1   :  { %v2153_v60 = vld [vmem:[#allocation4 + $0x8] sm:$0xff] }
 0x8e2   :  { %v4725_v0 = vpop.eup %4724  ;;  %v2122_v2 = vpop.f32.mrf.mxu0 }
 0x8e3   :  { %v2129_v3 = vadd.f32 1.0, %v4725_v0 }
 0x8e4   :  { %v4367_v6 = vpop.f32.mrf.mxu0 }
 0x8e5   :  { %4728 = vrcp.f32 %v2129_v3 }
 0x8ea   :  { %v4727_v61 = vpop.eup %4726 }
 0x8eb   :  { %v2136_v9 = vadd.f32 1.0, %v4727_v61 }
 0x8ed   :  { %4730 = vrcp.f32 %v2136_v9 }
 0x8f2   :  { %v4729_v4 = vpop.eup %4728 }
 0x8f3   :  { %v2139_v11 = vmul.f32 %v4729_v4, %v2120_v15 }
 0x8f5   :  { %v2140_v7 = vadd.f32 %v2139_v11, %v1950_v12  ;;  %v4632_v11 = vld [vmem:[%s5725_s9 + $0x28] sm:$0xff]   ;;  %v4633_v12 = vld [vmem:[%s5725_s9 + $0x20] sm:$0xff]  }
 0x8f7   :  { %4732 = vtanh.f32 %v2140_v7 }
 0x8fa   :  { %v4731_v14 = vpop.eup %4730 }
 0x8fb   :  { %v2142_v16 = vsub.f32 1.0, %v4731_v14  ;;  %v2144_v10 = vmul.f32 0.0, %v4731_v14 }
 0x904   :  { %v4733_v17 = vpop.eup %4732 }
 0x905   :  { %v2143_v18 = vmul.f32 %v4733_v17, %v2142_v16 }
 0x907   :  { %v5382_v19 = vadd.f32 %v2144_v10, %v2143_v18 }
 0x909   :  { %v2146_v21 = vpack.c.bf16 %v5382_v19, %v5382_v19 }
 0x90b   :  { %4373 = vmatmul.mubr.msk.bf16.vlgmr.msra.gmra.mxu1 %vm160_vm2, %v2146_v21  ;;  %4381 = vmatmul.mubr.msk.bf16.vlgmr.msra.gmra.mxu0 %vm160_vm2, %v2146_v21 }
 0x90c   :  { %4385 = vmatpush3.bf16.msra.mxu1 %v5293_v46  ;;  %4388 = vmatprep.mubr.msk.bf16.mxu1 %vm4816_vm1, %v4815_v5 }
 0x90d   :  { %4386 = vmatprep.subr.bf16.mxu1 %v4815_v5  ;;  %4396 = vmatprep.mubr.msk.bf16.mxu0 %vm4816_vm1, %v4815_v5 }
 0x90e   :  { %4393 = vmatpush3.bf16.msra.mxu0 %v4630_v24  ;;  %v2411_v24 = vld [vmem:[#allocation2 + $0x10] sm:$0xff] }
 0x90f   :  { %4394 = vmatprep.subr.bf16.mxu0 %v4815_v5 }
 0x910   :  { %4387 = vmatpush3.bf16.msra.mxu1 %v5313_v58 }
 0x911   :  { %4400 = vmatprep.subr.bf16.mxu1 %v4815_v5 }
 0x912   :  { %4395 = vmatpush3.bf16.msra.mxu0 %v4631_v25 }
 0x913   :  { %4389 = vmatmul.mubr.msk.bf16.vlgmr.msra.gmra.mxu1 %vm160_vm2, %v2146_v21  ;;  %4408 = vmatprep.subr.bf16.mxu0 %v4815_v5 }
 0x914   :  { %4401 = vmatpush3.bf16.msra.mxu1 %v4628_v23  ;;  %4404 = vmatprep.mubr.msk.bf16.mxu1 %vm4816_vm1, %v4815_v5 }
 0x915   :  { %4402 = vmatprep.subr.bf16.mxu1 %v4815_v5 }
 0x918   :  { %4403 = vmatpush3.bf16.msra.mxu1 %v4629_v13 }
 0x919   :  { %4416 = vmatprep.subr.bf16.mxu1 %v4815_v5 }
 0x91b   :  { %4405 = vmatmul.mubr.msk.bf16.vlgmr.msra.gmra.mxu1 %vm160_vm2, %v2146_v21 }
 0x91c   :  { %4417 = vmatpush3.bf16.msra.mxu1 %v5288_v35  ;;  %4420 = vmatprep.mubr.msk.bf16.mxu1 %vm4816_vm1, %v4815_v5 }
 0x91d   :  { %4418 = vmatprep.subr.bf16.mxu1 %v4815_v5 }
 0x920   :  { %4419 = vmatpush3.bf16.msra.mxu1 %v5304_v51 }
 0x921   :  { %4432 = vmatprep.subr.bf16.mxu1 %v4815_v5 }
 0x9cb   :  { %v2191_v26 = vpop.f32.mrf.mxu1  ;;  %v2231_v63 = vpop.f32.mrf.mxu0 }
 0x9cc   :  { %v2192_v27 = vadd.f32 %v5353_v22, %v2191_v26  ;;  %v2232_v32 = vadd.f32 %v5367_v37, %v2231_v63 }
 0x9cd   :  { %v4374_v29 = vpop.f32.mrf.mxu1  ;;  %v4382_v30 = vpop.f32.mrf.mxu0 }
 0x9ce   :  { %v2277_v45 = vadd.f32 %v2192_v27, %v2151_v28  ;;  %v2284_v40 = vadd.f32 %v2232_v32, %v2152_v38  ;;  %v2412_v30 = vld [vmem:[#allocation3 + $0x10] sm:$0xff] }
 0x9cf   :  { %v2194_v31 = vpop.f32.mrf.mxu1  ;;  %v2234_v20 = vpop.f32.mrf.mxu0 }
 0x9d0   :  { %v3800_v33 = vmul.f32 -1.442695, %v2277_v45  ;;  %v3801_v43 = vmul.f32 -1.442695, %v2284_v40 }
 0x9d1   :  { %v4375_v34 = vpop.f32.mrf.mxu1  ;;  %v4383_v36 = vpop.f32.mrf.mxu0 }
 0x9d2   :  { %4734 = vpow2.f32 %v3800_v33 }
 0x9d3   :  { %v2271_v39 = vpop.f32.mrf.mxu1  ;;  %4736 = vpow2.f32 %v3801_v43 }
 0x9d4   :  { %v2272_v56 = vadd.f32 %v5379_v8, %v2271_v39 }
 0x9d5   :  { %v4390_v41 = vpop.f32.mrf.mxu1 }
 0x9d7   :  { %v2274_v42 = vpop.f32.mrf.mxu1 }
 0x9d9   :  { %v4391_v44 = vpop.f32.mrf.mxu1 }
 0x9da   :  { %v2413_v44 = vld [vmem:[#allocation4 + $0x10] sm:$0xff] }
 0x9db   :  { %v5424_v47 = vpop.f32.mrf.mxu1 }
 0x9dd   :  { %v4406_v48 = vpop.f32.mrf.mxu1 }
 0x9df   :  { %v4735_v49 = vpop.eup %4734  ;;  %v2408_v50 = vpop.f32.mrf.mxu1 }
 0x9e0   :  { %v2281_v52 = vadd.f32 1.0, %v4735_v49  ;;  %v4737_v54 = vpop.eup %4736 }
 0x9e1   :  { %v4407_v53 = vpop.f32.mrf.mxu1  ;;  %v2288_v55 = vadd.f32 1.0, %v4737_v54 }
 0x9e2   :  { %4738 = vrcp.f32 %v2281_v52 }
 0x9e3   :  { %4740 = vrcp.f32 %v2288_v55 }
 0x9ef   :  { %v4739_v57 = vpop.eup %4738 }
 0x9f0   :  { %v2291_v59 = vmul.f32 %v4739_v57, %v2272_v56  ;;  %v4741_v2 = vpop.eup %4740  ;;  %v4634_v57 = vld [vmem:[%s5725_s9 + $0x38] sm:$0xff]  }
 0x9f1   :  { %v2294_v3 = vsub.f32 1.0, %v4741_v2  ;;  %v2296_v9 = vmul.f32 %v4741_v2, %v5382_v19 }
 0x9f2   :  { %v2292_v0 = vadd.f32 %v2291_v59, %v2153_v60  ;;  %v4635_v59 = vld [vmem:[%s5725_s9 + $0x30] sm:$0xff]  }
 0x9f4   :  { %4742 = vtanh.f32 %v2292_v0 }
 0xa01   :  { %v4743_v6 = vpop.eup %4742 }
 0xa02   :  { %v2295_v61 = vmul.f32 %v4743_v6, %v2294_v3 }
 0xa04   :  { %v5428_v15 = vadd.f32 %v2296_v9, %v2295_v61  ;;  %v2617_v61 = vld [vmem:[#allocation2 + $0x18] sm:$0xff] }
 0xa06   :  { %v2298_v4 = vpack.c.bf16 %v5428_v15, %v5428_v15 }
 0xa08   :  { %4397 = vmatmul.mubr.msk.bf16.vlgmr.msra.gmra.mxu0 %vm160_vm2, %v2298_v4  ;;  %4421 = vmatmul.mubr.msk.bf16.vlgmr.msra.gmra.mxu1 %vm160_vm2, %v2298_v4 }
 0xa09   :  { %4409 = vmatpush3.bf16.msra.mxu0 %v5228_v62  ;;  %4412 = vmatprep.mubr.msk.bf16.mxu0 %vm4816_vm1, %v4815_v5 }
 0xa0a   :  { %4410 = vmatprep.subr.bf16.mxu0 %v4815_v5  ;;  %4436 = vmatprep.mubr.msk.bf16.mxu1 %vm4816_vm1, %v4815_v5 }
 0xa0b   :  { %4433 = vmatpush3.bf16.msra.mxu1 %v4632_v11 }
 0xa0c   :  { %4434 = vmatprep.subr.bf16.mxu1 %v4815_v5 }
 0xa0d   :  { %4411 = vmatpush3.bf16.msra.mxu0 %v5238_v1 }
 0xa0e   :  { %4424 = vmatprep.subr.bf16.mxu0 %v4815_v5 }
 0xa0f   :  { %4435 = vmatpush3.bf16.msra.mxu1 %v4633_v12 }
 0xa10   :  { %4413 = vmatmul.mubr.msk.bf16.vlgmr.msra.gmra.mxu0 %vm160_vm2, %v2298_v4  ;;  %4448 = vmatprep.subr.bf16.mxu1 %v4815_v5 }
 0xa11   :  { %4425 = vmatpush3.bf16.msra.mxu0 %v5293_v46  ;;  %4428 = vmatprep.mubr.msk.bf16.mxu0 %vm4816_vm1, %v4815_v5 }
 0xa12   :  { %4426 = vmatprep.subr.bf16.mxu0 %v4815_v5 }
 0xa15   :  { %4427 = vmatpush3.bf16.msra.mxu0 %v5313_v58 }
 0xa16   :  { %4440 = vmatprep.subr.bf16.mxu0 %v4815_v5 }
 0xa18   :  { %4429 = vmatmul.mubr.msk.bf16.vlgmr.msra.gmra.mxu0 %vm160_vm2, %v2298_v4 }
 0xa19   :  { %4441 = vmatpush3.bf16.msra.mxu0 %v5228_v62  ;;  %4444 = vmatprep.mubr.msk.bf16.mxu0 %vm4816_vm1, %v4815_v5 }
 0xa1a   :  { %4442 = vmatprep.subr.bf16.mxu0 %v4815_v5 }
 0xa1d   :  { %4443 = vmatpush3.bf16.msra.mxu0 %v5238_v1 }
 0xa1e   :  { %4456 = vmatprep.subr.bf16.mxu0 %v4815_v5 }
 0xac8   :  { %v5464_v7 = vpop.f32.mrf.mxu0  ;;  %v2488_v14 = vpop.f32.mrf.mxu1 }
 0xac9   :  { %v2489_v27 = vadd.f32 %v5367_v37, %v2488_v14  ;;  %v2406_v60 = vadd.f32 %v5424_v47, %v5464_v7  ;;  %v2618_v7 = vld [vmem:[#allocation3 + $0x18] sm:$0xff] }
 0xaca   :  { %v4398_v16 = vpop.f32.mrf.mxu0  ;;  %v4422_v17 = vpop.f32.mrf.mxu1 }
 0xacb   :  { %v2541_v31 = vadd.f32 %v2489_v27, %v2412_v30 }
 0xacc   :  { %v2356_v18 = vpop.f32.mrf.mxu0  ;;  %v2491_v10 = vpop.f32.mrf.mxu1 }
 0xacd   :  { %v3816_v32 = vmul.f32 -1.442695, %v2541_v31 }
 0xace   :  { %v4399_v19 = vpop.f32.mrf.mxu0  ;;  %v4423_v21 = vpop.f32.mrf.mxu1 }
 0xad0   :  { %v2448_v23 = vpop.f32.mrf.mxu0 }
 0xad1   :  { %v2449_v13 = vadd.f32 %v5353_v22, %v2448_v23 }
 0xad2   :  { %v4414_v25 = vpop.f32.mrf.mxu0 }
 0xad3   :  { %v2534_v26 = vadd.f32 %v2449_v13, %v2411_v24 }
 0xad4   :  { %v2451_v63 = vpop.f32.mrf.mxu0 }
 0xad5   :  { %v3815_v28 = vmul.f32 -1.442695, %v2534_v26 }
 0xad6   :  { %v4415_v29 = vpop.f32.mrf.mxu0 }
 0xad7   :  { %4744 = vpow2.f32 %v3815_v28 }
 0xad8   :  { %v2528_v45 = vpop.f32.mrf.mxu0  ;;  %4746 = vpow2.f32 %v3816_v32 }
 0xad9   :  { %v2529_v41 = vadd.f32 %v5379_v8, %v2528_v45 }
 0xada   :  { %v4430_v20 = vpop.f32.mrf.mxu0 }
 0xadc   :  { %v2531_v33 = vpop.f32.mrf.mxu0 }
 0xadd   :  { %v2619_v33 = vld [vmem:[#allocation4 + $0x18] sm:$0xff] }
 0xade   :  { %v4431_v34 = vpop.f32.mrf.mxu0 }
 0xae4   :  { %v4745_v36 = vpop.eup %4744 }
 0xae5   :  { %v2538_v38 = vadd.f32 1.0, %v4745_v36  ;;  %v4747_v39 = vpop.eup %4746 }
 0xae6   :  { %v2545_v40 = vadd.f32 1.0, %v4747_v39 }
 0xae7   :  { %4748 = vrcp.f32 %v2538_v38 }
 0xae8   :  { %4750 = vrcp.f32 %v2545_v40 }
 0xaf4   :  { %v4749_v42 = vpop.eup %4748 }
 0xaf5   :  { %v2548_v43 = vmul.f32 %v4749_v42, %v2529_v41  ;;  %v4751_v49 = vpop.eup %4750 }
 0xaf6   :  { %v2551_v50 = vsub.f32 1.0, %v4751_v49  ;;  %v2553_v54 = vmul.f32 %v4751_v49, %v5428_v15 }
 0xaf7   :  { %v2549_v48 = vadd.f32 %v2548_v43, %v2413_v44  ;;  %v4636_v43 = vld [vmem:[%s5725_s9 + $0x48] sm:$0xff]  }
 0xaf9   :  { %4752 = vtanh.f32 %v2549_v48 }
 0xb06   :  { %v4753_v52 = vpop.eup %4752 }
 0xb07   :  { %v2552_v53 = vmul.f32 %v4753_v52, %v2551_v50  ;;  %v2823_v50 = vld [vmem:[#allocation2 + $0x20] sm:$0xff] }
 0xb09   :  { %v5470_v55 = vadd.f32 %v2553_v54, %v2552_v53 }
 0xb0b   :  { %v2555_v56 = vpack.c.bf16 %v5470_v55, %v5470_v55 }
 0xb0d   :  { %4437 = vmatmul.mubr.msk.bf16.vlgmr.msra.gmra.mxu1 %vm160_vm2, %v2555_v56  ;;  %4445 = vmatmul.mubr.msk.bf16.vlgmr.msra.gmra.mxu0 %vm160_vm2, %v2555_v56 }
 0xb0e   :  { %4449 = vmatpush3.bf16.msra.mxu1 %v5288_v35  ;;  %4457 = vmatpush3.bf16.msra.mxu0 %v5293_v46 }
 0xb0f   :  { %4450 = vmatprep.subr.bf16.mxu1 %v4815_v5  ;;  %4458 = vmatprep.subr.bf16.mxu0 %v4815_v5 }
 0xb10   :  { %4452 = vmatprep.mubr.msk.bf16.mxu1 %vm4816_vm1, %v4815_v5  ;;  %4460 = vmatprep.mubr.msk.bf16.mxu0 %vm4816_vm1, %v4815_v5 }
 0xb12   :  { %4451 = vmatpush3.bf16.msra.mxu1 %v5304_v51  ;;  %4459 = vmatpush3.bf16.msra.mxu0 %v5313_v58 }
 0xb13   :  { %4464 = vmatprep.subr.bf16.mxu1 %v4815_v5  ;;  %4472 = vmatprep.subr.bf16.mxu0 %v4815_v5 }
 0xb15   :  { %4453 = vmatmul.mubr.msk.bf16.vlgmr.msra.gmra.mxu1 %vm160_vm2, %v2555_v56  ;;  %4461 = vmatmul.mubr.msk.bf16.vlgmr.msra.gmra.mxu0 %vm160_vm2, %v2555_v56 }
 0xb16   :  { %4473 = vmatpush3.bf16.msra.mxu0 %v5228_v62  ;;  %4468 = vmatprep.mubr.msk.bf16.mxu1 %vm4816_vm1, %v4815_v5 }
 0xb17   :  { %4474 = vmatprep.subr.bf16.mxu0 %v4815_v5  ;;  %4476 = vmatprep.mubr.msk.bf16.mxu0 %vm4816_vm1, %v4815_v5 }
 0xb18   :  { %4465 = vmatpush3.bf16.msra.mxu1 %v4634_v57 }
 0xb19   :  { %4466 = vmatprep.subr.bf16.mxu1 %v4815_v5 }
 0xb1a   :  { %4475 = vmatpush3.bf16.msra.mxu0 %v5238_v1 }
 0xb1b   :  { %4488 = vmatprep.subr.bf16.mxu0 %v4815_v5 }
 0xb1c   :  { %4467 = vmatpush3.bf16.msra.mxu1 %v4635_v59 }
 0xb1d   :  { %4480 = vmatprep.subr.bf16.mxu1 %v4815_v5 }
 0xbcd   :  { %v2610_v0 = vpop.f32.mrf.mxu1  ;;  %v2654_v2 = vpop.f32.mrf.mxu0 }
 0xbce   :  { %v5508_v3 = vadd.f32 %v2610_v0, %v2406_v60  ;;  %v2655_v6 = vadd.f32 %v5353_v22, %v2654_v2 }
 0xbcf   :  { %v4438_v9 = vpop.f32.mrf.mxu1  ;;  %v4446_v15 = vpop.f32.mrf.mxu0 }
 0xbd0   :  { %v2740_v4 = vadd.f32 %v2655_v6, %v2617_v61  ;;  %v2824_v61 = vld [vmem:[#allocation3 + $0x20] sm:$0xff] }
 0xbd1   :  { %v2613_v11 = vpop.f32.mrf.mxu1  ;;  %v2657_v12 = vpop.f32.mrf.mxu0 }
 0xbd2   :  { %v3827_v14 = vmul.f32 -1.442695, %v2740_v4 }
 0xbd3   :  { %v4439_v16 = vpop.f32.mrf.mxu1  ;;  %v4447_v17 = vpop.f32.mrf.mxu0 }
 0xbd4   :  { %4754 = vpow2.f32 %v3827_v14 }
 0xbd5   :  { %v2694_v18 = vpop.f32.mrf.mxu1  ;;  %v2734_v10 = vpop.f32.mrf.mxu0 }
 0xbd6   :  { %v2695_v47 = vadd.f32 %v5367_v37, %v2694_v18  ;;  %v2735_v45 = vadd.f32 %v5379_v8, %v2734_v10 }
 0xbd7   :  { %v4454_v19 = vpop.f32.mrf.mxu1  ;;  %v4462_v21 = vpop.f32.mrf.mxu0 }
 0xbd8   :  { %v2747_v23 = vadd.f32 %v2695_v47, %v2618_v7 }
 0xbd9   :  { %v2697_v13 = vpop.f32.mrf.mxu1  ;;  %v2737_v24 = vpop.f32.mrf.mxu0 }
 0xbda   :  { %v3828_v25 = vmul.f32 -1.442695, %v2747_v23  ;;  %v2825_v23 = vld [vmem:[#allocation4 + $0x20] sm:$0xff] }
 0xbdb   :  { %v4455_v26 = vpop.f32.mrf.mxu1  ;;  %v4463_v63 = vpop.f32.mrf.mxu0 }
 0xbdc   :  { %4756 = vpow2.f32 %v3828_v25 }
 0xbe1   :  { %v4755_v27 = vpop.eup %4754 }
 0xbe2   :  { %v2744_v28 = vadd.f32 1.0, %v4755_v27 }
 0xbe4   :  { %4758 = vrcp.f32 %v2744_v28 }
 0xbe9   :  { %v4757_v29 = vpop.eup %4756 }
 0xbea   :  { %v2751_v30 = vadd.f32 1.0, %v4757_v29 }
 0xbec   :  { %4760 = vrcp.f32 %v2751_v30 }
 0xbf1   :  { %v4759_v31 = vpop.eup %4758 }
 0xbf2   :  { %v2754_v20 = vmul.f32 %v4759_v31, %v2735_v45 }
 0xbf4   :  { %v2755_v32 = vadd.f32 %v2754_v20, %v2619_v33  ;;  %v3029_v33 = vld [vmem:[#allocation2 + $0x28] sm:$0xff] }
 0xbf6   :  { %4762 = vtanh.f32 %v2755_v32 }
 0xbf9   :  { %v4761_v34 = vpop.eup %4760 }
 0xbfa   :  { %v2757_v36 = vsub.f32 1.0, %v4761_v34  ;;  %v2759_v40 = vmul.f32 %v4761_v34, %v5470_v55 }
 0xc03   :  { %v4763_v38 = vpop.eup %4762 }
 0xc04   :  { %v2758_v39 = vmul.f32 %v4763_v38, %v2757_v36 }
 0xc06   :  { %v5514_v41 = vadd.f32 %v2759_v40, %v2758_v39 }
 0xc08   :  { %v2761_v42 = vpack.c.bf16 %v5514_v41, %v5514_v41 }
 0xc0a   :  { %4469 = vmatmul.mubr.msk.bf16.vlgmr.msra.gmra.mxu1 %vm160_vm2, %v2761_v42  ;;  %4477 = vmatmul.mubr.msk.bf16.vlgmr.msra.gmra.mxu0 %vm160_vm2, %v2761_v42 }
 0xc0b   :  { %4481 = vmatpush3.bf16.msra.mxu1 %v5288_v35  ;;  %4489 = vmatpush3.bf16.msra.mxu0 %v5293_v46 }
 0xc0c   :  { %4482 = vmatprep.subr.bf16.mxu1 %v4815_v5  ;;  %4490 = vmatprep.subr.bf16.mxu0 %v4815_v5 }
 0xc0d   :  { %4484 = vmatprep.mubr.msk.bf16.mxu1 %vm4816_vm1, %v4815_v5  ;;  %4492 = vmatprep.mubr.msk.bf16.mxu0 %vm4816_vm1, %v4815_v5 }
 0xc0f   :  { %4483 = vmatpush3.bf16.msra.mxu1 %v5304_v51  ;;  %4491 = vmatpush3.bf16.msra.mxu0 %v5313_v58 }
 0xc10   :  { %4496 = vmatprep.subr.bf16.mxu1 %v4815_v5  ;;  %4504 = vmatprep.subr.bf16.mxu0 %v4815_v5 }
 0xc12   :  { %4485 = vmatmul.mubr.msk.bf16.vlgmr.msra.gmra.mxu1 %vm160_vm2, %v2761_v42  ;;  %4493 = vmatmul.mubr.msk.bf16.vlgmr.msra.gmra.mxu0 %vm160_vm2, %v2761_v42 }
 0xc13   :  { %4505 = vmatpush3.bf16.msra.mxu0 %v5228_v62  ;;  %4500 = vmatprep.mubr.msk.bf16.mxu1 %vm4816_vm1, %v4815_v5  ;;  %v4637_v62 = vld [vmem:[%s5725_s9 + $0x40] sm:$0xff]  }
 0xc14   :  { %4506 = vmatprep.subr.bf16.mxu0 %v4815_v5  ;;  %4508 = vmatprep.mubr.msk.bf16.mxu0 %vm4816_vm1, %v4815_v5 }
 0xc15   :  { %4497 = vmatpush3.bf16.msra.mxu1 %v4636_v43 }
 0xc16   :  { %4498 = vmatprep.subr.bf16.mxu1 %v4815_v5 }
 0xc17   :  { %4507 = vmatpush3.bf16.msra.mxu0 %v5238_v1 }
 0xc18   :  { %4520 = vmatprep.subr.bf16.mxu0 %v4815_v5 }
 0xc19   :  { %4499 = vmatpush3.bf16.msra.mxu1 %v4637_v62 }
 0xc1a   :  { %4512 = vmatprep.subr.bf16.mxu1 %v4815_v5 }
 0xcca   :  { %v2816_v44 = vpop.f32.mrf.mxu1  ;;  %v2860_v48 = vpop.f32.mrf.mxu0 }
 0xccb   :  { %v5551_v1 = vadd.f32 %v2816_v44, %v5508_v3  ;;  %v2861_v49 = vadd.f32 %v5353_v22, %v2860_v48  ;;  %v3030_v48 = vld [vmem:[#allocation3 + $0x28] sm:$0xff] }
 0xccc   :  { %v4470_v52 = vpop.f32.mrf.mxu1  ;;  %v4478_v53 = vpop.f32.mrf.mxu0 }
 0xccd   :  { %v2946_v54 = vadd.f32 %v2861_v49, %v2823_v50 }
 0xcce   :  { %v2819_v55 = vpop.f32.mrf.mxu1  ;;  %v2863_v56 = vpop.f32.mrf.mxu0 }
 0xccf   :  { %v3839_v57 = vmul.f32 -1.442695, %v2946_v54 }
 0xcd0   :  { %v4471_v59 = vpop.f32.mrf.mxu1  ;;  %v4479_v60 = vpop.f32.mrf.mxu0 }
 0xcd1   :  { %4764 = vpow2.f32 %v3839_v57 }
 0xcd2   :  { %v2900_v0 = vpop.f32.mrf.mxu1  ;;  %v2940_v2 = vpop.f32.mrf.mxu0 }
 0xcd3   :  { %v2901_v6 = vadd.f32 %v5367_v37, %v2900_v0  ;;  %v2941_v7 = vadd.f32 %v5379_v8, %v2940_v2 }
 0xcd4   :  { %v4486_v9 = vpop.f32.mrf.mxu1  ;;  %v4494_v3 = vpop.f32.mrf.mxu0 }
 0xcd5   :  { %v2953_v15 = vadd.f32 %v2901_v6, %v2824_v61  ;;  %v3031_v9 = vld [vmem:[#allocation4 + $0x28] sm:$0xff] }
 0xcd6   :  { %v2903_v4 = vpop.f32.mrf.mxu1  ;;  %v2943_v11 = vpop.f32.mrf.mxu0 }
 0xcd7   :  { %v3840_v12 = vmul.f32 -1.442695, %v2953_v15 }
 0xcd8   :  { %v4487_v14 = vpop.f32.mrf.mxu1  ;;  %v4495_v16 = vpop.f32.mrf.mxu0 }
 0xcd9   :  { %4766 = vpow2.f32 %v3840_v12 }
 0xcde   :  { %v4765_v17 = vpop.eup %4764 }
 0xcdf   :  { %v2950_v18 = vadd.f32 1.0, %v4765_v17 }
 0xce1   :  { %4768 = vrcp.f32 %v2950_v18  ;;  %v5619_v18 = vld [vmem:[%s5723_s6 + $0x18] sm:$0xff]  }
 0xce6   :  { %v4767_v10 = vpop.eup %4766 }
 0xce7   :  { %v2957_v47 = vadd.f32 1.0, %v4767_v10  ;;  %v5625_v10 = vld [vmem:[%s5723_s6 + $0x28] sm:$0xff]  }
 0xce9   :  { %4770 = vrcp.f32 %v2957_v47  ;;  %v5637_v47 = vld [vmem:[%s5723_s6 + $0x10] sm:$0xff]  }
 0xcee   :  { %v4769_v19 = vpop.eup %4768 }
 0xcef   :  { %v2960_v21 = vmul.f32 %v4769_v19, %v2941_v7  ;;  %v5643_v7 = vld [vmem:[%s5723_s6 + $0x20] sm:$0xff]   ;;  %v4640_v19 = vld [vmem:[%s5725_s9 + $0x68] sm:$0xff]  }
 0xcf1   :  { %v2961_v13 = vadd.f32 %v2960_v21, %v2825_v23  ;;  %v4641_v21 = vld [vmem:[%s5725_s9 + $0x60] sm:$0xff]  }
 0xcf3   :  { %4772 = vtanh.f32 %v2961_v13 }
 0xcf6   :  { %v4771_v24 = vpop.eup %4770 }
 0xcf7   :  { %v2963_v25 = vsub.f32 1.0, %v4771_v24  ;;  %v2965_v27 = vmul.f32 %v4771_v24, %v5514_v41 }
 0xd00   :  { %v4773_v26 = vpop.eup %4772 }
 0xd01   :  { %v2964_v63 = vmul.f32 %v4773_v26, %v2963_v25  ;;  %v3235_v26 = vld [vmem:[#allocation2 + $0x30] sm:$0xff] }
 0xd03   :  { %v5557_v28 = vadd.f32 %v2965_v27, %v2964_v63 }
 0xd05   :  { %v2967_v29 = vpack.c.bf16 %v5557_v28, %v5557_v28 }
 0xd07   :  { %4501 = vmatmul.mubr.msk.bf16.vlgmr.msra.gmra.mxu1 %vm160_vm2, %v2967_v29  ;;  %4509 = vmatmul.mubr.msk.bf16.vlgmr.msra.gmra.mxu0 %vm160_vm2, %v2967_v29 }
 0xd08   :  { %4513 = vmatpush3.bf16.msra.mxu1 %v5288_v35  ;;  %4521 = vmatpush3.bf16.msra.mxu0 %v5293_v46  ;;  %v5580_v35 = vld [vmem:[%s5723_s6 + $0x8] sm:$0xff]   ;;  %v5591_v46 = vld [vmem:[%s5723_s6] sm:$0xff]  }
 0xd09   :  { %4514 = vmatprep.subr.bf16.mxu1 %v4815_v5  ;;  %4522 = vmatprep.subr.bf16.mxu0 %v4815_v5 }
 0xd0a   :  { %4516 = vmatprep.mubr.msk.bf16.mxu1 %vm4816_vm1, %v4815_v5  ;;  %4524 = vmatprep.mubr.msk.bf16.mxu0 %vm4816_vm1, %v4815_v5 }
 0xd0c   :  { %4515 = vmatpush3.bf16.msra.mxu1 %v5304_v51  ;;  %4523 = vmatpush3.bf16.msra.mxu0 %v5313_v58  ;;  %v4638_v51 = vld [vmem:[%s5725_s9 + $0x58] sm:$0xff]   ;;  %v4639_v58 = vld [vmem:[%s5725_s9 + $0x50] sm:$0xff]  }
 0xd0d   :  { %4528 = vmatprep.subr.bf16.mxu1 %v4815_v5  ;;  %4536 = vmatprep.subr.bf16.mxu0 %v4815_v5 }
 0xd0f   :  { %4517 = vmatmul.mubr.msk.bf16.vlgmr.msra.gmra.mxu1 %vm160_vm2, %v2967_v29  ;;  %4525 = vmatmul.mubr.msk.bf16.vlgmr.msra.gmra.mxu0 %vm160_vm2, %v2967_v29 }
 0xd10   :  { %4537 = vmatpush3.bf16.msra.mxu0 %v5580_v35  ;;  %4532 = vmatprep.mubr.msk.bf16.mxu1 %vm4816_vm1, %v4815_v5 }
 0xd11   :  { %4538 = vmatprep.subr.bf16.mxu0 %v4815_v5  ;;  %4540 = vmatprep.mubr.msk.bf16.mxu0 %vm4816_vm1, %v4815_v5 }
 0xd12   :  { %4529 = vmatpush3.bf16.msra.mxu1 %v4638_v51 }
 0xd13   :  { %4530 = vmatprep.subr.bf16.mxu1 %v4815_v5 }
 0xd14   :  { %4539 = vmatpush3.bf16.msra.mxu0 %v5591_v46 }
 0xd15   :  { %4552 = vmatprep.subr.bf16.mxu0 %v4815_v5 }
 0xd16   :  { %4531 = vmatpush3.bf16.msra.mxu1 %v4639_v58 }
 0xd17   :  { %4544 = vmatprep.subr.bf16.mxu1 %v4815_v5 }
 0xdc7   :  { %v3022_v30 = vpop.f32.mrf.mxu1  ;;  %v3066_v45 = vpop.f32.mrf.mxu0 }
 0xdc8   :  { %v5604_v31 = vadd.f32 %v3022_v30, %v5551_v1  ;;  %v3067_v20 = vadd.f32 %v5353_v22, %v3066_v45 }
 0xdc9   :  { %v4502_v32 = vpop.f32.mrf.mxu1  ;;  %v4510_v34 = vpop.f32.mrf.mxu0 }
 0xdca   :  { %v3152_v36 = vadd.f32 %v3067_v20, %v3029_v33  ;;  %v3236_v33 = vld [vmem:[#allocation3 + $0x30] sm:$0xff] }
 0xdcb   :  { %v3025_v38 = vpop.f32.mrf.mxu1  ;;  %v3069_v39 = vpop.f32.mrf.mxu0 }
 0xdcc   :  { %v3851_v40 = vmul.f32 -1.442695, %v3152_v36 }
 0xdcd   :  { %v4503_v41 = vpop.f32.mrf.mxu1  ;;  %v4511_v42 = vpop.f32.mrf.mxu0 }
 0xdce   :  { %4774 = vpow2.f32 %v3851_v40 }
 0xdcf   :  { %v3106_v43 = vpop.f32.mrf.mxu1  ;;  %v3146_v62 = vpop.f32.mrf.mxu0 }
 0xdd0   :  { %v3107_v44 = vadd.f32 %v5367_v37, %v3106_v43  ;;  %v3147_v2 = vadd.f32 %v5379_v8, %v3146_v62 }
 0xdd1   :  { %v4518_v49 = vpop.f32.mrf.mxu1  ;;  %v4526_v1 = vpop.f32.mrf.mxu0 }
 0xdd2   :  { %v3159_v50 = vadd.f32 %v3107_v44, %v3030_v48  ;;  %v3237_v49 = vld [vmem:[#allocation4 + $0x30] sm:$0xff] }
 0xdd3   :  { %v3109_v52 = vpop.f32.mrf.mxu1  ;;  %v3149_v53 = vpop.f32.mrf.mxu0 }
 0xdd4   :  { %v3852_v54 = vmul.f32 -1.442695, %v3159_v50 }
 0xdd5   :  { %v4519_v55 = vpop.f32.mrf.mxu1  ;;  %v4527_v56 = vpop.f32.mrf.mxu0 }
 0xdd6   :  { %4776 = vpow2.f32 %v3852_v54 }
 0xddb   :  { %v4775_v57 = vpop.eup %4774 }
 0xddc   :  { %v3156_v59 = vadd.f32 1.0, %v4775_v57 }
 0xdde   :  { %4778 = vrcp.f32 %v3156_v59  ;;  %v4642_v59 = vld [vmem:[%s5725_s9 + $0x78] sm:$0xff]  }
 0xde3   :  { %v4777_v60 = vpop.eup %4776 }
 0xde4   :  { %v3163_v0 = vadd.f32 1.0, %v4777_v60  ;;  %v4643_v60 = vld [vmem:[%s5725_s9 + $0x70] sm:$0xff]  }
 0xde6   :  { %4780 = vrcp.f32 %v3163_v0 }
 0xdeb   :  { %v4779_v6 = vpop.eup %4778 }
 0xdec   :  { %v3166_v61 = vmul.f32 %v4779_v6, %v3147_v2 }
 0xdee   :  { %v3167_v3 = vadd.f32 %v3166_v61, %v3031_v9  ;;  %v4813_v61 = vld [vmem:[%s5726_s8] ss:$0 sm:$0xff] }
 0xdf0   :  { %4782 = vtanh.f32 %v3167_v3  ;;  %v3441_v3 = vld [vmem:[#allocation2 + $0x38] sm:$0xff] }
 0xdf3   :  { %v4781_v15 = vpop.eup %4780 }
 0xdf4   :  { %v3169_v4 = vsub.f32 1.0, %v4781_v15  ;;  %v3171_v14 = vmul.f32 %v4781_v15, %v5557_v28 }
 0xdfd   :  { %v4783_v11 = vpop.eup %4782 }
 0xdfe   :  { %v3170_v12 = vmul.f32 %v4783_v11, %v3169_v4 }
 0xe00   :  { %v5610_v16 = vadd.f32 %v3171_v14, %v3170_v12 }
 0xe02   :  { %v3173_v17 = vpack.c.bf16 %v5610_v16, %v5610_v16 }
 0xe04   :  { %4533 = vmatmul.mubr.msk.bf16.vlgmr.msra.gmra.mxu1 %vm160_vm2, %v3173_v17  ;;  %4541 = vmatmul.mubr.msk.bf16.vlgmr.msra.gmra.mxu0 %vm160_vm2, %v3173_v17 }
 0xe05   :  { %4545 = vmatpush3.bf16.msra.mxu1 %v5619_v18  ;;  %4553 = vmatpush3.bf16.msra.mxu0 %v5625_v10 }
 0xe06   :  { %4546 = vmatprep.subr.bf16.mxu1 %v4815_v5  ;;  %4554 = vmatprep.subr.bf16.mxu0 %v4815_v5 }
 0xe07   :  { %4548 = vmatprep.mubr.msk.bf16.mxu1 %vm4816_vm1, %v4815_v5  ;;  %4556 = vmatprep.mubr.msk.bf16.mxu0 %vm4816_vm1, %v4815_v5 }
 0xe09   :  { %4547 = vmatpush3.bf16.msra.mxu1 %v5637_v47  ;;  %4555 = vmatpush3.bf16.msra.mxu0 %v5643_v7 }
 0xe0a   :  { %4560 = vmatprep.subr.bf16.mxu1 %v4815_v5  ;;  %4568 = vmatprep.subr.bf16.mxu0 %v4815_v5 }
 0xe0c   :  { %4549 = vmatmul.mubr.msk.bf16.vlgmr.msra.gmra.mxu1 %vm160_vm2, %v3173_v17  ;;  %4557 = vmatmul.mubr.msk.bf16.vlgmr.msra.gmra.mxu0 %vm160_vm2, %v3173_v17 }
 0xe0d   :  { %4569 = vmatpush3.bf16.msra.mxu0 %v5580_v35  ;;  %4564 = vmatprep.mubr.msk.bf16.mxu1 %vm4816_vm1, %v4815_v5 }
 0xe0e   :  { %4570 = vmatprep.subr.bf16.mxu0 %v4815_v5  ;;  %4572 = vmatprep.mubr.msk.bf16.mxu0 %vm4816_vm1, %v4815_v5 }
 0xe0f   :  { %4561 = vmatpush3.bf16.msra.mxu1 %v4640_v19  ;;  %v3442_v19 = vld [vmem:[#allocation3 + $0x38] sm:$0xff] }
 0xe10   :  { %4562 = vmatprep.subr.bf16.mxu1 %v4815_v5 }
 0xe11   :  { %4571 = vmatpush3.bf16.msra.mxu0 %v5591_v46 }
 0xe12   :  { %4584 = vmatprep.subr.bf16.mxu0 %v4815_v5 }
 0xe13   :  { %4563 = vmatpush3.bf16.msra.mxu1 %v4641_v21 }
 0xe14   :  { %4576 = vmatprep.subr.bf16.mxu1 %v4815_v5 }
 0xec4   :  { %v3228_v23 = vpop.f32.mrf.mxu1  ;;  %v3272_v13 = vpop.f32.mrf.mxu0 }
 0xec5   :  { %v5667_v24 = vadd.f32 %v3228_v23, %v5604_v31  ;;  %v3273_v25 = vadd.f32 %v5353_v22, %v3272_v13 }
 0xec6   :  { %v4534_v63 = vpop.f32.mrf.mxu1  ;;  %v4542_v27 = vpop.f32.mrf.mxu0 }
 0xec7   :  { %v3358_v28 = vadd.f32 %v3273_v25, %v3235_v26 }
 0xec8   :  { %v3231_v29 = vpop.f32.mrf.mxu1  ;;  %v3275_v35 = vpop.f32.mrf.mxu0 }
 0xec9   :  { %v3863_v46 = vmul.f32 -1.442695, %v3358_v28 }
 0xeca   :  { %v4535_v51 = vpop.f32.mrf.mxu1  ;;  %v4543_v58 = vpop.f32.mrf.mxu0 }
 0xecb   :  { %4784 = vpow2.f32 %v3863_v46 }
 0xecc   :  { %v3312_v30 = vpop.f32.mrf.mxu1  ;;  %v3352_v45 = vpop.f32.mrf.mxu0 }
 0xecd   :  { %v3313_v20 = vadd.f32 %v5367_v37, %v3312_v30  ;;  %v3353_v44 = vadd.f32 %v5379_v8, %v3352_v45  ;;  %v3443_v45 = vld [vmem:[#allocation4 + $0x38] sm:$0xff] }
 0xece   :  { %v4550_v32 = vpop.f32.mrf.mxu1  ;;  %v4558_v31 = vpop.f32.mrf.mxu0 }
 0xecf   :  { %v3365_v34 = vadd.f32 %v3313_v20, %v3236_v33 }
 0xed0   :  { %v3315_v36 = vpop.f32.mrf.mxu1  ;;  %v3355_v22 = vpop.f32.mrf.mxu0 }
 0xed1   :  { %v3864_v38 = vmul.f32 -1.442695, %v3365_v34 }
 0xed2   :  { %v4551_v39 = vpop.f32.mrf.mxu1  ;;  %v4559_v40 = vpop.f32.mrf.mxu0 }
 0xed3   :  { %4786 = vpow2.f32 %v3864_v38 }
 0xed8   :  { %v4785_v41 = vpop.eup %4784 }
 0xed9   :  { %v3362_v42 = vadd.f32 1.0, %v4785_v41 }
 0xedb   :  { %4788 = vrcp.f32 %v3362_v42 }
 0xee0   :  { %v4787_v43 = vpop.eup %4786 }
 0xee1   :  { %v3369_v62 = vadd.f32 1.0, %v4787_v43 }
 0xee3   :  { %4790 = vrcp.f32 %v3369_v62 }
 0xee8   :  { %v4789_v48 = vpop.eup %4788 }
 0xee9   :  { %v3372_v37 = vmul.f32 %v4789_v48, %v3353_v44 }
 0xeeb   :  { %v3373_v1 = vadd.f32 %v3372_v37, %v3237_v49 }
 0xeed   :  { %4792 = vtanh.f32 %v3373_v1 }
 0xef0   :  { %v4791_v50 = vpop.eup %4790 }
 0xef1   :  { %v3375_v52 = vsub.f32 1.0, %v4791_v50  ;;  %v3377_v55 = vmul.f32 %v4791_v50, %v5610_v16 }
 0xefa   :  { %v4793_v53 = vpop.eup %4792 }
 0xefb   :  { %v3376_v54 = vmul.f32 %v4793_v53, %v3375_v52 }
 0xefd   :  { %v5673_v56 = vadd.f32 %v3377_v55, %v3376_v54 }
 0xeff   :  { %v3379_v57 = vpack.c.bf16 %v5673_v56, %v5673_v56 }
 0xf01   :  { %4565 = vmatmul.mubr.msk.bf16.vlgmr.msra.gmra.mxu1 %vm160_vm2, %v3379_v57  ;;  %4573 = vmatmul.mubr.msk.bf16.vlgmr.msra.gmra.mxu0 %vm160_vm2, %v3379_v57 }
 0xf02   :  { %4577 = vmatpush3.bf16.msra.mxu1 %v5619_v18  ;;  %4585 = vmatpush3.bf16.msra.mxu0 %v5625_v10 }
 0xf03   :  { %4578 = vmatprep.subr.bf16.mxu1 %v4815_v5  ;;  %4586 = vmatprep.subr.bf16.mxu0 %v4815_v5 }
 0xf04   :  { %4580 = vmatprep.mubr.msk.bf16.mxu1 %vm4816_vm1, %v4815_v5  ;;  %4588 = vmatprep.mubr.msk.bf16.mxu0 %vm4816_vm1, %v4815_v5 }
 0xf06   :  { %4579 = vmatpush3.bf16.msra.mxu1 %v5637_v47  ;;  %4587 = vmatpush3.bf16.msra.mxu0 %v5643_v7  ;;  %v4814_v47 = vld [vmem:[%s5726_s8 + $0x1] ss:$0 sm:$0xff] }
 0xf07   :  { %4592 = vmatprep.subr.bf16.mxu1 %v4815_v5 }
 0xf09   :  { %4581 = vmatmul.mubr.msk.bf16.vlgmr.msra.gmra.mxu1 %vm160_vm2, %v3379_v57  ;;  %4589 = vmatmul.mubr.msk.bf16.vlgmr.msra.gmra.mxu0 %vm160_vm2, %v3379_v57 }
 0xf0a   :  { %4596 = vmatprep.mubr.msk.bf16.mxu1 %vm4816_vm1, %v4815_v5  ;;  %4593 = vmatpush3.bf16.msra.mxu1 %v4642_v59 }
 0xf0b   :  { %4594 = vmatprep.subr.bf16.mxu1 %v4815_v5 }
 0xf0e   :  { %4595 = vmatpush3.bf16.msra.mxu1 %v4643_v60 }
 0xfc1   :  { %v3434_v0 = vpop.f32.mrf.mxu1  ;;  %v3478_v2 = vpop.f32.mrf.mxu0 }
 0xfc2   :  { %v3440_v6 = vadd.f32 %v3434_v0, %v5667_v24  ;;  %v3479_v9 = vadd.f32 %v4813_v61, %v3478_v2 }
 0xfc3   :  { %v4566_v15 = vpop.f32.mrf.mxu1  ;;  %v4574_v4 = vpop.f32.mrf.mxu0 }
 0xfc4   :  { %v3564_v11 = vadd.f32 %v3479_v9, %v3441_v3 }
 0xfc5   :  { %v3437_v12 = vpop.f32.mrf.mxu1  ;;  %v3481_v14 = vpop.f32.mrf.mxu0 }
 0xfc6   :  { %v3875_v16 = vmul.f32 -1.442695, %v3564_v11 }
 0xfc7   :  { %v4567_v17 = vpop.f32.mrf.mxu1  ;;  %v4575_v18 = vpop.f32.mrf.mxu0 }
 0xfc8   :  { %4794 = vpow2.f32 %v3875_v16 }
 0xfc9   :  { %v3518_v5 = vpop.f32.mrf.mxu1  ;;  %v3558_v10 = vpop.f32.mrf.mxu0 }
 0xfca   :  { %v3519_v7 = vadd.f32 %v4814_v47, %v3518_v5  ;;  %v3559_v51 = vadd.f32 %v5379_v8, %v3558_v10  ;;  %v3884_v8 = vld [vmem:[%s5727_s10] ss:$0 sm:$0xff] }
 0xfcb   :  { %v4582_v21 = vpop.f32.mrf.mxu1  ;;  %v4590_v23 = vpop.f32.mrf.mxu0 }
 0xfcc   :  { %v3571_v13 = vadd.f32 %v3519_v7, %v3442_v19 }
 0xfcd   :  { %v3521_v24 = vpop.f32.mrf.mxu1  ;;  %v3561_v25 = vpop.f32.mrf.mxu0 }
 0xfce   :  { %v3876_v26 = vmul.f32 -1.442695, %v3571_v13 }
 0xfcf   :  { %v4583_v63 = vpop.f32.mrf.mxu1  ;;  %v4591_v27 = vpop.f32.mrf.mxu0 }
 0xfd0   :  { %4796 = vpow2.f32 %v3876_v26 }
 0xfd5   :  { %v4795_v28 = vpop.eup %4794 }
 0xfd6   :  { %v3568_v29 = vadd.f32 1.0, %v4795_v28 }
 0xfd8   :  { %4798 = vrcp.f32 %v3568_v29 }
 0xfdd   :  { %v4797_v35 = vpop.eup %4796 }
 0xfde   :  { %v3575_v46 = vadd.f32 1.0, %v4797_v35 }
 0xfe0   :  { %4800 = vrcp.f32 %v3575_v46 }
 0xfe5   :  { %v4799_v58 = vpop.eup %4798 }
 0xfe6   :  { %v3578_v30 = vmul.f32 %v4799_v58, %v3559_v51 }
 0xfe8   :  { %v3579_v20 = vadd.f32 %v3578_v30, %v3443_v45 }
 0xfea   :  { %4802 = vtanh.f32 %v3579_v20 }
 0xfed   :  { %v4801_v33 = vpop.eup %4800 }
 0xfee   :  { %v3581_v32 = vsub.f32 1.0, %v4801_v33  ;;  %v3583_v36 = vmul.f32 %v4801_v33, %v5673_v56 }
 0xff7   :  { %v4803_v31 = vpop.eup %4802 }
 0xff8   :  { %v3582_v34 = vmul.f32 %v4803_v31, %v3581_v32 }
 0xffa   :  { %v3584_v22 = vadd.f32 %v3583_v36, %v3582_v34 }
 0xffc   :  { %v3585_v38 = vpack.c.bf16 %v3584_v22, %v3584_v22 }
 0xffe   :  { %4597 = vmatmul.mubr.msk.bf16.vlgmr.msra.gmra.mxu1 %vm160_vm2, %v3585_v38 }
0x10be   :  { %v3640_v39 = vpop.f32.mrf.mxu1 }
0x10bf   :  { %v3646_v40 = vadd.f32 %v3640_v39, %v3440_v6 }
0x10c0   :  { %v4598_v41 = vpop.f32.mrf.mxu1 }
0x10c1   :  { %v3654_v42 = vadd.f32 %v3884_v8, %v3646_v40 }
0x10c2   :  { %v3643_v43 = vpop.f32.mrf.mxu1 }
0x10c3   :  { %3656 = vst.msk [vmem:[%s5728_s11] sm:$0xff] %vm3655_vm3, %v3654_v42 }
0x10c4   :  { %v4599_v62 = vpop.f32.mrf.mxu1 }

</bundles_post_ra>
